<compile_context>
chip_gen: v6e
topology: v6e:2x2x1
jax: 0.10.0
libtpu: 0.0.40
codegen_flags: <defaults>
</compile_context>

<pallas_src>
import math

import numpy as np
import jax
import jax.numpy as jnp
from jax.experimental import pallas as pl
from jax.experimental.pallas import tpu as pltpu

_BN_EPS = 1e-5


# ---------------------------------------------------------------------------
# In-kernel helpers (traced inside the Pallas body, fully unrolled)
# ---------------------------------------------------------------------------

def _shift_cols(a, s):
    """res[:, p] = a[:, p + s] if 0 <= p + s < n else 0   (static s)."""
    c, n = a.shape
    if s == 0:
        return a
    z = jnp.zeros((c, abs(s)), a.dtype)
    if s > 0:
        return jnp.concatenate([a[:, s:], z], axis=1)
    return jnp.concatenate([z, a[:, : n + s]], axis=1)


def _conv3x3_bias_relu(a, masks, w_ref, b_ref, w_img):
    """3x3 same-pad conv as ONE matmul over a sublane-stacked (9*cin, n) slab.

    a:      (cin, n) activation, pixels (batch-stacked, row-major) on lanes.
    masks:  list of 9 (1, n) f32 validity masks (tap order kh*3 + kw).
    w_ref:  (cout, 9*cin) folded-BN weights, column t*cin+ci = w[kh,kw,ci,co].
    b_ref:  (cout, 1) folded-BN bias.
    """
    slabs = []
    for kh in range(3):
        for kw in range(3):
            t = kh * 3 + kw
            shifted = _shift_cols(a, (kh - 1) * w_img + (kw - 1))
            slabs.append(shifted * masks[t])
    cat = jnp.concatenate(slabs, axis=0)                  # (9*cin, n)
    out = jnp.dot(w_ref[...], cat, preferred_element_type=jnp.float32)
    return jnp.maximum(out + b_ref[...], 0.0)


def _make_fused_kernel(spatials, group):
    """One grid step == `group` batch samples, all decoder layers fused."""
    hw_final = spatials[-1][0] * spatials[-1][1]

    def kernel(*refs):
        *ins, o_ref = refs
        it = iter(ins)
        x_ref = next(it)                       # (B, d_model) full array
        r_ref = next(it)                       # (group, group*hw0) 0/1 matrix
        base = pl.program_id(0) * group
        x_sel = x_ref[pl.ds(base, group), :]   # (group, d_model)
        # Initial 2x2 tile + first nearest-2x upsample == per-sample broadcast
        # of x over the first 4x4 grid:  a[c, s*hw0 + p] = x[s, c].
        a = jnp.dot(x_sel.T, r_ref[...],
                    preferred_element_type=jnp.float32)   # (d_model, group*hw0)

        for bi, (h, w) in enumerate(spatials):
            if bi > 0:                         # nearest-2x upsample (block-diag)
                ut_ref = next(it)
                a = jnp.dot(a, ut_ref[...].astype(jnp.float32),
                            preferred_element_type=jnp.float32)
            m_ref = next(it)                   # (9, 1, group*h*w) tap masks
            masks = [m_ref[t] for t in range(9)]
            for _ in range(2):                 # conv1, conv2 (+ folded BN, ReLU)
                w_ref = next(it)
                b_ref = next(it)
                a = _conv3x3_bias_relu(a, masks, w_ref, b_ref, w)

        wf_ref = next(it)                      # final 1x1 conv weight (C, cin)
        bf_ref = next(it)                      # final bias (C, 1)
        y = jnp.tanh(jnp.dot(wf_ref[...], a, preferred_element_type=jnp.float32)
                     + bf_ref[...])            # (C, group*hw_final), lane-dense
        for s in range(group):
            o_ref[s] = y[:, s * hw_final:(s + 1) * hw_final]

    return kernel


# ---------------------------------------------------------------------------
# Host-side structural constants (0/1 matrices & masks), built at trace time
# ---------------------------------------------------------------------------

def _tap_masks(h, w, group):
    """(9, 1, group*h*w) f32 validity masks for the 9 taps of a 3x3 same conv."""
    hw = h * w
    pix = np.arange(hw)
    hi, wi = pix // w, pix % w
    m = np.zeros((9, hw), np.float32)
    for kh in range(3):
        for kw in range(3):
            dh, dw = kh - 1, kw - 1
            ok = (hi + dh >= 0) & (hi + dh < h) & (wi + dw >= 0) & (wi + dw < w)
            m[kh * 3 + kw] = ok.astype(np.float32)
    m = np.tile(m, (1, group))                 # samples stacked sample-major
    return jnp.asarray(m.reshape(9, 1, group * hw))


def _blockdiag_upsample_t(h_in, w_in, group):
    """Ut (group*hw_in, group*hw_out): a @ Ut is per-sample nearest-2x upsample."""
    h_out, w_out = 2 * h_in, 2 * w_in
    hw_in, hw_out = h_in * w_in, h_out * w_out
    ut = np.zeros((group * hw_in, group * hw_out), np.float32)
    for s in range(group):
        for i in range(h_out):
            for j in range(w_out):
                src = (i // 2) * w_in + (j // 2)
                ut[s * hw_in + src, s * hw_out + i * w_out + j] = 1.0
    return jnp.asarray(ut, jnp.bfloat16)       # 0/1 values: exact in bf16


def _broadcast_matrix(hw0, group):
    """R (group, group*hw0) with R[s, s*hw0+j] = 1; x^T @ R broadcasts x[s]."""
    r = np.zeros((group, group * hw0), np.float32)
    for s in range(group):
        r[s, s * hw0:(s + 1) * hw0] = 1.0
    return jnp.asarray(r)


# ---------------------------------------------------------------------------
# Parameter construction (deterministic, synthetic) — mirrors the PyTorch net
# ---------------------------------------------------------------------------

def _fold_bn(gamma, beta, mean, var):
    scale = gamma / jnp.sqrt(var + _BN_EPS)
    return scale, beta - mean * scale


def _make_conv_bn(key, cin, cout):
    ks = jax.random.split(key, 5)
    w = jax.random.normal(ks[0], (3, 3, cin, cout), jnp.float32)
    w = w * (1.0 / math.sqrt(9 * cin))
    gamma = 1.0 + 0.1 * jax.random.normal(ks[1], (cout,), jnp.float32)
    beta = 0.05 * jax.random.normal(ks[2], (cout,), jnp.float32)
    mean = 0.01 * jax.random.normal(ks[3], (cout,), jnp.float32)
    var = 1.0 + 0.1 * jax.random.uniform(ks[4], (cout,), jnp.float32)
    scale, bias = _fold_bn(gamma, beta, mean, var)
    # Fold eval-mode BN scale into the weights; lay out as (cout, 9*cin) with
    # tap-major columns matching the in-kernel sublane-stacked slab.
    w9 = w.reshape(9, cin, cout) * scale[None, None, :]
    wk = jnp.transpose(w9, (2, 0, 1)).reshape(cout, 9 * cin)
    return dict(w=wk, b=bias.reshape(cout, 1))


def build_transpose_resnet_params(key, d_model, output_shape):
    num_channels, height, width = output_shape
    initial_h, initial_w = 2, 2
    req_h = max(math.ceil(math.log2(height / initial_h)), 0)
    req_w = max(math.ceil(math.log2(width / initial_w)), 0)
    num_layers = max(req_h, req_w)
    min_ch = 16
    init_ch = max(d_model, min_ch * 2 ** (num_layers - 1))
    in_channels = [max(init_ch // 2 ** i, min_ch) for i in range(num_layers)]
    out_channels = in_channels[1:] + [max(in_channels[-1] // 2, min_ch)]
    in_channels[0] = d_model

    keys = jax.random.split(key, 2 * num_layers + 2)
    blocks, spatials = [], []
    h, w = initial_h, initial_w
    for li, (cin, cout) in enumerate(zip(in_channels, out_channels)):
        h, w = 2 * h, 2 * w
        spatials.append((h, w))
        blocks.append(dict(conv1=_make_conv_bn(keys[2 * li], cin, cout),
                           conv2=_make_conv_bn(keys[2 * li + 1], cout, cout)))

    fcin = out_channels[-1]
    fw = jax.random.normal(keys[-2], (fcin, num_channels), jnp.float32)
    fw = fw * (1.0 / math.sqrt(fcin))
    fb = 0.05 * jax.random.normal(keys[-1], (num_channels,), jnp.float32)
    return dict(blocks=blocks, spatials=spatials,
                final_wT=fw.T, final_bT=fb.reshape(num_channels, 1),
                d_model=d_model, num_channels=num_channels,
                height=height, width=width)


# ---------------------------------------------------------------------------
# Forward pass: a single fused pallas_call
# ---------------------------------------------------------------------------

def _const_spec(shape):
    nd = len(shape)
    return pl.BlockSpec(tuple(shape), lambda g, _nd=nd: (0,) * _nd)


def transpose_resnet_forward(params, x, *, samples_per_step=None):
    """x: (B, d_model) float32.  Returns NCHW (B, num_channels, H, W)."""
    batch = x.shape[0]
    height, width = params["height"], params["width"]
    num_channels = params["num_channels"]
    d_model = params["d_model"]
    spatials = params["spatials"]
    if spatials[-1] != (height, width):
        # TODO(synk): bilinear F.interpolate (align_corners=False) fallback for
        # non-power-of-two output shapes is not implemented in the fused kernel.
        raise NotImplementedError("fused kernel expects power-of-two output shape")
    hw_final = height * width

    # One grid step handles `group` samples stacked along the pixel/lane axis.
    # Default: whole batch in one step (best on single-TC v5e/v6e).  On v7x
    # pass samples_per_step = batch // 2 so both TensorCores get a group.
    group = batch if samples_per_step is None else samples_per_step
    assert batch % group == 0, "batch must be divisible by samples_per_step"
    num_groups = batch // group

    h0, w0 = spatials[0]
    inputs = [x.astype(jnp.float32), _broadcast_matrix(h0 * w0, group)]
    in_specs = [_const_spec((batch, d_model)),
                _const_spec((group, group * h0 * w0))]
    for bi, (h, w) in enumerate(spatials):
        if bi > 0:
            ph, pw = spatials[bi - 1]
            ut = _blockdiag_upsample_t(ph, pw, group)
            inputs.append(ut)
            in_specs.append(_const_spec(ut.shape))
        m = _tap_masks(h, w, group)
        inputs.append(m)
        in_specs.append(_const_spec(m.shape))
        blk = params["blocks"][bi]
        for conv in (blk["conv1"], blk["conv2"]):
            inputs.append(conv["w"])
            in_specs.append(_const_spec(conv["w"].shape))
            inputs.append(conv["b"])
            in_specs.append(_const_spec(conv["b"].shape))
    inputs += [params["final_wT"], params["final_bT"]]
    in_specs += [_const_spec(params["final_wT"].shape),
                 _const_spec(params["final_bT"].shape)]

    y = pl.pallas_call(
        _make_fused_kernel(spatials, group),
        out_shape=jax.ShapeDtypeStruct((batch, num_channels, hw_final),
                                       jnp.float32),
        grid=(num_groups,),
        in_specs=in_specs,
        out_specs=pl.BlockSpec((group, num_channels, hw_final),
                               lambda g: (g, 0, 0)),
        compiler_params=pltpu.CompilerParams(
            dimension_semantics=("parallel",),
            vmem_limit_bytes=8 * 1024 * 1024,
        ),
    )(*inputs)

    # Output is already lane-dense (B, C, H*W): plain reshape, no transpose.
    return y.reshape(batch, num_channels, height, width)


# ---------------------------------------------------------------------------
# Pure-JAX reference (same folded parameters) used as a correctness check
# ---------------------------------------------------------------------------

def transpose_resnet_reference(params, x):
    batch = x.shape[0]
    d_model = params["d_model"]
    a = jnp.broadcast_to(x[:, None, None, :], (batch, 2, 2, d_model))
    for blk in params["blocks"]:
        a = jnp.repeat(jnp.repeat(a, 2, axis=1), 2, axis=2)    # nearest 2x
        for conv in (blk["conv1"], blk["conv2"]):
            wk = conv["w"]                                     # (cout, 9*cin)
            cout, cin = wk.shape[0], wk.shape[1] // 9
            w = jnp.transpose(wk.reshape(cout, 9, cin),
                              (1, 2, 0)).reshape(3, 3, cin, cout)
            a = jax.lax.conv_general_dilated(
                a, w, window_strides=(1, 1), padding=((1, 1), (1, 1)),
                dimension_numbers=("NHWC", "HWIO", "NHWC"),
                precision=jax.lax.Precision.HIGHEST)
            a = jnp.maximum(a + conv["b"].reshape(1, 1, 1, -1), 0.0)
    y = jnp.einsum("bhwc,fc->bhwf", a, params["final_wT"],
                   precision=jax.lax.Precision.HIGHEST)
    y = jnp.tanh(y + params["final_bT"].reshape(1, 1, 1, -1))
    return jnp.transpose(y, (0, 3, 1, 2))


# ---------------------------------------------------------------------------

if __name__ == "__main__":
    key = jax.random.PRNGKey(0)
    k_params, k_x = jax.random.split(key)

    d_model = 32
    output_shape = (3, 16, 16)   # (num_channels, height, width)
    batch = 2

    params = build_transpose_resnet_params(k_params, d_model, output_shape)
    x = jax.random.normal(k_x, (batch, d_model), jnp.float32)

    out = jax.block_until_ready(transpose_resnet_forward(params, x))
    assert out.shape == (batch,) + output_shape
    assert bool(jnp.all(jnp.isfinite(out)))

    ref = jax.block_until_ready(transpose_resnet_reference(params, x))
    max_err = float(jnp.max(jnp.abs(out - ref)))
    assert max_err < 5e-2, f"max abs error vs JAX reference: {max_err}"

    print("KERNEL_OK")
</pallas_src>

<mosaic_0001>
module attributes {stable_mosaic.version = 11 : i64} {
  func.func @kernel(%arg0: i32, %arg1: memref<2x32xf32, #tpu.memory_space<vmem>>, %arg2: memref<2x32xf32, #tpu.memory_space<vmem>>, %arg3: memref<9x1x32xf32, #tpu.memory_space<vmem>>, %arg4: memref<32x288xf32, #tpu.memory_space<vmem>>, %arg5: memref<32x1xf32, #tpu.memory_space<vmem>>, %arg6: memref<32x288xf32, #tpu.memory_space<vmem>>, %arg7: memref<32x1xf32, #tpu.memory_space<vmem>>, %arg8: memref<32x128xbf16, #tpu.memory_space<vmem>>, %arg9: memref<9x1x128xf32, #tpu.memory_space<vmem>>, %arg10: memref<16x288xf32, #tpu.memory_space<vmem>>, %arg11: memref<16x1xf32, #tpu.memory_space<vmem>>, %arg12: memref<16x144xf32, #tpu.memory_space<vmem>>, %arg13: memref<16x1xf32, #tpu.memory_space<vmem>>, %arg14: memref<128x512xbf16, #tpu.memory_space<vmem>>, %arg15: memref<9x1x512xf32, #tpu.memory_space<vmem>>, %arg16: memref<16x144xf32, #tpu.memory_space<vmem>>, %arg17: memref<16x1xf32, #tpu.memory_space<vmem>>, %arg18: memref<16x144xf32, #tpu.memory_space<vmem>>, %arg19: memref<16x1xf32, #tpu.memory_space<vmem>>, %arg20: memref<3x16xf32, #tpu.memory_space<vmem>>, %arg21: memref<3x1xf32, #tpu.memory_space<vmem>>, %arg22: memref<2x3x256xf32, #tpu.memory_space<vmem>>) attributes {dimension_semantics = [#tpu.dimension_semantics<parallel>], iteration_bounds = array<i64: 1>, scalar_prefetch = 0 : i64, scratch_operands = 0 : i64, tpu.core_type = #tpu.core_type<tc>, window_params = [{pipeline_mode = #tpu.pipeline_mode<synchronous>, transform_indices = @transform_0, window_bounds = array<i64: 2, 32>}, {pipeline_mode = #tpu.pipeline_mode<synchronous>, transform_indices = @transform_1, window_bounds = array<i64: 2, 32>}, {pipeline_mode = #tpu.pipeline_mode<synchronous>, transform_indices = @transform_2, window_bounds = array<i64: 9, 1, 32>}, {pipeline_mode = #tpu.pipeline_mode<synchronous>, transform_indices = @transform_3, window_bounds = array<i64: 32, 288>}, {pipeline_mode = #tpu.pipeline_mode<synchronous>, transform_indices = @transform_4, window_bounds = array<i64: 32, 1>}, {pipeline_mode = #tpu.pipeline_mode<synchronous>, transform_indices = @transform_5, window_bounds = array<i64: 32, 288>}, {pipeline_mode = #tpu.pipeline_mode<synchronous>, transform_indices = @transform_6, window_bounds = array<i64: 32, 1>}, {pipeline_mode = #tpu.pipeline_mode<synchronous>, transform_indices = @transform_7, window_bounds = array<i64: 32, 128>}, {pipeline_mode = #tpu.pipeline_mode<synchronous>, transform_indices = @transform_8, window_bounds = array<i64: 9, 1, 128>}, {pipeline_mode = #tpu.pipeline_mode<synchronous>, transform_indices = @transform_9, window_bounds = array<i64: 16, 288>}, {pipeline_mode = #tpu.pipeline_mode<synchronous>, transform_indices = @transform_10, window_bounds = array<i64: 16, 1>}, {pipeline_mode = #tpu.pipeline_mode<synchronous>, transform_indices = @transform_11, window_bounds = array<i64: 16, 144>}, {pipeline_mode = #tpu.pipeline_mode<synchronous>, transform_indices = @transform_12, window_bounds = array<i64: 16, 1>}, {pipeline_mode = #tpu.pipeline_mode<synchronous>, transform_indices = @transform_13, window_bounds = array<i64: 128, 512>}, {pipeline_mode = #tpu.pipeline_mode<synchronous>, transform_indices = @transform_14, window_bounds = array<i64: 9, 1, 512>}, {pipeline_mode = #tpu.pipeline_mode<synchronous>, transform_indices = @transform_15, window_bounds = array<i64: 16, 144>}, {pipeline_mode = #tpu.pipeline_mode<synchronous>, transform_indices = @transform_16, window_bounds = array<i64: 16, 1>}, {pipeline_mode = #tpu.pipeline_mode<synchronous>, transform_indices = @transform_17, window_bounds = array<i64: 16, 144>}, {pipeline_mode = #tpu.pipeline_mode<synchronous>, transform_indices = @transform_18, window_bounds = array<i64: 16, 1>}, {pipeline_mode = #tpu.pipeline_mode<synchronous>, transform_indices = @transform_19, window_bounds = array<i64: 3, 16>}, {pipeline_mode = #tpu.pipeline_mode<synchronous>, transform_indices = @transform_20, window_bounds = array<i64: 3, 1>}, {transform_indices = @transform_21, window_bounds = array<i64: 2, 3, 256>}]} {
    %c2_i32 = arith.constant 2 : i32
    %0 = arith.muli %arg0, %c2_i32 : i32
    %1 = arith.index_cast %0 : i32 to index
    %c0 = arith.constant 0 : index
    %2 = vector.load %arg1[%1, %c0] : memref<2x32xf32, #tpu.memory_space<vmem>>, vector<2x32xf32>
    %3 = tpu.transpose %2, [1, 0] : vector<2x32xf32> -> vector<32x2xf32>
    %c0_0 = arith.constant 0 : index
    %c0_1 = arith.constant 0 : index
    %4 = vector.load %arg2[%c0_0, %c0_1] : memref<2x32xf32, #tpu.memory_space<vmem>>, vector<2x32xf32>
    %cst = arith.constant dense<0.000000e+00> : vector<32x32xf32>
    %5 = tpu.matmul %3, %4, %cst {dimension_numbers = #tpu.dot_dimension_numbers<[1], [0], [0], [1], [0, 0, 1, 1], [], []>} : vector<32x2xf32>, vector<2x32xf32>, vector<32x32xf32> -> vector<32x32xf32>
    %c0_2 = arith.constant 0 : index
    %c0_3 = arith.constant 0 : index
    %c0_4 = arith.constant 0 : index
    %6 = vector.load %arg3[%c0_2, %c0_3, %c0_4] : memref<9x1x32xf32, #tpu.memory_space<vmem>>, vector<1x1x32xf32>
    %7 = vector.shape_cast %6 : vector<1x1x32xf32> to vector<1x32xf32>
    %c1 = arith.constant 1 : index
    %c0_5 = arith.constant 0 : index
    %c0_6 = arith.constant 0 : index
    %8 = vector.load %arg3[%c1, %c0_5, %c0_6] : memref<9x1x32xf32, #tpu.memory_space<vmem>>, vector<1x1x32xf32>
    %9 = vector.shape_cast %8 : vector<1x1x32xf32> to vector<1x32xf32>
    %c2 = arith.constant 2 : index
    %c0_7 = arith.constant 0 : index
    %c0_8 = arith.constant 0 : index
    %10 = vector.load %arg3[%c2, %c0_7, %c0_8] : memref<9x1x32xf32, #tpu.memory_space<vmem>>, vector<1x1x32xf32>
    %11 = vector.shape_cast %10 : vector<1x1x32xf32> to vector<1x32xf32>
    %c3 = arith.constant 3 : index
    %c0_9 = arith.constant 0 : index
    %c0_10 = arith.constant 0 : index
    %12 = vector.load %arg3[%c3, %c0_9, %c0_10] : memref<9x1x32xf32, #tpu.memory_space<vmem>>, vector<1x1x32xf32>
    %13 = vector.shape_cast %12 : vector<1x1x32xf32> to vector<1x32xf32>
    %c4 = arith.constant 4 : index
    %c0_11 = arith.constant 0 : index
    %c0_12 = arith.constant 0 : index
    %14 = vector.load %arg3[%c4, %c0_11, %c0_12] : memref<9x1x32xf32, #tpu.memory_space<vmem>>, vector<1x1x32xf32>
    %15 = vector.shape_cast %14 : vector<1x1x32xf32> to vector<1x32xf32>
    %c5 = arith.constant 5 : index
    %c0_13 = arith.constant 0 : index
    %c0_14 = arith.constant 0 : index
    %16 = vector.load %arg3[%c5, %c0_13, %c0_14] : memref<9x1x32xf32, #tpu.memory_space<vmem>>, vector<1x1x32xf32>
    %17 = vector.shape_cast %16 : vector<1x1x32xf32> to vector<1x32xf32>
    %c6 = arith.constant 6 : index
    %c0_15 = arith.constant 0 : index
    %c0_16 = arith.constant 0 : index
    %18 = vector.load %arg3[%c6, %c0_15, %c0_16] : memref<9x1x32xf32, #tpu.memory_space<vmem>>, vector<1x1x32xf32>
    %19 = vector.shape_cast %18 : vector<1x1x32xf32> to vector<1x32xf32>
    %c7 = arith.constant 7 : index
    %c0_17 = arith.constant 0 : index
    %c0_18 = arith.constant 0 : index
    %20 = vector.load %arg3[%c7, %c0_17, %c0_18] : memref<9x1x32xf32, #tpu.memory_space<vmem>>, vector<1x1x32xf32>
    %21 = vector.shape_cast %20 : vector<1x1x32xf32> to vector<1x32xf32>
    %c8 = arith.constant 8 : index
    %c0_19 = arith.constant 0 : index
    %c0_20 = arith.constant 0 : index
    %22 = vector.load %arg3[%c8, %c0_19, %c0_20] : memref<9x1x32xf32, #tpu.memory_space<vmem>>, vector<1x1x32xf32>
    %23 = vector.shape_cast %22 : vector<1x1x32xf32> to vector<1x32xf32>
    %cst_21 = arith.constant 0.000000e+00 : f32
    %24 = vector.broadcast %cst_21 : f32 to vector<32x5xf32>
    %25 = vector.extract_strided_slice %5 {offsets = [0, 0], sizes = [32, 27], strides = [1, 1]} : vector<32x32xf32> to vector<32x27xf32>
    %26 = tpu.concatenate %24, %25 in 1 : vector<32x5xf32>, vector<32x27xf32> -> vector<32x32xf32>
    %27 = vector.broadcast %7 : vector<1x32xf32> to vector<32x32xf32>
    %28 = arith.mulf %26, %27 : vector<32x32xf32>
    %cst_22 = arith.constant 0.000000e+00 : f32
    %29 = vector.broadcast %cst_22 : f32 to vector<32x4xf32>
    %30 = vector.extract_strided_slice %5 {offsets = [0, 0], sizes = [32, 28], strides = [1, 1]} : vector<32x32xf32> to vector<32x28xf32>
    %31 = tpu.concatenate %29, %30 in 1 : vector<32x4xf32>, vector<32x28xf32> -> vector<32x32xf32>
    %32 = vector.broadcast %9 : vector<1x32xf32> to vector<32x32xf32>
    %33 = arith.mulf %31, %32 : vector<32x32xf32>
    %cst_23 = arith.constant 0.000000e+00 : f32
    %34 = vector.broadcast %cst_23 : f32 to vector<32x3xf32>
    %35 = vector.extract_strided_slice %5 {offsets = [0, 0], sizes = [32, 29], strides = [1, 1]} : vector<32x32xf32> to vector<32x29xf32>
    %36 = tpu.concatenate %34, %35 in 1 : vector<32x3xf32>, vector<32x29xf32> -> vector<32x32xf32>
    %37 = vector.broadcast %11 : vector<1x32xf32> to vector<32x32xf32>
    %38 = arith.mulf %36, %37 : vector<32x32xf32>
    %cst_24 = arith.constant 0.000000e+00 : f32
    %39 = vector.broadcast %cst_24 : f32 to vector<32x1xf32>
    %40 = vector.extract_strided_slice %5 {offsets = [0, 0], sizes = [32, 31], strides = [1, 1]} : vector<32x32xf32> to vector<32x31xf32>
    %41 = tpu.concatenate %39, %40 in 1 : vector<32x1xf32>, vector<32x31xf32> -> vector<32x32xf32>
    %42 = vector.broadcast %13 : vector<1x32xf32> to vector<32x32xf32>
    %43 = arith.mulf %41, %42 : vector<32x32xf32>
    %44 = vector.broadcast %15 : vector<1x32xf32> to vector<32x32xf32>
    %45 = arith.mulf %5, %44 : vector<32x32xf32>
    %cst_25 = arith.constant 0.000000e+00 : f32
    %46 = vector.broadcast %cst_25 : f32 to vector<32x1xf32>
    %47 = vector.extract_strided_slice %5 {offsets = [0, 1], sizes = [32, 31], strides = [1, 1]} : vector<32x32xf32> to vector<32x31xf32>
    %48 = tpu.concatenate %47, %46 in 1 : vector<32x31xf32>, vector<32x1xf32> -> vector<32x32xf32>
    %49 = vector.broadcast %17 : vector<1x32xf32> to vector<32x32xf32>
    %50 = arith.mulf %48, %49 : vector<32x32xf32>
    %cst_26 = arith.constant 0.000000e+00 : f32
    %51 = vector.broadcast %cst_26 : f32 to vector<32x3xf32>
    %52 = vector.extract_strided_slice %5 {offsets = [0, 3], sizes = [32, 29], strides = [1, 1]} : vector<32x32xf32> to vector<32x29xf32>
    %53 = tpu.concatenate %52, %51 in 1 : vector<32x29xf32>, vector<32x3xf32> -> vector<32x32xf32>
    %54 = vector.broadcast %19 : vector<1x32xf32> to vector<32x32xf32>
    %55 = arith.mulf %53, %54 : vector<32x32xf32>
    %cst_27 = arith.constant 0.000000e+00 : f32
    %56 = vector.broadcast %cst_27 : f32 to vector<32x4xf32>
    %57 = vector.extract_strided_slice %5 {offsets = [0, 4], sizes = [32, 28], strides = [1, 1]} : vector<32x32xf32> to vector<32x28xf32>
    %58 = tpu.concatenate %57, %56 in 1 : vector<32x28xf32>, vector<32x4xf32> -> vector<32x32xf32>
    %59 = vector.broadcast %21 : vector<1x32xf32> to vector<32x32xf32>
    %60 = arith.mulf %58, %59 : vector<32x32xf32>
    %cst_28 = arith.constant 0.000000e+00 : f32
    %61 = vector.broadcast %cst_28 : f32 to vector<32x5xf32>
    %62 = vector.extract_strided_slice %5 {offsets = [0, 5], sizes = [32, 27], strides = [1, 1]} : vector<32x32xf32> to vector<32x27xf32>
    %63 = tpu.concatenate %62, %61 in 1 : vector<32x27xf32>, vector<32x5xf32> -> vector<32x32xf32>
    %64 = vector.broadcast %23 : vector<1x32xf32> to vector<32x32xf32>
    %65 = arith.mulf %63, %64 : vector<32x32xf32>
    %66 = tpu.concatenate %28, %33, %38, %43, %45, %50, %55, %60, %65 in 0 : vector<32x32xf32>, vector<32x32xf32>, vector<32x32xf32>, vector<32x32xf32>, vector<32x32xf32>, vector<32x32xf32>, vector<32x32xf32>, vector<32x32xf32>, vector<32x32xf32> -> vector<288x32xf32>
    %c0_29 = arith.constant 0 : index
    %c0_30 = arith.constant 0 : index
    %67 = vector.load %arg4[%c0_29, %c0_30] : memref<32x288xf32, #tpu.memory_space<vmem>>, vector<32x288xf32>
    %cst_31 = arith.constant dense<0.000000e+00> : vector<32x32xf32>
    %68 = tpu.matmul %67, %66, %cst_31 {dimension_numbers = #tpu.dot_dimension_numbers<[1], [0], [0], [1], [0, 0, 1, 1], [], []>} : vector<32x288xf32>, vector<288x32xf32>, vector<32x32xf32> -> vector<32x32xf32>
    %c0_32 = arith.constant 0 : index
    %c0_33 = arith.constant 0 : index
    %69 = vector.load %arg5[%c0_32, %c0_33] : memref<32x1xf32, #tpu.memory_space<vmem>>, vector<32x1xf32>
    %70 = vector.broadcast %69 : vector<32x1xf32> to vector<32x32xf32>
    %71 = arith.addf %68, %70 : vector<32x32xf32>
    %cst_34 = arith.constant 0.000000e+00 : f32
    %72 = vector.broadcast %cst_34 : f32 to vector<32x32xf32>
    %73 = arith.maximumf %71, %72 : vector<32x32xf32>
    %cst_35 = arith.constant 0.000000e+00 : f32
    %74 = vector.broadcast %cst_35 : f32 to vector<32x5xf32>
    %75 = vector.extract_strided_slice %73 {offsets = [0, 0], sizes = [32, 27], strides = [1, 1]} : vector<32x32xf32> to vector<32x27xf32>
    %76 = tpu.concatenate %74, %75 in 1 : vector<32x5xf32>, vector<32x27xf32> -> vector<32x32xf32>
    %77 = vector.broadcast %7 : vector<1x32xf32> to vector<32x32xf32>
    %78 = arith.mulf %76, %77 : vector<32x32xf32>
    %cst_36 = arith.constant 0.000000e+00 : f32
    %79 = vector.broadcast %cst_36 : f32 to vector<32x4xf32>
    %80 = vector.extract_strided_slice %73 {offsets = [0, 0], sizes = [32, 28], strides = [1, 1]} : vector<32x32xf32> to vector<32x28xf32>
    %81 = tpu.concatenate %79, %80 in 1 : vector<32x4xf32>, vector<32x28xf32> -> vector<32x32xf32>
    %82 = vector.broadcast %9 : vector<1x32xf32> to vector<32x32xf32>
    %83 = arith.mulf %81, %82 : vector<32x32xf32>
    %cst_37 = arith.constant 0.000000e+00 : f32
    %84 = vector.broadcast %cst_37 : f32 to vector<32x3xf32>
    %85 = vector.extract_strided_slice %73 {offsets = [0, 0], sizes = [32, 29], strides = [1, 1]} : vector<32x32xf32> to vector<32x29xf32>
    %86 = tpu.concatenate %84, %85 in 1 : vector<32x3xf32>, vector<32x29xf32> -> vector<32x32xf32>
    %87 = vector.broadcast %11 : vector<1x32xf32> to vector<32x32xf32>
    %88 = arith.mulf %86, %87 : vector<32x32xf32>
    %cst_38 = arith.constant 0.000000e+00 : f32
    %89 = vector.broadcast %cst_38 : f32 to vector<32x1xf32>
    %90 = vector.extract_strided_slice %73 {offsets = [0, 0], sizes = [32, 31], strides = [1, 1]} : vector<32x32xf32> to vector<32x31xf32>
    %91 = tpu.concatenate %89, %90 in 1 : vector<32x1xf32>, vector<32x31xf32> -> vector<32x32xf32>
    %92 = vector.broadcast %13 : vector<1x32xf32> to vector<32x32xf32>
    %93 = arith.mulf %91, %92 : vector<32x32xf32>
    %94 = vector.broadcast %15 : vector<1x32xf32> to vector<32x32xf32>
    %95 = arith.mulf %73, %94 : vector<32x32xf32>
    %cst_39 = arith.constant 0.000000e+00 : f32
    %96 = vector.broadcast %cst_39 : f32 to vector<32x1xf32>
    %97 = vector.extract_strided_slice %73 {offsets = [0, 1], sizes = [32, 31], strides = [1, 1]} : vector<32x32xf32> to vector<32x31xf32>
    %98 = tpu.concatenate %97, %96 in 1 : vector<32x31xf32>, vector<32x1xf32> -> vector<32x32xf32>
    %99 = vector.broadcast %17 : vector<1x32xf32> to vector<32x32xf32>
    %100 = arith.mulf %98, %99 : vector<32x32xf32>
    %cst_40 = arith.constant 0.000000e+00 : f32
    %101 = vector.broadcast %cst_40 : f32 to vector<32x3xf32>
    %102 = vector.extract_strided_slice %73 {offsets = [0, 3], sizes = [32, 29], strides = [1, 1]} : vector<32x32xf32> to vector<32x29xf32>
    %103 = tpu.concatenate %102, %101 in 1 : vector<32x29xf32>, vector<32x3xf32> -> vector<32x32xf32>
    %104 = vector.broadcast %19 : vector<1x32xf32> to vector<32x32xf32>
    %105 = arith.mulf %103, %104 : vector<32x32xf32>
    %cst_41 = arith.constant 0.000000e+00 : f32
    %106 = vector.broadcast %cst_41 : f32 to vector<32x4xf32>
    %107 = vector.extract_strided_slice %73 {offsets = [0, 4], sizes = [32, 28], strides = [1, 1]} : vector<32x32xf32> to vector<32x28xf32>
    %108 = tpu.concatenate %107, %106 in 1 : vector<32x28xf32>, vector<32x4xf32> -> vector<32x32xf32>
    %109 = vector.broadcast %21 : vector<1x32xf32> to vector<32x32xf32>
    %110 = arith.mulf %108, %109 : vector<32x32xf32>
    %cst_42 = arith.constant 0.000000e+00 : f32
    %111 = vector.broadcast %cst_42 : f32 to vector<32x5xf32>
    %112 = vector.extract_strided_slice %73 {offsets = [0, 5], sizes = [32, 27], strides = [1, 1]} : vector<32x32xf32> to vector<32x27xf32>
    %113 = tpu.concatenate %112, %111 in 1 : vector<32x27xf32>, vector<32x5xf32> -> vector<32x32xf32>
    %114 = vector.broadcast %23 : vector<1x32xf32> to vector<32x32xf32>
    %115 = arith.mulf %113, %114 : vector<32x32xf32>
    %116 = tpu.concatenate %78, %83, %88, %93, %95, %100, %105, %110, %115 in 0 : vector<32x32xf32>, vector<32x32xf32>, vector<32x32xf32>, vector<32x32xf32>, vector<32x32xf32>, vector<32x32xf32>, vector<32x32xf32>, vector<32x32xf32>, vector<32x32xf32> -> vector<288x32xf32>
    %c0_43 = arith.constant 0 : index
    %c0_44 = arith.constant 0 : index
    %117 = vector.load %arg6[%c0_43, %c0_44] : memref<32x288xf32, #tpu.memory_space<vmem>>, vector<32x288xf32>
    %cst_45 = arith.constant dense<0.000000e+00> : vector<32x32xf32>
    %118 = tpu.matmul %117, %116, %cst_45 {dimension_numbers = #tpu.dot_dimension_numbers<[1], [0], [0], [1], [0, 0, 1, 1], [], []>} : vector<32x288xf32>, vector<288x32xf32>, vector<32x32xf32> -> vector<32x32xf32>
    %c0_46 = arith.constant 0 : index
    %c0_47 = arith.constant 0 : index
    %119 = vector.load %arg7[%c0_46, %c0_47] : memref<32x1xf32, #tpu.memory_space<vmem>>, vector<32x1xf32>
    %120 = vector.broadcast %119 : vector<32x1xf32> to vector<32x32xf32>
    %121 = arith.addf %118, %120 : vector<32x32xf32>
    %cst_48 = arith.constant 0.000000e+00 : f32
    %122 = vector.broadcast %cst_48 : f32 to vector<32x32xf32>
    %123 = arith.maximumf %121, %122 : vector<32x32xf32>
    %c0_49 = arith.constant 0 : index
    %c0_50 = arith.constant 0 : index
    %124 = vector.load %arg8[%c0_49, %c0_50] : memref<32x128xbf16, #tpu.memory_space<vmem>>, vector<32x128xbf16>
    %125 = arith.extf %124 : vector<32x128xbf16> to vector<32x128xf32>
    %cst_51 = arith.constant dense<0.000000e+00> : vector<32x128xf32>
    %126 = tpu.matmul %123, %125, %cst_51 {dimension_numbers = #tpu.dot_dimension_numbers<[1], [0], [0], [1], [0, 0, 1, 1], [], []>} : vector<32x32xf32>, vector<32x128xf32>, vector<32x128xf32> -> vector<32x128xf32>
    %c0_52 = arith.constant 0 : index
    %c0_53 = arith.constant 0 : index
    %c0_54 = arith.constant 0 : index
    %127 = vector.load %arg9[%c0_52, %c0_53, %c0_54] : memref<9x1x128xf32, #tpu.memory_space<vmem>>, vector<1x1x128xf32>
    %128 = vector.shape_cast %127 : vector<1x1x128xf32> to vector<1x128xf32>
    %c1_55 = arith.constant 1 : index
    %c0_56 = arith.constant 0 : index
    %c0_57 = arith.constant 0 : index
    %129 = vector.load %arg9[%c1_55, %c0_56, %c0_57] : memref<9x1x128xf32, #tpu.memory_space<vmem>>, vector<1x1x128xf32>
    %130 = vector.shape_cast %129 : vector<1x1x128xf32> to vector<1x128xf32>
    %c2_58 = arith.constant 2 : index
    %c0_59 = arith.constant 0 : index
    %c0_60 = arith.constant 0 : index
    %131 = vector.load %arg9[%c2_58, %c0_59, %c0_60] : memref<9x1x128xf32, #tpu.memory_space<vmem>>, vector<1x1x128xf32>
    %132 = vector.shape_cast %131 : vector<1x1x128xf32> to vector<1x128xf32>
    %c3_61 = arith.constant 3 : index
    %c0_62 = arith.constant 0 : index
    %c0_63 = arith.constant 0 : index
    %133 = vector.load %arg9[%c3_61, %c0_62, %c0_63] : memref<9x1x128xf32, #tpu.memory_space<vmem>>, vector<1x1x128xf32>
    %134 = vector.shape_cast %133 : vector<1x1x128xf32> to vector<1x128xf32>
    %c4_64 = arith.constant 4 : index
    %c0_65 = arith.constant 0 : index
    %c0_66 = arith.constant 0 : index
    %135 = vector.load %arg9[%c4_64, %c0_65, %c0_66] : memref<9x1x128xf32, #tpu.memory_space<vmem>>, vector<1x1x128xf32>
    %136 = vector.shape_cast %135 : vector<1x1x128xf32> to vector<1x128xf32>
    %c5_67 = arith.constant 5 : index
    %c0_68 = arith.constant 0 : index
    %c0_69 = arith.constant 0 : index
    %137 = vector.load %arg9[%c5_67, %c0_68, %c0_69] : memref<9x1x128xf32, #tpu.memory_space<vmem>>, vector<1x1x128xf32>
    %138 = vector.shape_cast %137 : vector<1x1x128xf32> to vector<1x128xf32>
    %c6_70 = arith.constant 6 : index
    %c0_71 = arith.constant 0 : index
    %c0_72 = arith.constant 0 : index
    %139 = vector.load %arg9[%c6_70, %c0_71, %c0_72] : memref<9x1x128xf32, #tpu.memory_space<vmem>>, vector<1x1x128xf32>
    %140 = vector.shape_cast %139 : vector<1x1x128xf32> to vector<1x128xf32>
    %c7_73 = arith.constant 7 : index
    %c0_74 = arith.constant 0 : index
    %c0_75 = arith.constant 0 : index
    %141 = vector.load %arg9[%c7_73, %c0_74, %c0_75] : memref<9x1x128xf32, #tpu.memory_space<vmem>>, vector<1x1x128xf32>
    %142 = vector.shape_cast %141 : vector<1x1x128xf32> to vector<1x128xf32>
    %c8_76 = arith.constant 8 : index
    %c0_77 = arith.constant 0 : index
    %c0_78 = arith.constant 0 : index
    %143 = vector.load %arg9[%c8_76, %c0_77, %c0_78] : memref<9x1x128xf32, #tpu.memory_space<vmem>>, vector<1x1x128xf32>
    %144 = vector.shape_cast %143 : vector<1x1x128xf32> to vector<1x128xf32>
    %cst_79 = arith.constant 0.000000e+00 : f32
    %145 = vector.broadcast %cst_79 : f32 to vector<32x9xf32>
    %146 = vector.extract_strided_slice %126 {offsets = [0, 0], sizes = [32, 119], strides = [1, 1]} : vector<32x128xf32> to vector<32x119xf32>
    %147 = tpu.concatenate %145, %146 in 1 : vector<32x9xf32>, vector<32x119xf32> -> vector<32x128xf32>
    %148 = vector.broadcast %128 : vector<1x128xf32> to vector<32x128xf32>
    %149 = arith.mulf %147, %148 : vector<32x128xf32>
    %cst_80 = arith.constant 0.000000e+00 : f32
    %150 = vector.broadcast %cst_80 : f32 to vector<32x8xf32>
    %151 = vector.extract_strided_slice %126 {offsets = [0, 0], sizes = [32, 120], strides = [1, 1]} : vector<32x128xf32> to vector<32x120xf32>
    %152 = tpu.concatenate %150, %151 in 1 : vector<32x8xf32>, vector<32x120xf32> -> vector<32x128xf32>
    %153 = vector.broadcast %130 : vector<1x128xf32> to vector<32x128xf32>
    %154 = arith.mulf %152, %153 : vector<32x128xf32>
    %cst_81 = arith.constant 0.000000e+00 : f32
    %155 = vector.broadcast %cst_81 : f32 to vector<32x7xf32>
    %156 = vector.extract_strided_slice %126 {offsets = [0, 0], sizes = [32, 121], strides = [1, 1]} : vector<32x128xf32> to vector<32x121xf32>
    %157 = tpu.concatenate %155, %156 in 1 : vector<32x7xf32>, vector<32x121xf32> -> vector<32x128xf32>
    %158 = vector.broadcast %132 : vector<1x128xf32> to vector<32x128xf32>
    %159 = arith.mulf %157, %158 : vector<32x128xf32>
    %cst_82 = arith.constant 0.000000e+00 : f32
    %160 = vector.broadcast %cst_82 : f32 to vector<32x1xf32>
    %161 = vector.extract_strided_slice %126 {offsets = [0, 0], sizes = [32, 127], strides = [1, 1]} : vector<32x128xf32> to vector<32x127xf32>
    %162 = tpu.concatenate %160, %161 in 1 : vector<32x1xf32>, vector<32x127xf32> -> vector<32x128xf32>
    %163 = vector.broadcast %134 : vector<1x128xf32> to vector<32x128xf32>
    %164 = arith.mulf %162, %163 : vector<32x128xf32>
    %165 = vector.broadcast %136 : vector<1x128xf32> to vector<32x128xf32>
    %166 = arith.mulf %126, %165 : vector<32x128xf32>
    %cst_83 = arith.constant 0.000000e+00 : f32
    %167 = vector.broadcast %cst_83 : f32 to vector<32x1xf32>
    %168 = vector.extract_strided_slice %126 {offsets = [0, 1], sizes = [32, 127], strides = [1, 1]} : vector<32x128xf32> to vector<32x127xf32>
    %169 = tpu.concatenate %168, %167 in 1 : vector<32x127xf32>, vector<32x1xf32> -> vector<32x128xf32>
    %170 = vector.broadcast %138 : vector<1x128xf32> to vector<32x128xf32>
    %171 = arith.mulf %169, %170 : vector<32x128xf32>
    %cst_84 = arith.constant 0.000000e+00 : f32
    %172 = vector.broadcast %cst_84 : f32 to vector<32x7xf32>
    %173 = vector.extract_strided_slice %126 {offsets = [0, 7], sizes = [32, 121], strides = [1, 1]} : vector<32x128xf32> to vector<32x121xf32>
    %174 = tpu.concatenate %173, %172 in 1 : vector<32x121xf32>, vector<32x7xf32> -> vector<32x128xf32>
    %175 = vector.broadcast %140 : vector<1x128xf32> to vector<32x128xf32>
    %176 = arith.mulf %174, %175 : vector<32x128xf32>
    %cst_85 = arith.constant 0.000000e+00 : f32
    %177 = vector.broadcast %cst_85 : f32 to vector<32x8xf32>
    %178 = vector.extract_strided_slice %126 {offsets = [0, 8], sizes = [32, 120], strides = [1, 1]} : vector<32x128xf32> to vector<32x120xf32>
    %179 = tpu.concatenate %178, %177 in 1 : vector<32x120xf32>, vector<32x8xf32> -> vector<32x128xf32>
    %180 = vector.broadcast %142 : vector<1x128xf32> to vector<32x128xf32>
    %181 = arith.mulf %179, %180 : vector<32x128xf32>
    %cst_86 = arith.constant 0.000000e+00 : f32
    %182 = vector.broadcast %cst_86 : f32 to vector<32x9xf32>
    %183 = vector.extract_strided_slice %126 {offsets = [0, 9], sizes = [32, 119], strides = [1, 1]} : vector<32x128xf32> to vector<32x119xf32>
    %184 = tpu.concatenate %183, %182 in 1 : vector<32x119xf32>, vector<32x9xf32> -> vector<32x128xf32>
    %185 = vector.broadcast %144 : vector<1x128xf32> to vector<32x128xf32>
    %186 = arith.mulf %184, %185 : vector<32x128xf32>
    %187 = tpu.concatenate %149, %154, %159, %164, %166, %171, %176, %181, %186 in 0 : vector<32x128xf32>, vector<32x128xf32>, vector<32x128xf32>, vector<32x128xf32>, vector<32x128xf32>, vector<32x128xf32>, vector<32x128xf32>, vector<32x128xf32>, vector<32x128xf32> -> vector<288x128xf32>
    %c0_87 = arith.constant 0 : index
    %c0_88 = arith.constant 0 : index
    %188 = vector.load %arg10[%c0_87, %c0_88] : memref<16x288xf32, #tpu.memory_space<vmem>>, vector<16x288xf32>
    %cst_89 = arith.constant dense<0.000000e+00> : vector<16x128xf32>
    %189 = tpu.matmul %188, %187, %cst_89 {dimension_numbers = #tpu.dot_dimension_numbers<[1], [0], [0], [1], [0, 0, 1, 1], [], []>} : vector<16x288xf32>, vector<288x128xf32>, vector<16x128xf32> -> vector<16x128xf32>
    %c0_90 = arith.constant 0 : index
    %c0_91 = arith.constant 0 : index
    %190 = vector.load %arg11[%c0_90, %c0_91] : memref<16x1xf32, #tpu.memory_space<vmem>>, vector<16x1xf32>
    %191 = vector.broadcast %190 : vector<16x1xf32> to vector<16x128xf32>
    %192 = arith.addf %189, %191 : vector<16x128xf32>
    %cst_92 = arith.constant 0.000000e+00 : f32
    %193 = vector.broadcast %cst_92 : f32 to vector<16x128xf32>
    %194 = arith.maximumf %192, %193 : vector<16x128xf32>
    %cst_93 = arith.constant 0.000000e+00 : f32
    %195 = vector.broadcast %cst_93 : f32 to vector<16x9xf32>
    %196 = vector.extract_strided_slice %194 {offsets = [0, 0], sizes = [16, 119], strides = [1, 1]} : vector<16x128xf32> to vector<16x119xf32>
    %197 = tpu.concatenate %195, %196 in 1 : vector<16x9xf32>, vector<16x119xf32> -> vector<16x128xf32>
    %198 = vector.broadcast %128 : vector<1x128xf32> to vector<16x128xf32>
    %199 = arith.mulf %197, %198 : vector<16x128xf32>
    %cst_94 = arith.constant 0.000000e+00 : f32
    %200 = vector.broadcast %cst_94 : f32 to vector<16x8xf32>
    %201 = vector.extract_strided_slice %194 {offsets = [0, 0], sizes = [16, 120], strides = [1, 1]} : vector<16x128xf32> to vector<16x120xf32>
    %202 = tpu.concatenate %200, %201 in 1 : vector<16x8xf32>, vector<16x120xf32> -> vector<16x128xf32>
    %203 = vector.broadcast %130 : vector<1x128xf32> to vector<16x128xf32>
    %204 = arith.mulf %202, %203 : vector<16x128xf32>
    %cst_95 = arith.constant 0.000000e+00 : f32
    %205 = vector.broadcast %cst_95 : f32 to vector<16x7xf32>
    %206 = vector.extract_strided_slice %194 {offsets = [0, 0], sizes = [16, 121], strides = [1, 1]} : vector<16x128xf32> to vector<16x121xf32>
    %207 = tpu.concatenate %205, %206 in 1 : vector<16x7xf32>, vector<16x121xf32> -> vector<16x128xf32>
    %208 = vector.broadcast %132 : vector<1x128xf32> to vector<16x128xf32>
    %209 = arith.mulf %207, %208 : vector<16x128xf32>
    %cst_96 = arith.constant 0.000000e+00 : f32
    %210 = vector.broadcast %cst_96 : f32 to vector<16x1xf32>
    %211 = vector.extract_strided_slice %194 {offsets = [0, 0], sizes = [16, 127], strides = [1, 1]} : vector<16x128xf32> to vector<16x127xf32>
    %212 = tpu.concatenate %210, %211 in 1 : vector<16x1xf32>, vector<16x127xf32> -> vector<16x128xf32>
    %213 = vector.broadcast %134 : vector<1x128xf32> to vector<16x128xf32>
    %214 = arith.mulf %212, %213 : vector<16x128xf32>
    %215 = vector.broadcast %136 : vector<1x128xf32> to vector<16x128xf32>
    %216 = arith.mulf %194, %215 : vector<16x128xf32>
    %cst_97 = arith.constant 0.000000e+00 : f32
    %217 = vector.broadcast %cst_97 : f32 to vector<16x1xf32>
    %218 = vector.extract_strided_slice %194 {offsets = [0, 1], sizes = [16, 127], strides = [1, 1]} : vector<16x128xf32> to vector<16x127xf32>
    %219 = tpu.concatenate %218, %217 in 1 : vector<16x127xf32>, vector<16x1xf32> -> vector<16x128xf32>
    %220 = vector.broadcast %138 : vector<1x128xf32> to vector<16x128xf32>
    %221 = arith.mulf %219, %220 : vector<16x128xf32>
    %cst_98 = arith.constant 0.000000e+00 : f32
    %222 = vector.broadcast %cst_98 : f32 to vector<16x7xf32>
    %223 = vector.extract_strided_slice %194 {offsets = [0, 7], sizes = [16, 121], strides = [1, 1]} : vector<16x128xf32> to vector<16x121xf32>
    %224 = tpu.concatenate %223, %222 in 1 : vector<16x121xf32>, vector<16x7xf32> -> vector<16x128xf32>
    %225 = vector.broadcast %140 : vector<1x128xf32> to vector<16x128xf32>
    %226 = arith.mulf %224, %225 : vector<16x128xf32>
    %cst_99 = arith.constant 0.000000e+00 : f32
    %227 = vector.broadcast %cst_99 : f32 to vector<16x8xf32>
    %228 = vector.extract_strided_slice %194 {offsets = [0, 8], sizes = [16, 120], strides = [1, 1]} : vector<16x128xf32> to vector<16x120xf32>
    %229 = tpu.concatenate %228, %227 in 1 : vector<16x120xf32>, vector<16x8xf32> -> vector<16x128xf32>
    %230 = vector.broadcast %142 : vector<1x128xf32> to vector<16x128xf32>
    %231 = arith.mulf %229, %230 : vector<16x128xf32>
    %cst_100 = arith.constant 0.000000e+00 : f32
    %232 = vector.broadcast %cst_100 : f32 to vector<16x9xf32>
    %233 = vector.extract_strided_slice %194 {offsets = [0, 9], sizes = [16, 119], strides = [1, 1]} : vector<16x128xf32> to vector<16x119xf32>
    %234 = tpu.concatenate %233, %232 in 1 : vector<16x119xf32>, vector<16x9xf32> -> vector<16x128xf32>
    %235 = vector.broadcast %144 : vector<1x128xf32> to vector<16x128xf32>
    %236 = arith.mulf %234, %235 : vector<16x128xf32>
    %237 = tpu.concatenate %199, %204, %209, %214, %216, %221, %226, %231, %236 in 0 : vector<16x128xf32>, vector<16x128xf32>, vector<16x128xf32>, vector<16x128xf32>, vector<16x128xf32>, vector<16x128xf32>, vector<16x128xf32>, vector<16x128xf32>, vector<16x128xf32> -> vector<144x128xf32>
    %c0_101 = arith.constant 0 : index
    %c0_102 = arith.constant 0 : index
    %238 = vector.load %arg12[%c0_101, %c0_102] : memref<16x144xf32, #tpu.memory_space<vmem>>, vector<16x144xf32>
    %cst_103 = arith.constant dense<0.000000e+00> : vector<16x128xf32>
    %239 = tpu.matmul %238, %237, %cst_103 {dimension_numbers = #tpu.dot_dimension_numbers<[1], [0], [0], [1], [0, 0, 1, 1], [], []>} : vector<16x144xf32>, vector<144x128xf32>, vector<16x128xf32> -> vector<16x128xf32>
    %c0_104 = arith.constant 0 : index
    %c0_105 = arith.constant 0 : index
    %240 = vector.load %arg13[%c0_104, %c0_105] : memref<16x1xf32, #tpu.memory_space<vmem>>, vector<16x1xf32>
    %241 = vector.broadcast %240 : vector<16x1xf32> to vector<16x128xf32>
    %242 = arith.addf %239, %241 : vector<16x128xf32>
    %cst_106 = arith.constant 0.000000e+00 : f32
    %243 = vector.broadcast %cst_106 : f32 to vector<16x128xf32>
    %244 = arith.maximumf %242, %243 : vector<16x128xf32>
    %c0_107 = arith.constant 0 : index
    %c0_108 = arith.constant 0 : index
    %245 = vector.load %arg14[%c0_107, %c0_108] : memref<128x512xbf16, #tpu.memory_space<vmem>>, vector<128x512xbf16>
    %246 = arith.extf %245 : vector<128x512xbf16> to vector<128x512xf32>
    %cst_109 = arith.constant dense<0.000000e+00> : vector<16x512xf32>
    %247 = tpu.matmul %244, %246, %cst_109 {dimension_numbers = #tpu.dot_dimension_numbers<[1], [0], [0], [1], [0, 0, 1, 1], [], []>} : vector<16x128xf32>, vector<128x512xf32>, vector<16x512xf32> -> vector<16x512xf32>
    %c0_110 = arith.constant 0 : index
    %c0_111 = arith.constant 0 : index
    %c0_112 = arith.constant 0 : index
    %248 = vector.load %arg15[%c0_110, %c0_111, %c0_112] : memref<9x1x512xf32, #tpu.memory_space<vmem>>, vector<1x1x512xf32>
    %249 = vector.shape_cast %248 : vector<1x1x512xf32> to vector<1x512xf32>
    %c1_113 = arith.constant 1 : index
    %c0_114 = arith.constant 0 : index
    %c0_115 = arith.constant 0 : index
    %250 = vector.load %arg15[%c1_113, %c0_114, %c0_115] : memref<9x1x512xf32, #tpu.memory_space<vmem>>, vector<1x1x512xf32>
    %251 = vector.shape_cast %250 : vector<1x1x512xf32> to vector<1x512xf32>
    %c2_116 = arith.constant 2 : index
    %c0_117 = arith.constant 0 : index
    %c0_118 = arith.constant 0 : index
    %252 = vector.load %arg15[%c2_116, %c0_117, %c0_118] : memref<9x1x512xf32, #tpu.memory_space<vmem>>, vector<1x1x512xf32>
    %253 = vector.shape_cast %252 : vector<1x1x512xf32> to vector<1x512xf32>
    %c3_119 = arith.constant 3 : index
    %c0_120 = arith.constant 0 : index
    %c0_121 = arith.constant 0 : index
    %254 = vector.load %arg15[%c3_119, %c0_120, %c0_121] : memref<9x1x512xf32, #tpu.memory_space<vmem>>, vector<1x1x512xf32>
    %255 = vector.shape_cast %254 : vector<1x1x512xf32> to vector<1x512xf32>
    %c4_122 = arith.constant 4 : index
    %c0_123 = arith.constant 0 : index
    %c0_124 = arith.constant 0 : index
    %256 = vector.load %arg15[%c4_122, %c0_123, %c0_124] : memref<9x1x512xf32, #tpu.memory_space<vmem>>, vector<1x1x512xf32>
    %257 = vector.shape_cast %256 : vector<1x1x512xf32> to vector<1x512xf32>
    %c5_125 = arith.constant 5 : index
    %c0_126 = arith.constant 0 : index
    %c0_127 = arith.constant 0 : index
    %258 = vector.load %arg15[%c5_125, %c0_126, %c0_127] : memref<9x1x512xf32, #tpu.memory_space<vmem>>, vector<1x1x512xf32>
    %259 = vector.shape_cast %258 : vector<1x1x512xf32> to vector<1x512xf32>
    %c6_128 = arith.constant 6 : index
    %c0_129 = arith.constant 0 : index
    %c0_130 = arith.constant 0 : index
    %260 = vector.load %arg15[%c6_128, %c0_129, %c0_130] : memref<9x1x512xf32, #tpu.memory_space<vmem>>, vector<1x1x512xf32>
    %261 = vector.shape_cast %260 : vector<1x1x512xf32> to vector<1x512xf32>
    %c7_131 = arith.constant 7 : index
    %c0_132 = arith.constant 0 : index
    %c0_133 = arith.constant 0 : index
    %262 = vector.load %arg15[%c7_131, %c0_132, %c0_133] : memref<9x1x512xf32, #tpu.memory_space<vmem>>, vector<1x1x512xf32>
    %263 = vector.shape_cast %262 : vector<1x1x512xf32> to vector<1x512xf32>
    %c8_134 = arith.constant 8 : index
    %c0_135 = arith.constant 0 : index
    %c0_136 = arith.constant 0 : index
    %264 = vector.load %arg15[%c8_134, %c0_135, %c0_136] : memref<9x1x512xf32, #tpu.memory_space<vmem>>, vector<1x1x512xf32>
    %265 = vector.shape_cast %264 : vector<1x1x512xf32> to vector<1x512xf32>
    %cst_137 = arith.constant 0.000000e+00 : f32
    %266 = vector.broadcast %cst_137 : f32 to vector<16x17xf32>
    %267 = vector.extract_strided_slice %247 {offsets = [0, 0], sizes = [16, 495], strides = [1, 1]} : vector<16x512xf32> to vector<16x495xf32>
    %268 = tpu.concatenate %266, %267 in 1 : vector<16x17xf32>, vector<16x495xf32> -> vector<16x512xf32>
    %269 = vector.broadcast %249 : vector<1x512xf32> to vector<16x512xf32>
    %270 = arith.mulf %268, %269 : vector<16x512xf32>
    %cst_138 = arith.constant 0.000000e+00 : f32
    %271 = vector.broadcast %cst_138 : f32 to vector<16x16xf32>
    %272 = vector.extract_strided_slice %247 {offsets = [0, 0], sizes = [16, 496], strides = [1, 1]} : vector<16x512xf32> to vector<16x496xf32>
    %273 = tpu.concatenate %271, %272 in 1 : vector<16x16xf32>, vector<16x496xf32> -> vector<16x512xf32>
    %274 = vector.broadcast %251 : vector<1x512xf32> to vector<16x512xf32>
    %275 = arith.mulf %273, %274 : vector<16x512xf32>
    %cst_139 = arith.constant 0.000000e+00 : f32
    %276 = vector.broadcast %cst_139 : f32 to vector<16x15xf32>
    %277 = vector.extract_strided_slice %247 {offsets = [0, 0], sizes = [16, 497], strides = [1, 1]} : vector<16x512xf32> to vector<16x497xf32>
    %278 = tpu.concatenate %276, %277 in 1 : vector<16x15xf32>, vector<16x497xf32> -> vector<16x512xf32>
    %279 = vector.broadcast %253 : vector<1x512xf32> to vector<16x512xf32>
    %280 = arith.mulf %278, %279 : vector<16x512xf32>
    %cst_140 = arith.constant 0.000000e+00 : f32
    %281 = vector.broadcast %cst_140 : f32 to vector<16x1xf32>
    %282 = vector.extract_strided_slice %247 {offsets = [0, 0], sizes = [16, 511], strides = [1, 1]} : vector<16x512xf32> to vector<16x511xf32>
    %283 = tpu.concatenate %281, %282 in 1 : vector<16x1xf32>, vector<16x511xf32> -> vector<16x512xf32>
    %284 = vector.broadcast %255 : vector<1x512xf32> to vector<16x512xf32>
    %285 = arith.mulf %283, %284 : vector<16x512xf32>
    %286 = vector.broadcast %257 : vector<1x512xf32> to vector<16x512xf32>
    %287 = arith.mulf %247, %286 : vector<16x512xf32>
    %cst_141 = arith.constant 0.000000e+00 : f32
    %288 = vector.broadcast %cst_141 : f32 to vector<16x1xf32>
    %289 = vector.extract_strided_slice %247 {offsets = [0, 1], sizes = [16, 511], strides = [1, 1]} : vector<16x512xf32> to vector<16x511xf32>
    %290 = tpu.concatenate %289, %288 in 1 : vector<16x511xf32>, vector<16x1xf32> -> vector<16x512xf32>
    %291 = vector.broadcast %259 : vector<1x512xf32> to vector<16x512xf32>
    %292 = arith.mulf %290, %291 : vector<16x512xf32>
    %cst_142 = arith.constant 0.000000e+00 : f32
    %293 = vector.broadcast %cst_142 : f32 to vector<16x15xf32>
    %294 = vector.extract_strided_slice %247 {offsets = [0, 15], sizes = [16, 497], strides = [1, 1]} : vector<16x512xf32> to vector<16x497xf32>
    %295 = tpu.concatenate %294, %293 in 1 : vector<16x497xf32>, vector<16x15xf32> -> vector<16x512xf32>
    %296 = vector.broadcast %261 : vector<1x512xf32> to vector<16x512xf32>
    %297 = arith.mulf %295, %296 : vector<16x512xf32>
    %cst_143 = arith.constant 0.000000e+00 : f32
    %298 = vector.broadcast %cst_143 : f32 to vector<16x16xf32>
    %299 = vector.extract_strided_slice %247 {offsets = [0, 16], sizes = [16, 496], strides = [1, 1]} : vector<16x512xf32> to vector<16x496xf32>
    %300 = tpu.concatenate %299, %298 in 1 : vector<16x496xf32>, vector<16x16xf32> -> vector<16x512xf32>
    %301 = vector.broadcast %263 : vector<1x512xf32> to vector<16x512xf32>
    %302 = arith.mulf %300, %301 : vector<16x512xf32>
    %cst_144 = arith.constant 0.000000e+00 : f32
    %303 = vector.broadcast %cst_144 : f32 to vector<16x17xf32>
    %304 = vector.extract_strided_slice %247 {offsets = [0, 17], sizes = [16, 495], strides = [1, 1]} : vector<16x512xf32> to vector<16x495xf32>
    %305 = tpu.concatenate %304, %303 in 1 : vector<16x495xf32>, vector<16x17xf32> -> vector<16x512xf32>
    %306 = vector.broadcast %265 : vector<1x512xf32> to vector<16x512xf32>
    %307 = arith.mulf %305, %306 : vector<16x512xf32>
    %308 = tpu.concatenate %270, %275, %280, %285, %287, %292, %297, %302, %307 in 0 : vector<16x512xf32>, vector<16x512xf32>, vector<16x512xf32>, vector<16x512xf32>, vector<16x512xf32>, vector<16x512xf32>, vector<16x512xf32>, vector<16x512xf32>, vector<16x512xf32> -> vector<144x512xf32>
    %c0_145 = arith.constant 0 : index
    %c0_146 = arith.constant 0 : index
    %309 = vector.load %arg16[%c0_145, %c0_146] : memref<16x144xf32, #tpu.memory_space<vmem>>, vector<16x144xf32>
    %cst_147 = arith.constant dense<0.000000e+00> : vector<16x512xf32>
    %310 = tpu.matmul %309, %308, %cst_147 {dimension_numbers = #tpu.dot_dimension_numbers<[1], [0], [0], [1], [0, 0, 1, 1], [], []>} : vector<16x144xf32>, vector<144x512xf32>, vector<16x512xf32> -> vector<16x512xf32>
    %c0_148 = arith.constant 0 : index
    %c0_149 = arith.constant 0 : index
    %311 = vector.load %arg17[%c0_148, %c0_149] : memref<16x1xf32, #tpu.memory_space<vmem>>, vector<16x1xf32>
    %312 = vector.broadcast %311 : vector<16x1xf32> to vector<16x512xf32>
    %313 = arith.addf %310, %312 : vector<16x512xf32>
    %cst_150 = arith.constant 0.000000e+00 : f32
    %314 = vector.broadcast %cst_150 : f32 to vector<16x512xf32>
    %315 = arith.maximumf %313, %314 : vector<16x512xf32>
    %cst_151 = arith.constant 0.000000e+00 : f32
    %316 = vector.broadcast %cst_151 : f32 to vector<16x17xf32>
    %317 = vector.extract_strided_slice %315 {offsets = [0, 0], sizes = [16, 495], strides = [1, 1]} : vector<16x512xf32> to vector<16x495xf32>
    %318 = tpu.concatenate %316, %317 in 1 : vector<16x17xf32>, vector<16x495xf32> -> vector<16x512xf32>
    %319 = vector.broadcast %249 : vector<1x512xf32> to vector<16x512xf32>
    %320 = arith.mulf %318, %319 : vector<16x512xf32>
    %cst_152 = arith.constant 0.000000e+00 : f32
    %321 = vector.broadcast %cst_152 : f32 to vector<16x16xf32>
    %322 = vector.extract_strided_slice %315 {offsets = [0, 0], sizes = [16, 496], strides = [1, 1]} : vector<16x512xf32> to vector<16x496xf32>
    %323 = tpu.concatenate %321, %322 in 1 : vector<16x16xf32>, vector<16x496xf32> -> vector<16x512xf32>
    %324 = vector.broadcast %251 : vector<1x512xf32> to vector<16x512xf32>
    %325 = arith.mulf %323, %324 : vector<16x512xf32>
    %cst_153 = arith.constant 0.000000e+00 : f32
    %326 = vector.broadcast %cst_153 : f32 to vector<16x15xf32>
    %327 = vector.extract_strided_slice %315 {offsets = [0, 0], sizes = [16, 497], strides = [1, 1]} : vector<16x512xf32> to vector<16x497xf32>
    %328 = tpu.concatenate %326, %327 in 1 : vector<16x15xf32>, vector<16x497xf32> -> vector<16x512xf32>
    %329 = vector.broadcast %253 : vector<1x512xf32> to vector<16x512xf32>
    %330 = arith.mulf %328, %329 : vector<16x512xf32>
    %cst_154 = arith.constant 0.000000e+00 : f32
    %331 = vector.broadcast %cst_154 : f32 to vector<16x1xf32>
    %332 = vector.extract_strided_slice %315 {offsets = [0, 0], sizes = [16, 511], strides = [1, 1]} : vector<16x512xf32> to vector<16x511xf32>
    %333 = tpu.concatenate %331, %332 in 1 : vector<16x1xf32>, vector<16x511xf32> -> vector<16x512xf32>
    %334 = vector.broadcast %255 : vector<1x512xf32> to vector<16x512xf32>
    %335 = arith.mulf %333, %334 : vector<16x512xf32>
    %336 = vector.broadcast %257 : vector<1x512xf32> to vector<16x512xf32>
    %337 = arith.mulf %315, %336 : vector<16x512xf32>
    %cst_155 = arith.constant 0.000000e+00 : f32
    %338 = vector.broadcast %cst_155 : f32 to vector<16x1xf32>
    %339 = vector.extract_strided_slice %315 {offsets = [0, 1], sizes = [16, 511], strides = [1, 1]} : vector<16x512xf32> to vector<16x511xf32>
    %340 = tpu.concatenate %339, %338 in 1 : vector<16x511xf32>, vector<16x1xf32> -> vector<16x512xf32>
    %341 = vector.broadcast %259 : vector<1x512xf32> to vector<16x512xf32>
    %342 = arith.mulf %340, %341 : vector<16x512xf32>
    %cst_156 = arith.constant 0.000000e+00 : f32
    %343 = vector.broadcast %cst_156 : f32 to vector<16x15xf32>
    %344 = vector.extract_strided_slice %315 {offsets = [0, 15], sizes = [16, 497], strides = [1, 1]} : vector<16x512xf32> to vector<16x497xf32>
    %345 = tpu.concatenate %344, %343 in 1 : vector<16x497xf32>, vector<16x15xf32> -> vector<16x512xf32>
    %346 = vector.broadcast %261 : vector<1x512xf32> to vector<16x512xf32>
    %347 = arith.mulf %345, %346 : vector<16x512xf32>
    %cst_157 = arith.constant 0.000000e+00 : f32
    %348 = vector.broadcast %cst_157 : f32 to vector<16x16xf32>
    %349 = vector.extract_strided_slice %315 {offsets = [0, 16], sizes = [16, 496], strides = [1, 1]} : vector<16x512xf32> to vector<16x496xf32>
    %350 = tpu.concatenate %349, %348 in 1 : vector<16x496xf32>, vector<16x16xf32> -> vector<16x512xf32>
    %351 = vector.broadcast %263 : vector<1x512xf32> to vector<16x512xf32>
    %352 = arith.mulf %350, %351 : vector<16x512xf32>
    %cst_158 = arith.constant 0.000000e+00 : f32
    %353 = vector.broadcast %cst_158 : f32 to vector<16x17xf32>
    %354 = vector.extract_strided_slice %315 {offsets = [0, 17], sizes = [16, 495], strides = [1, 1]} : vector<16x512xf32> to vector<16x495xf32>
    %355 = tpu.concatenate %354, %353 in 1 : vector<16x495xf32>, vector<16x17xf32> -> vector<16x512xf32>
    %356 = vector.broadcast %265 : vector<1x512xf32> to vector<16x512xf32>
    %357 = arith.mulf %355, %356 : vector<16x512xf32>
    %358 = tpu.concatenate %320, %325, %330, %335, %337, %342, %347, %352, %357 in 0 : vector<16x512xf32>, vector<16x512xf32>, vector<16x512xf32>, vector<16x512xf32>, vector<16x512xf32>, vector<16x512xf32>, vector<16x512xf32>, vector<16x512xf32>, vector<16x512xf32> -> vector<144x512xf32>
    %c0_159 = arith.constant 0 : index
    %c0_160 = arith.constant 0 : index
    %359 = vector.load %arg18[%c0_159, %c0_160] : memref<16x144xf32, #tpu.memory_space<vmem>>, vector<16x144xf32>
    %cst_161 = arith.constant dense<0.000000e+00> : vector<16x512xf32>
    %360 = tpu.matmul %359, %358, %cst_161 {dimension_numbers = #tpu.dot_dimension_numbers<[1], [0], [0], [1], [0, 0, 1, 1], [], []>} : vector<16x144xf32>, vector<144x512xf32>, vector<16x512xf32> -> vector<16x512xf32>
    %c0_162 = arith.constant 0 : index
    %c0_163 = arith.constant 0 : index
    %361 = vector.load %arg19[%c0_162, %c0_163] : memref<16x1xf32, #tpu.memory_space<vmem>>, vector<16x1xf32>
    %362 = vector.broadcast %361 : vector<16x1xf32> to vector<16x512xf32>
    %363 = arith.addf %360, %362 : vector<16x512xf32>
    %cst_164 = arith.constant 0.000000e+00 : f32
    %364 = vector.broadcast %cst_164 : f32 to vector<16x512xf32>
    %365 = arith.maximumf %363, %364 : vector<16x512xf32>
    %c0_165 = arith.constant 0 : index
    %c0_166 = arith.constant 0 : index
    %366 = vector.load %arg20[%c0_165, %c0_166] : memref<3x16xf32, #tpu.memory_space<vmem>>, vector<3x16xf32>
    %cst_167 = arith.constant dense<0.000000e+00> : vector<3x512xf32>
    %367 = tpu.matmul %366, %365, %cst_167 {dimension_numbers = #tpu.dot_dimension_numbers<[1], [0], [0], [1], [0, 0, 1, 1], [], []>} : vector<3x16xf32>, vector<16x512xf32>, vector<3x512xf32> -> vector<3x512xf32>
    %c0_168 = arith.constant 0 : index
    %c0_169 = arith.constant 0 : index
    %368 = vector.load %arg21[%c0_168, %c0_169] : memref<3x1xf32, #tpu.memory_space<vmem>>, vector<3x1xf32>
    %369 = vector.broadcast %368 : vector<3x1xf32> to vector<3x512xf32>
    %370 = arith.addf %367, %369 : vector<3x512xf32>
    %371 = math.tanh %370 : vector<3x512xf32>
    %372 = vector.extract_strided_slice %371 {offsets = [0, 0], sizes = [3, 256], strides = [1, 1]} : vector<3x512xf32> to vector<3x256xf32>
    %c0_170 = arith.constant 0 : index
    %c0_171 = arith.constant 0 : index
    %c0_172 = arith.constant 0 : index
    %373 = vector.load %arg22[%c0_170, %c0_171, %c0_172] : memref<2x3x256xf32, #tpu.memory_space<vmem>>, vector<1x3x256xf32>
    %374 = vector.shape_cast %373 : vector<1x3x256xf32> to vector<3x256xf32>
    %375 = vector.shape_cast %372 : vector<3x256xf32> to vector<1x3x256xf32>
    tpu.vector_store %arg22[%c0_170, %c0_171, %c0_172], %375 {strides = array<i32>} : memref<2x3x256xf32, #tpu.memory_space<vmem>>, vector<1x3x256xf32>,
    %376 = vector.extract_strided_slice %371 {offsets = [0, 256], sizes = [3, 256], strides = [1, 1]} : vector<3x512xf32> to vector<3x256xf32>
    %c1_173 = arith.constant 1 : index
    %c0_174 = arith.constant 0 : index
    %c0_175 = arith.constant 0 : index
    %377 = vector.load %arg22[%c1_173, %c0_174, %c0_175] : memref<2x3x256xf32, #tpu.memory_space<vmem>>, vector<1x3x256xf32>
    %378 = vector.shape_cast %377 : vector<1x3x256xf32> to vector<3x256xf32>
    %379 = vector.shape_cast %376 : vector<3x256xf32> to vector<1x3x256xf32>
    tpu.vector_store %arg22[%c1_173, %c0_174, %c0_175], %379 {strides = array<i32>} : memref<2x3x256xf32, #tpu.memory_space<vmem>>, vector<1x3x256xf32>,
    return
  }
  func.func @transform_0(%arg0: i32) -> (i32, i32) {
    %c0_i32 = arith.constant 0 : i32
    %c0_i32_0 = arith.constant 0 : i32
    %c0_i32_1 = arith.constant 0 : i32
    return %c0_i32, %c0_i32_0 : i32, i32
  }
  func.func @transform_1(%arg0: i32) -> (i32, i32) {
    %c0_i32 = arith.constant 0 : i32
    %c0_i32_0 = arith.constant 0 : i32
    %c0_i32_1 = arith.constant 0 : i32
    return %c0_i32, %c0_i32_0 : i32, i32
  }
  func.func @transform_2(%arg0: i32) -> (i32, i32, i32) {
    %c0_i32 = arith.constant 0 : i32
    %c0_i32_0 = arith.constant 0 : i32
    %c0_i32_1 = arith.constant 0 : i32
    %c0_i32_2 = arith.constant 0 : i32
    return %c0_i32, %c0_i32_0, %c0_i32_1 : i32, i32, i32
  }
  func.func @transform_3(%arg0: i32) -> (i32, i32) {
    %c0_i32 = arith.constant 0 : i32
    %c0_i32_0 = arith.constant 0 : i32
    %c0_i32_1 = arith.constant 0 : i32
    return %c0_i32, %c0_i32_0 : i32, i32
  }
  func.func @transform_4(%arg0: i32) -> (i32, i32) {
    %c0_i32 = arith.constant 0 : i32
    %c0_i32_0 = arith.constant 0 : i32
    %c0_i32_1 = arith.constant 0 : i32
    return %c0_i32, %c0_i32_0 : i32, i32
  }
  func.func @transform_5(%arg0: i32) -> (i32, i32) {
    %c0_i32 = arith.constant 0 : i32
    %c0_i32_0 = arith.constant 0 : i32
    %c0_i32_1 = arith.constant 0 : i32
    return %c0_i32, %c0_i32_0 : i32, i32
  }
  func.func @transform_6(%arg0: i32) -> (i32, i32) {
    %c0_i32 = arith.constant 0 : i32
    %c0_i32_0 = arith.constant 0 : i32
    %c0_i32_1 = arith.constant 0 : i32
    return %c0_i32, %c0_i32_0 : i32, i32
  }
  func.func @transform_7(%arg0: i32) -> (i32, i32) {
    %c0_i32 = arith.constant 0 : i32
    %c0_i32_0 = arith.constant 0 : i32
    %c0_i32_1 = arith.constant 0 : i32
    return %c0_i32, %c0_i32_0 : i32, i32
  }
  func.func @transform_8(%arg0: i32) -> (i32, i32, i32) {
    %c0_i32 = arith.constant 0 : i32
    %c0_i32_0 = arith.constant 0 : i32
    %c0_i32_1 = arith.constant 0 : i32
    %c0_i32_2 = arith.constant 0 : i32
    return %c0_i32, %c0_i32_0, %c0_i32_1 : i32, i32, i32
  }
  func.func @transform_9(%arg0: i32) -> (i32, i32) {
    %c0_i32 = arith.constant 0 : i32
    %c0_i32_0 = arith.constant 0 : i32
    %c0_i32_1 = arith.constant 0 : i32
    return %c0_i32, %c0_i32_0 : i32, i32
  }
  func.func @transform_10(%arg0: i32) -> (i32, i32) {
    %c0_i32 = arith.constant 0 : i32
    %c0_i32_0 = arith.constant 0 : i32
    %c0_i32_1 = arith.constant 0 : i32
    return %c0_i32, %c0_i32_0 : i32, i32
  }
  func.func @transform_11(%arg0: i32) -> (i32, i32) {
    %c0_i32 = arith.constant 0 : i32
    %c0_i32_0 = arith.constant 0 : i32
    %c0_i32_1 = arith.constant 0 : i32
    return %c0_i32, %c0_i32_0 : i32, i32
  }
  func.func @transform_12(%arg0: i32) -> (i32, i32) {
    %c0_i32 = arith.constant 0 : i32
    %c0_i32_0 = arith.constant 0 : i32
    %c0_i32_1 = arith.constant 0 : i32
    return %c0_i32, %c0_i32_0 : i32, i32
  }
  func.func @transform_13(%arg0: i32) -> (i32, i32) {
    %c0_i32 = arith.constant 0 : i32
    %c0_i32_0 = arith.constant 0 : i32
    %c0_i32_1 = arith.constant 0 : i32
    return %c0_i32, %c0_i32_0 : i32, i32
  }
  func.func @transform_14(%arg0: i32) -> (i32, i32, i32) {
    %c0_i32 = arith.constant 0 : i32
    %c0_i32_0 = arith.constant 0 : i32
    %c0_i32_1 = arith.constant 0 : i32
    %c0_i32_2 = arith.constant 0 : i32
    return %c0_i32, %c0_i32_0, %c0_i32_1 : i32, i32, i32
  }
  func.func @transform_15(%arg0: i32) -> (i32, i32) {
    %c0_i32 = arith.constant 0 : i32
    %c0_i32_0 = arith.constant 0 : i32
    %c0_i32_1 = arith.constant 0 : i32
    return %c0_i32, %c0_i32_0 : i32, i32
  }
  func.func @transform_16(%arg0: i32) -> (i32, i32) {
    %c0_i32 = arith.constant 0 : i32
    %c0_i32_0 = arith.constant 0 : i32
    %c0_i32_1 = arith.constant 0 : i32
    return %c0_i32, %c0_i32_0 : i32, i32
  }
  func.func @transform_17(%arg0: i32) -> (i32, i32) {
    %c0_i32 = arith.constant 0 : i32
    %c0_i32_0 = arith.constant 0 : i32
    %c0_i32_1 = arith.constant 0 : i32
    return %c0_i32, %c0_i32_0 : i32, i32
  }
  func.func @transform_18(%arg0: i32) -> (i32, i32) {
    %c0_i32 = arith.constant 0 : i32
    %c0_i32_0 = arith.constant 0 : i32
    %c0_i32_1 = arith.constant 0 : i32
    return %c0_i32, %c0_i32_0 : i32, i32
  }
  func.func @transform_19(%arg0: i32) -> (i32, i32) {
    %c0_i32 = arith.constant 0 : i32
    %c0_i32_0 = arith.constant 0 : i32
    %c0_i32_1 = arith.constant 0 : i32
    return %c0_i32, %c0_i32_0 : i32, i32
  }
  func.func @transform_20(%arg0: i32) -> (i32, i32) {
    %c0_i32 = arith.constant 0 : i32
    %c0_i32_0 = arith.constant 0 : i32
    %c0_i32_1 = arith.constant 0 : i32
    return %c0_i32, %c0_i32_0 : i32, i32
  }
  func.func @transform_21(%arg0: i32) -> (i32, i32, i32) {
    %c0_i32 = arith.constant 0 : i32
    %c0_i32_0 = arith.constant 0 : i32
    %c0_i32_1 = arith.constant 0 : i32
    return %arg0, %c0_i32, %c0_i32_0 : i32, i32, i32
  }
}

</mosaic_0001>

<bundles_post_ra>
// kernel: tpu_custom_call.1
= control target key start
LH: loop header
LB: loop body
LE: loop exit
PB: predicated region body
PF: predicated region fallthrough
CT: control target
= control target key end

     0   :  { %s6118_s0 = inlined_call_operand.hbm [shape: f32[2,32], index: 0, kind: input, shape index: {}]   ;;  %s6119_s1 = inlined_call_operand.hbm [shape: f32[2,32], index: 1, kind: input, shape index: {}]   ;;  %s6120_s2 = inlined_call_operand.hbm [shape: f32[9,1,32], index: 2, kind: input, shape index: {}]   ;;  %s6121_s3 = inlined_call_operand.vmem [shape: f32[32,288], index: 3, kind: input, shape index: {}]   ;;  %s6122_s4 = inlined_call_operand.vmem [shape: f32[32,1], index: 4, kind: input, shape index: {}]   ;;  %s6123_s5 = inlined_call_operand.hbm [shape: f32[32,288], index: 5, kind: input, shape index: {}]   ;;  %s6124_s6 = inlined_call_operand.vmem [shape: f32[32,1], index: 6, kind: input, shape index: {}]   ;;  %s6125_s7 = inlined_call_operand.hbm [shape: bf16[32,128], index: 7, kind: input, shape index: {}]   ;;  %s6126_s8 = inlined_call_operand.vmem [shape: f32[9,1,128], index: 8, kind: input, shape index: {}]   ;;  %s6127_s9 = inlined_call_operand.vmem [shape: f32[16,288], index: 9, kind: input, shape index: {}]   ;;  %s6128_s10 = inlined_call_operand.vmem [shape: f32[16,1], index: 10, kind: input, shape index: {}]   ;;  %s6129_s11 = inlined_call_operand.hbm [shape: f32[16,144], index: 11, kind: input, shape index: {}]   ;;  %s6130_s12 = inlined_call_operand.vmem [shape: f32[16,1], index: 12, kind: input, shape index: {}]   ;;  %s6131_s13 = inlined_call_operand.hbm [shape: bf16[128,512], index: 13, kind: input, shape index: {}]   ;;  %s6132_s14 = inlined_call_operand.hbm [shape: f32[9,1,512], index: 14, kind: input, shape index: {}]   ;;  %s6133_s15 = inlined_call_operand.hbm [shape: f32[16,144], index: 15, kind: input, shape index: {}]   ;;  %s6134_s16 = inlined_call_operand.vmem [shape: f32[16,1], index: 16, kind: input, shape index: {}]   ;;  %s6135_s17 = inlined_call_operand.hbm [shape: f32[16,144], index: 17, kind: input, shape index: {}]   ;;  %s6136_s18 = inlined_call_operand.vmem [shape: f32[16,1], index: 18, kind: input, shape index: {}]   ;;  %s6137_s19 = inlined_call_operand.vmem [shape: f32[3,16], index: 19, kind: input, shape index: {}]   ;;  %s6138_s20 = inlined_call_operand.vmem [shape: f32[3,1], index: 20, kind: input, shape index: {}]   ;;  %s6139_s21 = inlined_call_operand.vmem [shape: f32[2,3,256], index: 21, kind: output, shape index: {}]  }
   0x1   :  { %6198 = sst [smem:[#allocation59_spill]] %s6118_s0 }
   0x2   :  { %6199 = sst [smem:[#allocation60_spill]] %s6119_s1 }
   0x3   :  { %6200 = sst [smem:[#allocation61_spill]] %s6120_s2 }
   0x4   :  { %6201 = sst [smem:[#allocation62_spill]] %s6121_s3 }
   0x5   :  { %6202 = sst [smem:[#allocation63_spill]] %s6122_s4 }
   0x6   :  { %6203 = sst [smem:[#allocation64_spill]] %s6123_s5 }
   0x7   :  { %26 = vsyncpa [#allocation3], 0 }
   0x8   :  { %27 = vsyncpa [#allocation5], 0 }
   0x9   :  { %28 = vsyncpa [#allocation8], 0 }
   0xa   :  { %29 = vsyncpa [#allocation11], 0 }
   0xb   :  { %30 = vsyncpa [#allocation14], 0 }
   0xc   :  { %31 = vsyncpa [#allocation17], 0  ;;  %s4134_s2 = smov [#allocation4]   ;;  %s4135_s26 = smov [#allocation7]  }
   0xd   :  { %s48_s25 = sshll.u32 %s4134_s2, 4  ;;  %s73_s27 = sshll.u32 %s4135_s26, 4  ;;  %s49_s25 = int_to_ptr.vmem [resolvable:$true] %s48_s25  ;;  %s74_s27 = int_to_ptr.vmem [resolvable:$true] %s73_s27 }
   0xe   :  { %s3930_s3 = scalar_lea.vmem %s49_s25, 32  ;;  %p3935_p1 = scmp.lt.s32.totalorder %s49_s25, %s49_s25 }
   0xf   :  { %p3931_p0 = scmp.ne.s32.totalorder %s49_s25, %s3930_s3  ;;  %p3936_p2 = scmp.lt.s32.totalorder %s3930_s3, %s3930_s3 }
  0x11   :  { %p3937_p3 = por %p3936_p2, %p3935_p1 }
  0x13   :  { %p3938_p4 = pnand %p3937_p3, %p3931_p0 }
  0x15   :  { %3941 = shalt.err (!%p3938_p4)
}
  0x16   :  { %s6204_s0 = sld [smem:[#allocation60_spill]]  ;;  %s3950_s4 = scalar_lea.vmem %s74_s27, 1536 }
  0x17   :  { %p3951_p5 = scmp.ne.s32.totalorder %s74_s27, %s3950_s4  ;;  %p3955_p6 = scmp.lt.s32.totalorder %s74_s27, %s74_s27 }
  0x18   :  { %p3956_p7 = scmp.lt.s32.totalorder %s3950_s4, %s3950_s4 }
  0x1a   :  { %p3957_p8 = por %p3956_p7, %p3955_p6 }
  0x1c   :  { %51 = dma.hbm_to_vmem [thread:$0]  %s6204_s0, 32, %s49_s25, [#allocation5]  }
  0x1d   :  { %p3958_p9 = pnand %p3957_p8, %p3951_p5 }
  0x1f   :  { %3961 = shalt.err (!%p3958_p9)
}
  0x20   :  { %s4136_s30 = smov 384   ;;  %s4137_s5 = smov 24  }
  0x21   :  { %s6205_s1 = sld [smem:[#allocation64_spill]]  ;;  %s4138_s24 = smov [#allocation10]  }
  0x22   :  { %s105_s2 = sshll.u32 %s4138_s24, 4  ;;  %s106_s2 = int_to_ptr.vmem [resolvable:$true] %s105_s2 }
  0x23   :  { %s3970_s26 = scalar_lea.vmem %s106_s2, 512  ;;  %p3975_p11 = scmp.lt.s32.totalorder %s106_s2, %s106_s2 }
  0x24   :  { %p3971_p10 = scmp.ne.s32.totalorder %s106_s2, %s3970_s26  ;;  %p3976_p12 = scmp.lt.s32.totalorder %s3970_s26, %s3970_s26 }
  0x26   :  { %p3977_p13 = por %p3976_p12, %p3975_p11 }
  0x27   :  { %79 = dma.hbm_to_vmem [thread:$0]  %s6205_s1, 1536, %s74_s27, [#allocation8], %s4136_s30, %s4136_s30, %s4137_s5  }
  0x28   :  { %p3978_p0 = pnand %p3977_p13, %p3971_p10 }
  0x2a   :  { %3981 = shalt.err (!%p3978_p0)
}
  0x2b   :  { %s4139_s25 = smov 256   ;;  %s4140_s3 = smov 16  }
  0x2c   :  { %111 = dma.hbm_to_vmem [thread:$0]  %s6129_s11, 512, %s106_s2, [#allocation11], %s4139_s25, %s4139_s25, %s4140_s3  }
  0x2d   :  { %s4141_s27 = smov [#allocation13]   ;;  %s4142_s4 = smov [#allocation2]  }
  0x2e   :  { %s131_s0 = sshll.u32 %s4141_s27, 4  ;;  %s38_s30 = sshll.u32 %s4142_s4, 4  ;;  %s132_s0 = int_to_ptr.vmem [resolvable:$true] %s131_s0  ;;  %s39_s30 = int_to_ptr.vmem [resolvable:$true] %s38_s30 }
  0x2f   :  { %s3990_s5 = scalar_lea.vmem %s132_s0, 576  ;;  %p3995_p2 = scmp.lt.s32.totalorder %s132_s0, %s132_s0 }
  0x30   :  { %p3991_p1 = scmp.ne.s32.totalorder %s132_s0, %s3990_s5  ;;  %p3996_p3 = scmp.lt.s32.totalorder %s3990_s5, %s3990_s5 }
  0x32   :  { %p3997_p4 = por %p3996_p3, %p3995_p2 }
  0x34   :  { %p3998_p5 = pnand %p3997_p4, %p3991_p1 }
  0x36   :  { %4001 = shalt.err (!%p3998_p5)
}
  0x37   :  { %s4143_s22 = smov 64   ;;  %s4144_s23 = smov 4  }
  0x38   :  { %137 = dma.hbm_to_vmem [thread:$0]  %s6132_s14, 576, %s132_s0, [#allocation14], %s4143_s22, %s4143_s22, %s4144_s23  }
  0x39   :  { %s4010_s11 = scalar_lea.vmem %s39_s30, 32  ;;  %p4015_p7 = scmp.lt.s32.totalorder %s39_s30, %s39_s30 }
  0x3a   :  { %p4011_p6 = scmp.ne.s32.totalorder %s39_s30, %s4010_s11  ;;  %p4016_p8 = scmp.lt.s32.totalorder %s4010_s11, %s4010_s11 }
  0x3c   :  { %p4017_p9 = por %p4016_p8, %p4015_p7 }
  0x3e   :  { %p4018_p10 = pnand %p4017_p9, %p4011_p6 }
  0x40   :  { %4021 = shalt.err (!%p4018_p10)
}
  0x41   :  { %s6206_s28 = sld [smem:[#allocation59_spill]]  ;;  %s4145_s29 = smov [#allocation6]  }
  0x42   :  { %s57_s27 = sshll.u32 %s4145_s29, 4  ;;  %s58_s27 = int_to_ptr.vmem [resolvable:$true] %s57_s27 }
  0x43   :  { %s4030_s4 = scalar_lea.vmem %s58_s27, 144  ;;  %s4034_s5 = scalar_lea.vmem %s58_s27, 160 }
  0x44   :  { %p4031_p11 = scmp.ne.s32.totalorder %s58_s27, %s4030_s4  ;;  %p4035_p12 = scmp.lt.s32.totalorder %s58_s27, %s58_s27 }
  0x45   :  { %p4036_p13 = scmp.lt.s32.totalorder %s4034_s5, %s4030_s4 }
  0x47   :  { %41 = dma.hbm_to_vmem [thread:$0]  %s6206_s28, 32, %s39_s30, [#allocation3]  }
  0x48   :  { %p4037_p0 = por %p4036_p13, %p4035_p12 }
  0x4a   :  { %p4038_p1 = pnand %p4037_p0, %p4031_p11 }
  0x4c   :  { %4041 = shalt.err (!%p4038_p1)
}
  0x4d   :  { %s4146_s14 = smov 1   ;;  %s6207_s24 = sld [smem:[#allocation61_spill]] }
  0x4e   :  { %s4147_s30 = smov [#allocation9]   ;;  %s4148_s2 = smov [#allocation12]  }
  0x4f   :  { %s87_s11 = sshll.u32 %s4147_s30, 4  ;;  %s119_s26 = sshll.u32 %s4148_s2, 4  ;;  %s88_s11 = int_to_ptr.vmem [resolvable:$true] %s87_s11  ;;  %s120_s26 = int_to_ptr.vmem [resolvable:$true] %s119_s26 }
  0x50   :  { %s4050_s28 = scalar_lea.vmem %s88_s11, 256  ;;  %p4055_p3 = scmp.lt.s32.totalorder %s88_s11, %s88_s11 }
  0x51   :  { %p4051_p2 = scmp.ne.s32.totalorder %s88_s11, %s4050_s28  ;;  %p4056_p4 = scmp.lt.s32.totalorder %s4050_s28, %s4050_s28 }
  0x53   :  { %63 = dma.hbm_to_vmem [thread:$0]  %s6207_s24, 144, %s58_s27, [#allocation5], %s4140_s3, %s4140_s3, %s4146_s14  }
  0x54   :  { %p4057_p5 = por %p4056_p4, %p4055_p3 }
  0x56   :  { %p4058_p6 = pnand %p4057_p5, %p4051_p2 }
  0x58   :  { %4061 = shalt.err (!%p4058_p6)
}
  0x59   :  { %93 = dma.hbm_to_vmem [thread:$0]  %s6125_s7, 256, %s88_s11, [#allocation8], %s4143_s22, %s4143_s22, %s4144_s23  }
  0x5a   :  { %s4070_s27 = scalar_lea.vmem %s120_s26, 4096  ;;  %p4075_p8 = scmp.lt.s32.totalorder %s120_s26, %s120_s26 }
  0x5b   :  { %p4071_p7 = scmp.ne.s32.totalorder %s120_s26, %s4070_s27  ;;  %p4076_p9 = scmp.lt.s32.totalorder %s4070_s27, %s4070_s27 }
  0x5d   :  { %p4077_p10 = por %p4076_p9, %p4075_p8 }
  0x5f   :  { %p4078_p11 = pnand %p4077_p10, %p4071_p7 }
  0x61   :  { %4081 = shalt.err (!%p4078_p11)
}
  0x62   :  { %125 = dma.hbm_to_vmem [thread:$0]  %s6131_s13, 4096, %s120_s26, [#allocation11], %s4139_s25, %s4139_s25, %s4140_s3  }
  0x63   :  { %s4149_s1 = smov [#allocation15]   ;;  %s4150_s30 = smov [#allocation16]  }
  0x64   :  { %s143_s24 = sshll.u32 %s4149_s1, 4  ;;  %s157_s7 = sshll.u32 %s4150_s30, 4  ;;  %s144_s24 = int_to_ptr.vmem [resolvable:$true] %s143_s24  ;;  %s158_s7 = int_to_ptr.vmem [resolvable:$true] %s157_s7 }
  0x65   :  { %s4090_s22 = scalar_lea.vmem %s144_s24, 512  ;;  %p4095_p13 = scmp.lt.s32.totalorder %s144_s24, %s144_s24 }
  0x66   :  { %p4091_p12 = scmp.ne.s32.totalorder %s144_s24, %s4090_s22  ;;  %p4096_p0 = scmp.lt.s32.totalorder %s4090_s22, %s4090_s22 }
  0x68   :  { %p4097_p1 = por %p4096_p0, %p4095_p13 }
  0x6a   :  { %p4098_p2 = pnand %p4097_p1, %p4091_p12 }
  0x6c   :  { %4101 = shalt.err (!%p4098_p2)
}
  0x6d   :  { %149 = dma.hbm_to_vmem [thread:$0]  %s6133_s15, 512, %s144_s24, [#allocation14], %s4139_s25, %s4139_s25, %s4140_s3  }
  0x6e   :  { %s4110_s13 = scalar_lea.vmem %s158_s7, 512  ;;  %p4115_p4 = scmp.lt.s32.totalorder %s158_s7, %s158_s7 }
  0x6f   :  { %p4111_p3 = scmp.ne.s32.totalorder %s158_s7, %s4110_s13  ;;  %p4116_p5 = scmp.lt.s32.totalorder %s4110_s13, %s4110_s13 }
  0x71   :  { %p4117_p6 = por %p4116_p5, %p4115_p4 }
  0x73   :  { %p4118_p7 = pnand %p4117_p6, %p4111_p3 }
  0x75   :  { %4121 = shalt.err (!%p4118_p7)
}
  0x76   :  { %163 = dma.hbm_to_vmem [thread:$0]  %s6135_s17, 512, %s158_s7, [#allocation17], %s4139_s25, %s4139_s25, %s4140_s3  }
  0x77   :  { %4122 = dma.done.wait [#allocation3], 32  }
  0x78   :  { %4123 = vsyncadd [#allocation3], 4294967264 }
  0x79   :  { %4124 = dma.done.wait [#allocation5], 176  }
  0x7a   :  { %4125 = vsyncadd [#allocation5], 4294967120 }
  0x7b   :  { %4126 = dma.done.wait [#allocation8], 1792  }
  0x7c   :  { %4127 = vsyncadd [#allocation8], 4294965504 }
  0x7d   :  { %4128 = dma.done.wait [#allocation11], 4608  }
  0x7e   :  { %4129 = vsyncadd [#allocation11], 4294962688 }
  0x7f   :  { %4130 = dma.done.wait [#allocation14], 1088  }
  0x80   :  { %4131 = vsyncadd [#allocation14], 4294966208 }
  0x81   :  { %4132 = dma.done.wait [#allocation17], 512  }
  0x82   :  { %4133 = vsyncadd [#allocation17], 4294966784  ;;  %vm249_vm0 = vcmask 1041408   ;;  %v202_v0 = vld [vmem:[#allocation2] sm:$0x3]  ;;  %vm236_vm1 = vcmask 15360  }
  0x83   :  { %v235_v1 = vld [vmem:[#allocation4] sm:$0x3]  ;;  %203 = vxpose.xlu0.b32.start.end [1/1] (short) (narrow) %v202_v0, 32  ;;  %s4151_s15 = smov 124   ;;  %s4152_s17 = smov 127   ;;  %vm621_vm2 = vcmask 261120  }
  0x84   :  { %3815 = vmatprep.subr.msk.mxu0 %vm249_vm0, %v235_v1  ;;  %s4153_s25 = smov 125   ;;  %s4154_s29 = smov 3   ;;  %v4157_v13 = vmov 0   ;;  %vm543_vm3 = vcmask 228352   ;;  %v4422_v21 = vld [vmem:[#allocation6 + $0x7] ss:$0 sm:$0xff] }
  0x85   :  { %3816 = vmatpush3.msk.msra.mxu0 %vm249_vm0, %v235_v1  ;;  %s4155_s4 = smov 5   ;;  %s4156_s27 = smov 123   ;;  %3913 = vset.pattern.permute.xlu1 %v4157_v13  ;;  %vm452_vm4 = vcmask 7168   ;;  %v4438_v36 = vld [vmem:[#allocation6 + $0x3] ss:$0 sm:$0xff]  ;;  %vm570_vm5 = vcmask 220160  }
  0x86   :  { %s6208_s1 = sld [smem:[#allocation62_spill]]  ;;  %v4442_v39 = vld [vmem:[#allocation6 + $0x8] ss:$0 sm:$0xff]  ;;  %vm516_vm6 = vcmask 236544   ;;  %vm425_vm7 = vcmask 23552   ;;  %vm398_vm8 = vcmask 31744  }
  0x87   :  { %s6209_s11 = sld [smem:[#allocation63_spill]]  ;;  %v4460_v63 = vld [vmem:[#allocation6 + $0x6] ss:$0 sm:$0xff]  ;;  %v4463_v1 = vld [vmem:[#allocation6 + $0x2] ss:$0 sm:$0xff]  ;;  %vm489_vm9 = vcmask 252928  }
  0x88   :  { %vm371_vm10 = vcmask 39936   ;;  %s4160_s24 = smov 121   ;;  %s4161_s30 = smov 8   ;;  %vm1507_vm11 = vcmask 982016   ;;  %vm1480_vm12 = vcmask 990208   ;;  %vm1390_vm13 = vcmask 56320  }
  0x89   :  { %s4163_s2 = smov 119   ;;  %vm1453_vm14 = vcmask 1039360   ;;  %vm1363_vm15 = vcmask 64512   ;;  %vm1336_vm0 = vcmask 72704  }
  0x8c   :  { %v586_v10 = vld [vmem:[%s6208_s1 + $0x8] sm:$0xff]  ;;  %v587_v11 = vld [vmem:[%s6208_s1 + $0x10] sm:$0xff] }
  0x8d   :  { %698 = vmatprep.mubr.f32.mxu1 %v586_v10  ;;  %v600_v12 = vld [vmem:[%s6209_s11 + $0x18] sm:$0xff]  ;;  %v597_v14 = vld [vmem:[%s6209_s11] sm:$0xff]  ;;  %v599_v15 = vld [vmem:[%s6209_s11 + $0x10] sm:$0xff] }
  0x8e   :  { %v598_v16 = vld [vmem:[%s6209_s11 + $0x8] sm:$0xff]  ;;  %s4162_s11 = smov 9  }
  0xac   :  { %3912 = vset.pattern.permute.xlu0 %v4157_v13 }
  0xff   :  { %v219_v2 = vpop.trf.xlu0 }
 0x100   :  { %3817 = vmatprep.mubr.msk.f32.mxu0 %vm236_vm1, %v219_v2 }
 0x103   :  { %v220_v3 = vpop.trf.xlu0 }
 0x104   :  { %3818 = vmatmul.mubr.msk.f32.vlgmr.msra.gmra.mxu0 %vm236_vm1, %v220_v3 }
 0x107   :  { %v221_v4 = vpop.trf.xlu0 }
 0x108   :  { %3820 = vmatprep.mubr.msk.f32.mxu0 %vm236_vm1, %v221_v4 }
 0x10b   :  { %v222_v5 = vpop.trf.xlu0 }
 0x10c   :  { %3821 = vmatmul.mubr.msk.f32.gmra.mxu0 %vm236_vm1, %v222_v5  ;;  %vm1534_vm1 = vcmask 973824  }
 0x10d   :  { %3831 = vmatprep.mubr.msk.f32.mxu0 %vm621_vm2, %v587_v11 }
 0x1c4   :  { %v4331_v6 = vpop.f32.mrf.mxu0 }
 0x1c5   :  { %533 = vrot.lane.b32.xlu1 %v4331_v6, %s4151_s15 }
 0x1c6   :  { %v4337_v7 = vpop.f32.mrf.mxu0 }
 0x1c9   :  { %442 = vrot.lane.b32.xlu1 %v4331_v6, %s4146_s14 }
 0x1cc   :  { %v4339_v8 = vpop.f32.mrf.mxu0 }
 0x1cd   :  { %531 = vrot.lane.b32.xlu1 %v4337_v7, %s4151_s15  ;;  %537 = vrot.lane.b32.xlu0 %v4339_v8, %s4151_s15 }
 0x1ce   :  { %v4353_v9 = vpop.f32.mrf.mxu0 }
 0x1d1   :  { %440 = vrot.lane.b32.xlu1 %v4337_v7, %s4146_s14  ;;  %479 = vrot.lane.b32.xlu0 %v4331_v6, %s4152_s17 }
 0x1d5   :  { %506 = vrot.lane.b32.xlu1 %v4331_v6, %s4153_s25  ;;  %483 = vrot.lane.b32.xlu0 %v4339_v8, %s4152_s17 }
 0x1d9   :  { %415 = vrot.lane.b32.xlu1 %v4331_v6, %s4154_s29  ;;  %481 = vrot.lane.b32.xlu0 %v4353_v9, %s4152_s17 }
 0x1dd   :  { %504 = vrot.lane.b32.xlu1 %v4337_v7, %s4153_s25  ;;  %477 = vrot.lane.b32.xlu0 %v4337_v7, %s4152_s17 }
 0x1e1   :  { %413 = vrot.lane.b32.xlu1 %v4337_v7, %s4154_s29  ;;  %365 = vrot.lane.b32.xlu0 %v4339_v8, %s4155_s4 }
 0x1e5   :  { %446 = vrot.lane.b32.xlu1 %v4339_v8, %s4146_s14  ;;  %361 = vrot.lane.b32.xlu0 %v4331_v6, %s4155_s4 }
 0x1e9   :  { %510 = vrot.lane.b32.xlu1 %v4339_v8, %s4153_s25  ;;  %564 = vrot.lane.b32.xlu0 %v4339_v8, %s4156_s27 }
 0x1ed   :  { %419 = vrot.lane.b32.xlu1 %v4339_v8, %s4154_s29  ;;  %560 = vrot.lane.b32.xlu0 %v4331_v6, %s4156_s27 }
 0x1f1   :  { %392 = vrot.lane.b32.xlu1 %v4339_v8, %s4144_s23  ;;  %618 = vperm.xlu0 %3912, %v600_v12  }
 0x1f5   :  { %535 = vrot.lane.b32.xlu1 %v4353_v9, %s4151_s15  ;;  %603 = vperm.xlu0 %3912, %v597_v14  }
 0x1f9   :  { %444 = vrot.lane.b32.xlu1 %v4353_v9, %s4146_s14 }
 0x1fd   :  { %508 = vrot.lane.b32.xlu1 %v4353_v9, %s4153_s25 }
 0x201   :  { %417 = vrot.lane.b32.xlu1 %v4353_v9, %s4154_s29 }
 0x205   :  { %388 = vrot.lane.b32.xlu1 %v4331_v6, %s4144_s23 }
 0x209   :  { %390 = vrot.lane.b32.xlu1 %v4353_v9, %s4144_s23 }
 0x20d   :  { %386 = vrot.lane.b32.xlu1 %v4337_v7, %s4144_s23 }
 0x211   :  { %363 = vrot.lane.b32.xlu1 %v4353_v9, %s4155_s4 }
 0x215   :  { %359 = vrot.lane.b32.xlu1 %v4337_v7, %s4155_s4 }
 0x219   :  { %562 = vrot.lane.b32.xlu1 %v4353_v9, %s4156_s27 }
 0x21d   :  { %558 = vrot.lane.b32.xlu1 %v4337_v7, %s4156_s27 }
 0x221   :  { %613 = vperm.xlu1 %3913, %v599_v15  }
 0x225   :  { %608 = vperm.xlu1 %3913, %v598_v16  }
 0x237   :  { %v534_v17 = vpop.permute.xlu1 %533 }
 0x238   :  { %v545_v49 = vsel %vm543_vm3, %v534_v17, 0.0 }
 0x239   :  { %v555_v55 = vmul.f32 %v4422_v21, %v545_v49 }
 0x23b   :  { %v443_v18 = vpop.permute.xlu1 %442 }
 0x23c   :  { %v454_v51 = vsel %vm452_vm4, 0.0, %v443_v18 }
 0x23d   :  { %v464_v57 = vmul.f32 %v4438_v36, %v454_v51 }
 0x23f   :  { %v532_v19 = vpop.permute.xlu1 %531  ;;  %v538_v20 = vpop.permute.xlu0 %537 }
 0x240   :  { %v547_v22 = vsel %vm543_vm3, %v538_v20, 0.0  ;;  %v544_v53 = vsel %vm543_vm3, %v532_v19, 0.0 }
 0x241   :  { %v557_v23 = vmul.f32 %v4422_v21, %v547_v22  ;;  %v554_v60 = vmul.f32 %v4422_v21, %v544_v53  ;;  %v4479_v22 = vld [vmem:[#allocation6 + $0x1] ss:$0 sm:$0xff] }
 0x243   :  { %v441_v24 = vpop.permute.xlu1 %440  ;;  %v4426_v25 = vpop.permute.xlu0 %479  ;;  %3659 = vmatprep.subr.mxu1 %v557_v23 }
 0x244   :  { %v453_v56 = vsel %vm452_vm4, 0.0, %v441_v24  ;;  %v4482_v24 = vld [vmem:[#allocation6 + $0x5] ss:$0 sm:$0xff] }
 0x245   :  { %v463_v62 = vmul.f32 %v4438_v36, %v453_v56 }
 0x247   :  { %v507_v26 = vpop.permute.xlu1 %506  ;;  %v4428_v27 = vpop.permute.xlu0 %483 }
 0x248   :  { %v518_v3 = vsel %vm516_vm6, %v507_v26, 0.0  ;;  %v493_v17 = vsel %vm489_vm9, %v4428_v27, 0.0 }
 0x249   :  { %v528_v15 = vmul.f32 %v4460_v63, %v518_v3  ;;  %v503_v27 = vmul.f32 %v4482_v24, %v493_v17 }
 0x24b   :  { %v416_v28 = vpop.permute.xlu1 %415  ;;  %v4430_v29 = vpop.permute.xlu0 %481 }
 0x24c   :  { %v427_v10 = vsel %vm425_vm7, 0.0, %v416_v28  ;;  %v492_v26 = vsel %vm489_vm9, %v4430_v29, 0.0 }
 0x24d   :  { %v437_v18 = vmul.f32 %v4463_v1, %v427_v10 }
 0x24f   :  { %v505_v30 = vpop.permute.xlu1 %504  ;;  %v4432_v31 = vpop.permute.xlu0 %477 }
 0x250   :  { %v517_v13 = vsel %vm516_vm6, %v505_v30, 0.0  ;;  %v491_v30 = vsel %vm489_vm9, %v4426_v25, 0.0  ;;  %v490_v29 = vsel %vm489_vm9, %v4432_v31, 0.0 }
 0x251   :  { %v527_v20 = vmul.f32 %v4460_v63, %v517_v13  ;;  %v501_v25 = vmul.f32 %v4482_v24, %v491_v30  ;;  %v595_v13 = vld [vmem:[%s6208_s1 + $0x50] sm:$0xff] }
 0x253   :  { %v414_v32 = vpop.permute.xlu1 %413  ;;  %v4434_v33 = vpop.permute.xlu0 %365 }
 0x254   :  { %v426_v16 = vsel %vm425_vm7, 0.0, %v414_v32 }
 0x255   :  { %v436_v28 = vmul.f32 %v4463_v1, %v426_v16  ;;  %v596_v16 = vld [vmem:[%s6208_s1 + $0x58] sm:$0xff] }
 0x257   :  { %v447_v34 = vpop.permute.xlu1 %446  ;;  %v4436_v35 = vpop.permute.xlu0 %361 }
 0x258   :  { %v456_v37 = vsel %vm452_vm4, 0.0, %v447_v34 }
 0x259   :  { %v466_v38 = vmul.f32 %v4438_v36, %v456_v37  ;;  %v502_v37 = vmul.f32 %v4482_v24, %v492_v26 }
 0x25b   :  { %v511_v40 = vpop.permute.xlu1 %510  ;;  %3660 = vmatpush3.msra.mxu1 %v466_v38  ;;  %v565_v41 = vpop.permute.xlu0 %564 }
 0x25c   :  { %v574_v42 = vsel %vm570_vm5, %v565_v41, 0.0  ;;  %v520_v58 = vsel %vm516_vm6, %v511_v40, 0.0 }
 0x25d   :  { %v584_v43 = vmul.f32 %v4442_v39, %v574_v42  ;;  %v530_v2 = vmul.f32 %v4460_v63, %v520_v58 }
 0x25f   :  { %v420_v44 = vpop.permute.xlu1 %419  ;;  %3823 = vmatprep.subr.mxu0 %v584_v43  ;;  %v561_v58 = vpop.permute.xlu0 %560 }
 0x260   :  { %3824 = vmatpush3.msra.mxu0 %v584_v43  ;;  %v429_v61 = vsel %vm425_vm7, 0.0, %v420_v44  ;;  %v500_v44 = vmul.f32 %v4482_v24, %v490_v29 }
 0x261   :  { %v439_v4 = vmul.f32 %v4463_v1, %v429_v61  ;;  %v572_v61 = vsel %vm570_vm5, %v561_v58, 0.0  ;;  %v988_v58 = vld [vmem:[%s6124_s6] sm:$0xff] }
 0x262   :  { %v582_v3 = vmul.f32 %v4442_v39, %v572_v61 }
 0x263   :  { %v393_v45 = vpop.permute.xlu1 %392 }
 0x264   :  { %v402_v23 = vsel %vm398_vm8, 0.0, %v393_v45  ;;  %v4500_v45 = vld [vmem:[#allocation6] ss:$0 sm:$0xff] }
 0x265   :  { %v412_v32 = vmul.f32 %v4479_v22, %v402_v23 }
 0x267   :  { %v536_v46 = vpop.permute.xlu1 %535 }
 0x268   :  { %v546_v47 = vsel %vm543_vm3, %v536_v46, 0.0  ;;  %v375_v46 = vsel %vm371_vm10, 0.0, %v4434_v33 }
 0x269   :  { %v556_v48 = vmul.f32 %v4422_v21, %v546_v47 }
 0x26b   :  { %3661 = vmatprep.subr.mxu1 %v556_v48  ;;  %v445_v50 = vpop.permute.xlu1 %444  ;;  %v4506_v48 = vld [vmem:[#allocation6 + $0x4] ss:$0 sm:$0xff] }
 0x26c   :  { %v455_v52 = vsel %vm452_vm4, 0.0, %v445_v50  ;;  %v476_v49 = vmul.f32 %v4339_v8, %v4506_v48  ;;  %v385_v50 = vmul.f32 %v4500_v45, %v375_v46  ;;  %v475_v53 = vmul.f32 %v4506_v48, %v4353_v9 }
 0x26d   :  { %v465_v54 = vmul.f32 %v4438_v36, %v455_v52  ;;  %v373_v52 = vsel %vm371_vm10, 0.0, %v4436_v35  ;;  %v474_v8 = vmul.f32 %v4331_v6, %v4506_v48  ;;  %v473_v35 = vmul.f32 %v4506_v48, %v4337_v7  ;;  %v589_v6 = vld [vmem:[%s6208_s1 + $0x20] sm:$0xff] }
 0x26f   :  { %3662 = vmatpush3.msra.mxu1 %v465_v54  ;;  %v509_v59 = vpop.permute.xlu1 %508 }
 0x270   :  { %3663 = vmatprep.subr.mxu1 %v555_v55  ;;  %v519_v0 = vsel %vm516_vm6, %v509_v59, 0.0  ;;  %v383_v55 = vmul.f32 %v4500_v45, %v373_v52  ;;  %v585_v59 = vld [vmem:[%s6208_s1] sm:$0xff] }
 0x271   :  { %3664 = vmatpush3.msra.mxu1 %v464_v57  ;;  %v529_v11 = vmul.f32 %v4460_v63, %v519_v0  ;;  %v588_v0 = vld [vmem:[%s6208_s1 + $0x18] sm:$0xff] }
 0x272   :  { %3665 = vmatprep.subr.mxu1 %v554_v60 }
 0x273   :  { %3666 = vmatpush3.msra.mxu1 %v463_v62  ;;  %v418_v5 = vpop.permute.xlu1 %417 }
 0x274   :  { %v428_v12 = vsel %vm425_vm7, 0.0, %v418_v5  ;;  %3667 = vmatprep.subr.mxu1 %v530_v2  ;;  %v592_v2 = vld [vmem:[%s6208_s1 + $0x38] sm:$0xff] }
 0x275   :  { %v438_v14 = vmul.f32 %v4463_v1, %v428_v12  ;;  %3668 = vmatpush3.msra.mxu1 %v439_v4  ;;  %v590_v12 = vld [vmem:[%s6208_s1 + $0x28] sm:$0xff] }
 0x276   :  { %3669 = vmatprep.subr.mxu1 %v529_v11  ;;  %v591_v11 = vld [vmem:[%s6208_s1 + $0x30] sm:$0xff] }
 0x277   :  { %3670 = vmatpush3.msra.mxu1 %v438_v14  ;;  %v389_v19 = vpop.permute.xlu1 %388  ;;  %v593_v14 = vld [vmem:[%s6208_s1 + $0x40] sm:$0xff] }
 0x278   :  { %3671 = vmatprep.subr.mxu1 %v528_v15  ;;  %v400_v38 = vsel %vm398_vm8, 0.0, %v389_v19  ;;  %v594_v15 = vld [vmem:[%s6208_s1 + $0x48] sm:$0xff] }
 0x279   :  { %3672 = vmatpush3.msra.mxu1 %v437_v18  ;;  %v410_v42 = vmul.f32 %v4479_v22, %v400_v38  ;;  %v619_v18 = vpop.permute.xlu0 %618 }
 0x27a   :  { %3673 = vmatprep.subr.mxu1 %v527_v20 }
 0x27b   :  { %3674 = vmatpush3.msra.mxu1 %v436_v28  ;;  %v391_v34 = vpop.permute.xlu1 %390 }
 0x27c   :  { %v401_v40 = vsel %vm398_vm8, 0.0, %v391_v34  ;;  %3675 = vmatprep.subr.mxu1 %v503_v27 }
 0x27d   :  { %v411_v41 = vmul.f32 %v4479_v22, %v401_v40  ;;  %3676 = vmatpush3.msra.mxu1 %v412_v32  ;;  %v604_v27 = vpop.permute.xlu0 %603 }
 0x27e   :  { %3677 = vmatprep.subr.mxu1 %v502_v37 }
 0x27f   :  { %3678 = vmatpush3.msra.mxu1 %v411_v41  ;;  %v387_v43 = vpop.permute.xlu1 %386 }
 0x280   :  { %v399_v31 = vsel %vm398_vm8, 0.0, %v387_v43  ;;  %3679 = vmatprep.subr.mxu1 %v501_v25 }
 0x281   :  { %v409_v47 = vmul.f32 %v4479_v22, %v399_v31  ;;  %3680 = vmatpush3.msra.mxu1 %v410_v42 }
 0x282   :  { %3681 = vmatprep.subr.mxu1 %v500_v44 }
 0x283   :  { %3682 = vmatpush3.msra.mxu1 %v409_v47  ;;  %v364_v51 = vpop.permute.xlu1 %363 }
 0x284   :  { %v374_v33 = vsel %vm371_vm10, 0.0, %v364_v51  ;;  %3683 = vmatprep.subr.mxu1 %v476_v49 }
 0x285   :  { %v384_v54 = vmul.f32 %v4500_v45, %v374_v33  ;;  %3684 = vmatpush3.msra.mxu1 %v385_v50 }
 0x286   :  { %3685 = vmatprep.subr.mxu1 %v475_v53 }
 0x287   :  { %v360_v56 = vpop.permute.xlu1 %359  ;;  %3686 = vmatpush3.msra.mxu1 %v384_v54 }
 0x288   :  { %v372_v57 = vsel %vm371_vm10, 0.0, %v360_v56  ;;  %3687 = vmatprep.subr.mxu1 %v474_v8  ;;  %v977_v56 = vld [vmem:[#allocation7 + $0x8] sm:$0xff] }
 0x289   :  { %v382_v9 = vmul.f32 %v4500_v45, %v372_v57  ;;  %3688 = vmatpush3.msra.mxu1 %v383_v55  ;;  %v978_v57 = vld [vmem:[#allocation7 + $0x10] sm:$0xff] }
 0x28a   :  { %3689 = vmatprep.subr.mxu1 %v473_v35  ;;  %v989_v35 = vld [vmem:[%s6124_s6 + $0x8] sm:$0xff] }
 0x28b   :  { %v563_v60 = vpop.permute.xlu1 %562  ;;  %3690 = vmatpush3.msra.mxu1 %v382_v9  ;;  %v991_v9 = vld [vmem:[%s6124_s6 + $0x18] sm:$0xff] }
 0x28c   :  { %v573_v62 = vsel %vm570_vm5, %v563_v60, 0.0  ;;  %699 = vmatmul.mubr.f32.vlgmr.msra.gmra.mxu1 %v585_v59  ;;  %v990_v59 = vld [vmem:[%s6124_s6 + $0x10] sm:$0xff]  ;;  %s4158_s6 = smov 120  }
 0x28d   :  { %v583_v7 = vmul.f32 %v4442_v39, %v573_v62  ;;  %703 = vmatprep.mubr.f32.mxu1 %v589_v6 }
 0x28f   :  { %3825 = vmatprep.subr.mxu0 %v583_v7  ;;  %v559_v4 = vpop.permute.xlu1 %558 }
 0x290   :  { %v571_v5 = vsel %vm570_vm5, %v559_v4, 0.0  ;;  %704 = vmatmul.mubr.f32.gmra.mxu1 %v588_v0  ;;  %3826 = vmatpush3.msra.mxu0 %v583_v7 }
 0x291   :  { %v581_v10 = vmul.f32 %v4442_v39, %v571_v5  ;;  %3827 = vmatprep.subr.mxu0 %v582_v3  ;;  %708 = vmatprep.mubr.f32.mxu1 %v592_v2 }
 0x292   :  { %3828 = vmatpush3.msra.mxu0 %v582_v3 }
 0x293   :  { %3829 = vmatprep.subr.mxu0 %v581_v10 }
 0x294   :  { %709 = vmatmul.mubr.f32.gmra.mxu1 %v591_v11  ;;  %3830 = vmatpush3.msra.mxu0 %v581_v10 }
 0x295   :  { %3832 = vmatmul.mubr.msk.f32.vlgmr.msra.gmra.mxu0 %vm621_vm2, %v590_v12  ;;  %713 = vmatprep.mubr.f32.mxu1 %v595_v13 }
 0x296   :  { %3834 = vmatprep.mubr.msk.f32.mxu0 %vm621_vm2, %v593_v14 }
 0x298   :  { %714 = vmatmul.mubr.f32.gmra.mxu1 %v594_v15 }
 0x299   :  { %3835 = vmatmul.mubr.msk.f32.gmra.mxu0 %vm621_vm2, %v596_v16  ;;  %3845 = vmatprep.mubr.msk.f32.mxu1 %vm621_vm2, %v978_v57 }
 0x29a   :  { %1088 = vmatprep.mubr.f32.mxu0 %v977_v56 }
 0x29c   :  { %v614_v19 = vpop.permute.xlu1 %613 }
 0x2a0   :  { %v609_v32 = vpop.permute.xlu1 %608 }
 0x34c   :  { %v3691_v17 = vpop.f32.mrf.mxu1 }
 0x34e   :  { %v3692_v20 = vpop.f32.mrf.mxu1 }
 0x34f   :  { %v3693_v26 = vadd.f32 %v3692_v20, %v3691_v17 }
 0x350   :  { %v3694_v23 = vpop.f32.mrf.mxu1 }
 0x351   :  { %v701_v38 = vadd.f32 %v3693_v26, %v604_v27 }
 0x352   :  { %v3695_v28 = vpop.f32.mrf.mxu1 }
 0x353   :  { %v3696_v30 = vadd.f32 %v3695_v28, %v3694_v23 }
 0x354   :  { %v3697_v34 = vpop.f32.mrf.mxu1 }
 0x355   :  { %v3833_v37 = vpop.f32.mrf.mxu0  ;;  %v706_v40 = vadd.f32 %v3696_v30, %v609_v32 }
 0x356   :  { %v3698_v29 = vpop.f32.mrf.mxu1 }
 0x357   :  { %v785_v41 = vpop.f32.mrf.mxu0  ;;  %v791_v42 = vadd.f32 %v3833_v37, %v706_v40  ;;  %v3699_v43 = vadd.f32 %v3698_v29, %v3697_v34 }
 0x358   :  { %v786_v25 = vadd.f32 %v785_v41, %v701_v38  ;;  %v3700_v46 = vpop.f32.mrf.mxu1 }
 0x359   :  { %v3836_v31 = vpop.f32.mrf.mxu0  ;;  %v4569_v47 = vmax.f32 %v791_v42, 0.0  ;;  %v711_v49 = vadd.f32 %v3699_v43, %v614_v19 }
 0x35a   :  { %v4563_v44 = vmax.f32 %v786_v25, 0.0  ;;  %v3701_v50 = vpop.f32.mrf.mxu1 }
 0x35b   :  { %v795_v51 = vpop.f32.mrf.mxu0  ;;  %v3702_v52 = vadd.f32 %v3701_v50, %v3700_v46 }
 0x35c   :  { %872 = vrot.lane.b32.xlu0 %v4563_v44, %s4146_s14  ;;  %936 = vrot.lane.b32.xlu1 %v4563_v44, %s4151_s15  ;;  %v796_v33 = vadd.f32 %v795_v51, %v711_v49 }
 0x35d   :  { %v716_v53 = vadd.f32 %v3702_v52, %v619_v18 }
 0x35e   :  { %v4579_v54 = vmax.f32 %v796_v33, 0.0 }
 0x35f   :  { %v801_v8 = vadd.f32 %v3836_v31, %v716_v53 }
 0x360   :  { %874 = vrot.lane.b32.xlu0 %v4569_v47, %s4146_s14  ;;  %938 = vrot.lane.b32.xlu1 %v4569_v47, %s4151_s15 }
 0x361   :  { %v4589_v55 = vmax.f32 %v801_v8, 0.0 }
 0x364   :  { %854 = vrot.lane.b32.xlu0 %v4569_v47, %s4154_s29  ;;  %918 = vrot.lane.b32.xlu1 %v4569_v47, %s4153_s25 }
 0x368   :  { %876 = vrot.lane.b32.xlu0 %v4579_v54, %s4146_s14  ;;  %940 = vrot.lane.b32.xlu1 %v4579_v54, %s4151_s15 }
 0x36c   :  { %856 = vrot.lane.b32.xlu0 %v4579_v54, %s4154_s29  ;;  %920 = vrot.lane.b32.xlu1 %v4579_v54, %s4153_s25 }
 0x370   :  { %878 = vrot.lane.b32.xlu0 %v4589_v55, %s4146_s14  ;;  %942 = vrot.lane.b32.xlu1 %v4589_v55, %s4151_s15 }
 0x374   :  { %852 = vrot.lane.b32.xlu0 %v4563_v44, %s4154_s29  ;;  %916 = vrot.lane.b32.xlu1 %v4563_v44, %s4153_s25 }
 0x378   :  { %858 = vrot.lane.b32.xlu0 %v4589_v55, %s4154_s29  ;;  %922 = vrot.lane.b32.xlu1 %v4589_v55, %s4153_s25 }
 0x37c   :  { %836 = vrot.lane.b32.xlu0 %v4579_v54, %s4144_s23  ;;  %900 = vrot.lane.b32.xlu1 %v4579_v54, %s4152_s17 }
 0x380   :  { %838 = vrot.lane.b32.xlu0 %v4589_v55, %s4144_s23  ;;  %902 = vrot.lane.b32.xlu1 %v4589_v55, %s4152_s17 }
 0x384   :  { %834 = vrot.lane.b32.xlu0 %v4569_v47, %s4144_s23  ;;  %898 = vrot.lane.b32.xlu1 %v4569_v47, %s4152_s17 }
 0x388   :  { %832 = vrot.lane.b32.xlu0 %v4563_v44, %s4144_s23  ;;  %896 = vrot.lane.b32.xlu1 %v4563_v44, %s4152_s17  ;;  %s4169_s23 = smov 111  }
 0x38c   :  { %816 = vrot.lane.b32.xlu0 %v4579_v54, %s4155_s4  ;;  %818 = vrot.lane.b32.xlu1 %v4589_v55, %s4155_s4 }
 0x390   :  { %812 = vrot.lane.b32.xlu0 %v4563_v44, %s4155_s4  ;;  %814 = vrot.lane.b32.xlu1 %v4569_v47, %s4155_s4 }
 0x394   :  { %960 = vrot.lane.b32.xlu0 %v4579_v54, %s4156_s27  ;;  %962 = vrot.lane.b32.xlu1 %v4589_v55, %s4156_s27 }
 0x398   :  { %956 = vrot.lane.b32.xlu0 %v4563_v44, %s4156_s27  ;;  %958 = vrot.lane.b32.xlu1 %v4569_v47, %s4156_s27  ;;  %s4159_s27 = smov 7  }
 0x39c   :  { %999 = vperm.xlu0 %3912, %v989_v35   ;;  %994 = vperm.xlu1 %3913, %v988_v58  }
 0x3a0   :  { %1009 = vperm.xlu0 %3912, %v991_v9   ;;  %1004 = vperm.xlu1 %3913, %v990_v59  }
 0x3ce   :  { %v873_v6 = vpop.permute.xlu0 %872  ;;  %v937_v60 = vpop.permute.xlu1 %936 }
 0x3cf   :  { %v948_v28 = vsel %vm543_vm3, %v937_v60, 0.0  ;;  %v884_v30 = vsel %vm452_vm4, 0.0, %v873_v6 }
 0x3d0   :  { %v952_v37 = vmul.f32 %v4422_v21, %v948_v28  ;;  %v888_v29 = vmul.f32 %v4438_v36, %v884_v30  ;;  %v894_v28 = vmul.f32 %v4506_v48, %v4579_v54  ;;  %v892_v54 = vmul.f32 %v4506_v48, %v4563_v44 }
 0x3d2   :  { %v875_v61 = vpop.permute.xlu0 %874  ;;  %v939_v62 = vpop.permute.xlu1 %938 }
 0x3d3   :  { %v949_v18 = vsel %vm543_vm3, %v939_v62, 0.0  ;;  %v885_v19 = vsel %vm452_vm4, 0.0, %v875_v61 }
 0x3d4   :  { %v953_v32 = vmul.f32 %v4422_v21, %v949_v18  ;;  %v889_v34 = vmul.f32 %v4438_v36, %v885_v19  ;;  %v895_v19 = vmul.f32 %v4506_v48, %v4589_v55 }
 0x3d6   :  { %v855_v7 = vpop.permute.xlu0 %854  ;;  %v919_v0 = vpop.permute.xlu1 %918 }
 0x3d7   :  { %v865_v49 = vsel %vm425_vm7, 0.0, %v855_v7 }
 0x3d8   :  { %v869_v56 = vmul.f32 %v4463_v1, %v865_v49 }
 0x3da   :  { %v877_v2 = vpop.permute.xlu0 %876  ;;  %v941_v3 = vpop.permute.xlu1 %940 }
 0x3db   :  { %v950_v12 = vsel %vm543_vm3, %v941_v3, 0.0  ;;  %v886_v15 = vsel %vm452_vm4, 0.0, %v877_v2 }
 0x3dc   :  { %v954_v20 = vmul.f32 %v4422_v21, %v950_v12  ;;  %v890_v27 = vmul.f32 %v4438_v36, %v886_v15 }
 0x3de   :  { %v857_v4 = vpop.permute.xlu0 %856  ;;  %v921_v5 = vpop.permute.xlu1 %920 }
 0x3df   :  { %v930_v41 = vsel %vm516_vm6, %v921_v5, 0.0  ;;  %v866_v43 = vsel %vm425_vm7, 0.0, %v857_v4 }
 0x3e0   :  { %v870_v52 = vmul.f32 %v4463_v1, %v866_v43 }
 0x3e2   :  { %v879_v10 = vpop.permute.xlu0 %878  ;;  %v943_v11 = vpop.permute.xlu1 %942 }
 0x3e3   :  { %v887_v13 = vsel %vm452_vm4, 0.0, %v879_v10  ;;  %v951_v14 = vsel %vm543_vm3, %v943_v11, 0.0  ;;  %vm2598_vm3 = vcmask 916480  }
 0x3e4   :  { %v891_v16 = vmul.f32 %v4438_v36, %v887_v13  ;;  %v955_v17 = vmul.f32 %v4422_v21, %v951_v14  ;;  %v929_v21 = vsel %vm516_vm6, %v919_v0, 0.0  ;;  %v934_v36 = vmul.f32 %v4460_v63, %v930_v41 }
 0x3e5   :  { %v933_v53 = vmul.f32 %v4460_v63, %v929_v21  ;;  %v983_v21 = vld [vmem:[#allocation7 + $0x38] sm:$0xff] }
 0x3e6   :  { %v853_v23 = vpop.permute.xlu0 %852  ;;  %3711 = vmatprep.subr.mxu0 %v955_v17  ;;  %v917_v26 = vpop.permute.xlu1 %916 }
 0x3e7   :  { %3712 = vmatpush3.msra.mxu0 %v891_v16  ;;  %v928_v33 = vsel %vm516_vm6, %v917_v26, 0.0  ;;  %v864_v8 = vsel %vm425_vm7, 0.0, %v853_v23 }
 0x3e8   :  { %3713 = vmatprep.subr.mxu0 %v954_v20  ;;  %v932_v57 = vmul.f32 %v4460_v63, %v928_v33  ;;  %v868_v9 = vmul.f32 %v4463_v1, %v864_v8  ;;  %v984_v33 = vld [vmem:[#allocation7 + $0x40] sm:$0xff]  ;;  %v987_v8 = vld [vmem:[#allocation7 + $0x58] sm:$0xff] }
 0x3e9   :  { %3714 = vmatpush3.msra.mxu0 %v890_v27 }
 0x3ea   :  { %v859_v38 = vpop.permute.xlu0 %858  ;;  %3715 = vmatprep.subr.mxu0 %v953_v32  ;;  %v923_v40 = vpop.permute.xlu1 %922  ;;  %v893_v32 = vmul.f32 %v4506_v48, %v4569_v47 }
 0x3eb   :  { %v867_v25 = vsel %vm425_vm7, 0.0, %v859_v38  ;;  %v931_v42 = vsel %vm516_vm6, %v923_v40, 0.0  ;;  %3716 = vmatpush3.msra.mxu0 %v889_v34  ;;  %vm2323_vm6 = vcmask 121856   ;;  %vm2200_vm7 = vcmask 138240  }
 0x3ec   :  { %v871_v46 = vmul.f32 %v4463_v1, %v867_v25  ;;  %v935_v31 = vmul.f32 %v4460_v63, %v931_v42  ;;  %3717 = vmatprep.subr.mxu0 %v952_v37  ;;  %v980_v42 = vld [vmem:[#allocation7 + $0x20] sm:$0xff] }
 0x3ed   :  { %3718 = vmatpush3.msra.mxu0 %v888_v29  ;;  %v976_v29 = vld [vmem:[#allocation7] sm:$0xff] }
 0x3ee   :  { %v837_v50 = vpop.permute.xlu0 %836  ;;  %3719 = vmatprep.subr.mxu0 %v935_v31  ;;  %v901_v51 = vpop.permute.xlu1 %900 }
 0x3ef   :  { %3720 = vmatpush3.msra.mxu0 %v871_v46  ;;  %v910_v59 = vsel %vm489_vm9, %v901_v51, 0.0  ;;  %v846_v61 = vsel %vm398_vm8, 0.0, %v837_v50  ;;  %v982_v50 = vld [vmem:[#allocation7 + $0x30] sm:$0xff]  ;;  %v981_v51 = vld [vmem:[#allocation7 + $0x28] sm:$0xff] }
 0x3f0   :  { %3721 = vmatprep.subr.mxu0 %v934_v36  ;;  %v914_v63 = vmul.f32 %v4482_v24, %v910_v59  ;;  %v850_v2 = vmul.f32 %v4479_v22, %v846_v61 }
 0x3f1   :  { %3722 = vmatpush3.msra.mxu0 %v870_v52  ;;  %v986_v52 = vld [vmem:[#allocation7 + $0x50] sm:$0xff] }
 0x3f2   :  { %v839_v35 = vpop.permute.xlu0 %838  ;;  %3723 = vmatprep.subr.mxu0 %v933_v53  ;;  %v903_v58 = vpop.permute.xlu1 %902  ;;  %v985_v53 = vld [vmem:[#allocation7 + $0x48] sm:$0xff] }
 0x3f3   :  { %v847_v6 = vsel %vm398_vm8, 0.0, %v839_v35  ;;  %v911_v60 = vsel %vm489_vm9, %v903_v58, 0.0  ;;  %3724 = vmatpush3.msra.mxu0 %v869_v56  ;;  %v3646_v35 = vld [vmem:[#allocation9] sm:$0xff]  }
 0x3f4   :  { %v851_v62 = vmul.f32 %v4479_v22, %v847_v6  ;;  %v915_v7 = vmul.f32 %v4482_v24, %v911_v60  ;;  %3725 = vmatprep.subr.mxu0 %v932_v57  ;;  %v3648_v58 = vunpack.c.h.bf16 %v3646_v35 }
 0x3f5   :  { %3726 = vmatpush3.msra.mxu0 %v868_v9  ;;  %v3647_v9 = vunpack.c.l.bf16 %v3646_v35 }
 0x3f6   :  { %v835_v0 = vpop.permute.xlu0 %834  ;;  %3727 = vmatprep.subr.mxu0 %v915_v7  ;;  %v899_v1 = vpop.permute.xlu1 %898 }
 0x3f7   :  { %v845_v3 = vsel %vm398_vm8, 0.0, %v835_v0  ;;  %v909_v4 = vsel %vm489_vm9, %v899_v1, 0.0  ;;  %3728 = vmatpush3.msra.mxu0 %v851_v62 }
 0x3f8   :  { %v849_v5 = vmul.f32 %v4479_v22, %v845_v3  ;;  %v913_v10 = vmul.f32 %v4482_v24, %v909_v4  ;;  %3729 = vmatprep.subr.mxu0 %v914_v63 }
 0x3f9   :  { %3730 = vmatpush3.msra.mxu0 %v850_v2 }
 0x3fa   :  { %v833_v11 = vpop.permute.xlu0 %832  ;;  %3731 = vmatprep.subr.mxu0 %v913_v10  ;;  %v897_v12 = vpop.permute.xlu1 %896 }
 0x3fb   :  { %v844_v13 = vsel %vm398_vm8, 0.0, %v833_v11  ;;  %v908_v14 = vsel %vm489_vm9, %v897_v12, 0.0  ;;  %3732 = vmatpush3.msra.mxu0 %v849_v5  ;;  %vm2660_vm8 = vcmask 908288  }
 0x3fc   :  { %v848_v15 = vmul.f32 %v4479_v22, %v844_v13  ;;  %v912_v16 = vmul.f32 %v4482_v24, %v908_v14 }
 0x3fe   :  { %v817_v17 = vpop.permute.xlu0 %816  ;;  %3733 = vmatprep.subr.mxu0 %v912_v16  ;;  %v819_v18 = vpop.permute.xlu1 %818 }
 0x3ff   :  { %v826_v20 = vsel %vm371_vm10, 0.0, %v817_v17  ;;  %v827_v23 = vsel %vm371_vm10, 0.0, %v819_v18  ;;  %3734 = vmatpush3.msra.mxu0 %v848_v15 }
 0x400   :  { %v831_v26 = vmul.f32 %v4500_v45, %v827_v23  ;;  %3735 = vmatprep.subr.mxu0 %v895_v19  ;;  %v830_v22 = vmul.f32 %v4500_v45, %v826_v20 }
 0x402   :  { %v813_v24 = vpop.permute.xlu0 %812  ;;  %3736 = vmatpush3.msra.mxu0 %v831_v26  ;;  %v815_v27 = vpop.permute.xlu1 %814 }
 0x403   :  { %v824_v30 = vsel %vm371_vm10, 0.0, %v813_v24  ;;  %v825_v55 = vsel %vm371_vm10, 0.0, %v815_v27  ;;  %3737 = vmatprep.subr.mxu0 %v894_v28 }
 0x404   :  { %v829_v34 = vmul.f32 %v4500_v45, %v825_v55  ;;  %3738 = vmatpush3.msra.mxu0 %v830_v22  ;;  %v828_v37 = vmul.f32 %v4500_v45, %v824_v30  ;;  %v979_v45 = vld [vmem:[#allocation7 + $0x18] sm:$0xff] }
 0x405   :  { %3739 = vmatprep.subr.mxu0 %v893_v32 }
 0x406   :  { %v961_v38 = vpop.permute.xlu0 %960  ;;  %3740 = vmatpush3.msra.mxu0 %v829_v34  ;;  %v963_v40 = vpop.permute.xlu1 %962 }
 0x407   :  { %v970_v41 = vsel %vm570_vm5, %v961_v38, 0.0  ;;  %v971_v25 = vsel %vm570_vm5, %v963_v40, 0.0  ;;  %3741 = vmatprep.subr.mxu0 %v892_v54  ;;  %v1550_v38 = vld [vmem:[%s6127_s9 + $0x8] sm:$0xff]  ;;  %v1555_v40 = vld [vmem:[%s6128_s10] sm:$0xff] }
 0x408   :  { %v975_v47 = vmul.f32 %v4442_v39, %v971_v25  ;;  %3742 = vmatpush3.msra.mxu0 %v828_v37  ;;  %v974_v43 = vmul.f32 %v4442_v39, %v970_v41 }
 0x409   :  { %1089 = vmatmul.mubr.f32.vlgmr.msra.gmra.mxu0 %v976_v29  ;;  %v1556_v29 = vld [vmem:[%s6128_s10 + $0x8] sm:$0xff] }
 0x40a   :  { %v957_v46 = vpop.permute.xlu0 %956  ;;  %3837 = vmatprep.subr.mxu1 %v975_v47  ;;  %v959_v48 = vpop.permute.xlu1 %958  ;;  %1093 = vmatprep.mubr.f32.mxu0 %v980_v42 }
 0x40b   :  { %v968_v44 = vsel %vm570_vm5, %v957_v46, 0.0  ;;  %v969_v31 = vsel %vm570_vm5, %v959_v48, 0.0  ;;  %3838 = vmatpush3.msra.mxu1 %v975_v47  ;;  %vm2536_vm5 = vcmask 924672  }
 0x40c   :  { %v973_v49 = vmul.f32 %v4442_v39, %v969_v31  ;;  %3839 = vmatprep.subr.mxu1 %v974_v43  ;;  %v972_v36 = vmul.f32 %v4442_v39, %v968_v44  ;;  %v3653_v39 = vld [vmem:[#allocation9 + $0x8] sm:$0xff]  }
 0x40d   :  { %1094 = vmatmul.mubr.f32.gmra.mxu0 %v979_v45  ;;  %3840 = vmatpush3.msra.mxu1 %v974_v43  ;;  %v3652_v56 = vunpack.c.h.bf16 %v3653_v39  ;;  %v3651_v57 = vunpack.c.l.bf16 %v3653_v39 }
 0x40e   :  { %3841 = vmatprep.subr.mxu1 %v973_v49  ;;  %1098 = vmatprep.mubr.f32.mxu0 %v983_v21  ;;  %v4811_v21 = vld [vmem:[%s6126_s8 + $0x3] ss:$0 sm:$0xff] }
 0x40f   :  { %3842 = vmatpush3.msra.mxu1 %v973_v49  ;;  %v4816_v49 = vld [vmem:[%s6126_s8 + $0x7] ss:$0 sm:$0xff] }
 0x410   :  { %3843 = vmatprep.subr.mxu1 %v972_v36 }
 0x411   :  { %1099 = vmatmul.mubr.f32.gmra.mxu0 %v982_v50  ;;  %3844 = vmatpush3.msra.mxu1 %v972_v36 }
 0x412   :  { %3846 = vmatmul.mubr.msk.f32.vlgmr.msra.gmra.mxu1 %vm621_vm2, %v981_v51  ;;  %1103 = vmatprep.mubr.f32.mxu0 %v986_v52 }
 0x413   :  { %3848 = vmatprep.mubr.msk.f32.mxu1 %vm621_vm2, %v984_v33  ;;  %3851 = vmatprep.subr.mxu1 %v3652_v56 }
 0x414   :  { %3852 = vmatpush3.msra.mxu1 %v3652_v56 }
 0x415   :  { %1104 = vmatmul.mubr.f32.gmra.mxu0 %v985_v53  ;;  %3853 = vmatprep.subr.mxu1 %v3651_v57 }
 0x416   :  { %3849 = vmatmul.mubr.msk.f32.gmra.mxu1 %vm621_vm2, %v987_v8  ;;  %1637 = vmatprep.mubr.f32.mxu0 %v1550_v38  ;;  %v4868_v38 = vld [vmem:[%s6126_s8 + $0x1] ss:$0 sm:$0xff] }
 0x417   :  { %3854 = vmatpush3.msra.mxu1 %v3651_v57  ;;  %v995_v61 = vpop.permute.xlu1 %994  ;;  %v1000_v0 = vpop.permute.xlu0 %999 }
 0x418   :  { %3855 = vmatprep.subr.mxu1 %v3648_v58 }
 0x419   :  { %3856 = vmatpush3.msra.mxu1 %v3648_v58 }
 0x41a   :  { %3857 = vmatprep.subr.mxu1 %v3647_v9 }
 0x41b   :  { %3858 = vmatpush3.msra.mxu1 %v3647_v9  ;;  %v1005_v13 = vpop.permute.xlu1 %1004  ;;  %v1010_v28 = vpop.permute.xlu0 %1009 }
 0x4c9   :  { %v3743_v59 = vpop.f32.mrf.mxu0 }
 0x4cb   :  { %v3744_v6 = vpop.f32.mrf.mxu0 }
 0x4cc   :  { %v3745_v62 = vadd.f32 %v3744_v6, %v3743_v59 }
 0x4cd   :  { %v3746_v60 = vpop.f32.mrf.mxu0 }
 0x4ce   :  { %v1091_v5 = vadd.f32 %v3745_v62, %v995_v61 }
 0x4cf   :  { %v3747_v7 = vpop.f32.mrf.mxu0 }
 0x4d0   :  { %v3748_v63 = vadd.f32 %v3747_v7, %v3746_v60 }
 0x4d1   :  { %v3749_v1 = vpop.f32.mrf.mxu0 }
 0x4d2   :  { %v1096_v2 = vadd.f32 %v3748_v63, %v1000_v0  ;;  %v3847_v3 = vpop.f32.mrf.mxu1 }
 0x4d3   :  { %v3750_v4 = vpop.f32.mrf.mxu0 }
 0x4d4   :  { %v1181_v10 = vadd.f32 %v3847_v3, %v1096_v2  ;;  %v3751_v11 = vadd.f32 %v3750_v4, %v3749_v1  ;;  %v1175_v12 = vpop.f32.mrf.mxu1  ;;  %v4838_v3 = vld [vmem:[%s6126_s8 + $0x6] ss:$0 sm:$0xff] }
 0x4d5   :  { %v1176_v14 = vadd.f32 %v1175_v12, %v1091_v5  ;;  %v3752_v15 = vpop.f32.mrf.mxu0  ;;  %v4844_v5 = vld [vmem:[%s6126_s8 + $0x2] ss:$0 sm:$0xff] }
 0x4d6   :  { %v3850_v16 = vpop.f32.mrf.mxu1  ;;  %v1101_v17 = vadd.f32 %v3751_v11, %v1005_v13  ;;  %v1195_v20 = vmax.f32 %v1181_v10, 0.0 }
 0x4d7   :  { %v1194_v18 = vmax.f32 %v1176_v14, 0.0  ;;  %v3753_v19 = vpop.f32.mrf.mxu0 }
 0x4d8   :  { %v3754_v23 = vadd.f32 %v3753_v19, %v3752_v15  ;;  %v1185_v26 = vpop.f32.mrf.mxu1 }
 0x4d9   :  { %v1186_v22 = vadd.f32 %v1185_v26, %v1101_v17  ;;  %3859 = vmatprep.mubr.msk.f32.mxu1 %vm621_vm2, %v1194_v18 }
 0x4da   :  { %v1106_v24 = vadd.f32 %v3754_v23, %v1010_v28  ;;  %3860 = vmatmul.mubr.msk.f32.vlgmr.msra.gmra.mxu1 %vm621_vm2, %v1195_v20 }
 0x4db   :  { %v1196_v27 = vmax.f32 %v1186_v22, 0.0 }
 0x4dc   :  { %v1191_v30 = vadd.f32 %v3850_v16, %v1106_v24 }
 0x4dd   :  { %3862 = vmatprep.mubr.msk.f32.mxu1 %vm621_vm2, %v1196_v27  ;;  %v4861_v27 = vld [vmem:[%s6126_s8 + $0x5] ss:$0 sm:$0xff] }
 0x4de   :  { %v1197_v55 = vmax.f32 %v1191_v30, 0.0 }
 0x4e0   :  { %3863 = vmatmul.mubr.msk.f32.gmra.mxu1 %vm621_vm2, %v1197_v55 }
 0x59a   :  { %v4727_v32 = vpop.f32.mrf.mxu1 }
 0x59b   :  { %1407 = vrot.lane.b32.xlu0 %v4727_v32, %s4146_s14  ;;  %1497 = vrot.lane.b32.xlu1 %v4727_v32, %s4158_s6 }
 0x59c   :  { %v4737_v34 = vpop.f32.mrf.mxu1 }
 0x59f   :  { %1380 = vrot.lane.b32.xlu0 %v4727_v32, %s4159_s27  ;;  %1470 = vrot.lane.b32.xlu1 %v4727_v32, %s4160_s24 }
 0x5a0   :  { %v4747_v54 = vpop.f32.mrf.mxu1 }
 0x5a2   :  { %v4757_v37 = vpop.f32.mrf.mxu1 }
 0x5a3   :  { %1405 = vrot.lane.b32.xlu0 %v4737_v34, %s4146_s14  ;;  %1495 = vrot.lane.b32.xlu1 %v4737_v34, %s4158_s6 }
 0x5a7   :  { %1378 = vrot.lane.b32.xlu0 %v4737_v34, %s4159_s27  ;;  %1468 = vrot.lane.b32.xlu1 %v4737_v34, %s4160_s24 }
 0x5ab   :  { %1411 = vrot.lane.b32.xlu0 %v4747_v54, %s4146_s14  ;;  %1501 = vrot.lane.b32.xlu1 %v4747_v54, %s4158_s6 }
 0x5af   :  { %1384 = vrot.lane.b32.xlu0 %v4747_v54, %s4159_s27  ;;  %1474 = vrot.lane.b32.xlu1 %v4747_v54, %s4160_s24 }
 0x5b3   :  { %1409 = vrot.lane.b32.xlu0 %v4757_v37, %s4146_s14  ;;  %1499 = vrot.lane.b32.xlu1 %v4757_v37, %s4158_s6 }
 0x5b7   :  { %1357 = vrot.lane.b32.xlu0 %v4747_v54, %s4161_s30  ;;  %1447 = vrot.lane.b32.xlu1 %v4747_v54, %s4152_s17 }
 0x5bb   :  { %1382 = vrot.lane.b32.xlu0 %v4757_v37, %s4159_s27  ;;  %1472 = vrot.lane.b32.xlu1 %v4757_v37, %s4160_s24 }
 0x5bf   :  { %1353 = vrot.lane.b32.xlu0 %v4727_v32, %s4161_s30  ;;  %1443 = vrot.lane.b32.xlu1 %v4727_v32, %s4152_s17 }
 0x5c3   :  { %1355 = vrot.lane.b32.xlu0 %v4757_v37, %s4161_s30  ;;  %1445 = vrot.lane.b32.xlu1 %v4757_v37, %s4152_s17 }
 0x5c7   :  { %1351 = vrot.lane.b32.xlu0 %v4737_v34, %s4161_s30  ;;  %1441 = vrot.lane.b32.xlu1 %v4737_v34, %s4152_s17 }
 0x5cb   :  { %1328 = vrot.lane.b32.xlu0 %v4757_v37, %s4162_s11  ;;  %1330 = vrot.lane.b32.xlu1 %v4747_v54, %s4162_s11 }
 0x5cf   :  { %1324 = vrot.lane.b32.xlu0 %v4737_v34, %s4162_s11  ;;  %1326 = vrot.lane.b32.xlu1 %v4727_v32, %s4162_s11 }
 0x5d3   :  { %1526 = vrot.lane.b32.xlu0 %v4757_v37, %s4163_s2  ;;  %1528 = vrot.lane.b32.xlu1 %v4747_v54, %s4163_s2 }
 0x5d7   :  { %1522 = vrot.lane.b32.xlu0 %v4737_v34, %s4163_s2  ;;  %1524 = vrot.lane.b32.xlu1 %v4727_v32, %s4163_s2 }
 0x5db   :  { %1559 = vperm.xlu0 %3912, %v1555_v40   ;;  %1564 = vperm.xlu1 %3913, %v1556_v29  }
 0x60d   :  { %v1408_v41 = vpop.permute.xlu0 %1407  ;;  %v1498_v25 = vpop.permute.xlu1 %1497 }
 0x60e   :  { %v1509_v56 = vsel %vm1507_vm11, %v1498_v25, 0.0  ;;  %v1418_v58 = vsel %vm452_vm4, 0.0, %v1408_v41 }
 0x60f   :  { %v1519_v60 = vmul.f32 %v4816_v49, %v1509_v56  ;;  %v1428_v63 = vmul.f32 %v4811_v21, %v1418_v58  ;;  %v4889_v56 = vld [vmem:[%s6126_s8] ss:$0 sm:$0xff] }
 0x611   :  { %v1381_v42 = vpop.permute.xlu0 %1380  ;;  %v1471_v47 = vpop.permute.xlu1 %1470 }
 0x612   :  { %v1482_v13 = vsel %vm1480_vm12, %v1471_v47, 0.0  ;;  %v1392_v17 = vsel %vm1390_vm13, 0.0, %v1381_v42 }
 0x613   :  { %v1492_v23 = vmul.f32 %v4838_v3, %v1482_v13  ;;  %v1402_v24 = vmul.f32 %v4844_v5, %v1392_v17 }
 0x615   :  { %v1406_v43 = vpop.permute.xlu0 %1405  ;;  %v1496_v46 = vpop.permute.xlu1 %1495 }
 0x616   :  { %v1508_v6 = vsel %vm1507_vm11, %v1496_v46, 0.0  ;;  %v1417_v61 = vsel %vm452_vm4, 0.0, %v1406_v43 }
 0x617   :  { %v1518_v1 = vmul.f32 %v4816_v49, %v1508_v6  ;;  %v1427_v4 = vmul.f32 %v4811_v21, %v1417_v61 }
 0x619   :  { %v1379_v48 = vpop.permute.xlu0 %1378  ;;  %v1469_v45 = vpop.permute.xlu1 %1468 }
 0x61a   :  { %v1481_v20 = vsel %vm1480_vm12, %v1469_v45, 0.0  ;;  %v1391_v26 = vsel %vm1390_vm13, 0.0, %v1379_v48 }
 0x61b   :  { %v1491_v55 = vmul.f32 %v4838_v3, %v1481_v20  ;;  %v1401_v29 = vmul.f32 %v4844_v5, %v1391_v26 }
 0x61d   :  { %v1412_v44 = vpop.permute.xlu0 %1411  ;;  %v1502_v31 = vpop.permute.xlu1 %1501 }
 0x61e   :  { %v1420_v36 = vsel %vm452_vm4, 0.0, %v1412_v44  ;;  %v1511_v50 = vsel %vm1507_vm11, %v1502_v31, 0.0 }
 0x61f   :  { %v1430_v51 = vmul.f32 %v4811_v21, %v1420_v36  ;;  %v1521_v52 = vmul.f32 %v4816_v49, %v1511_v50 }
 0x621   :  { %v1385_v33 = vpop.permute.xlu0 %1384  ;;  %3771 = vmatprep.subr.mxu0 %v1521_v52  ;;  %v1475_v53 = vpop.permute.xlu1 %1474 }
 0x622   :  { %3772 = vmatpush3.msra.mxu0 %v1430_v51  ;;  %v1484_v0 = vsel %vm1480_vm12, %v1475_v53, 0.0  ;;  %v1394_v2 = vsel %vm1390_vm13, 0.0, %v1385_v33 }
 0x623   :  { %v1494_v10 = vmul.f32 %v4838_v3, %v1484_v0  ;;  %v1404_v14 = vmul.f32 %v4844_v5, %v1394_v2 }
 0x625   :  { %v1410_v8 = vpop.permute.xlu0 %1409  ;;  %v1500_v39 = vpop.permute.xlu1 %1499 }
 0x626   :  { %v1419_v57 = vsel %vm452_vm4, 0.0, %v1410_v8  ;;  %v1510_v35 = vsel %vm1507_vm11, %v1500_v39, 0.0 }
 0x627   :  { %v1429_v9 = vmul.f32 %v4811_v21, %v1419_v57  ;;  %v1520_v59 = vmul.f32 %v4816_v49, %v1510_v35  ;;  %v4894_v57 = vld [vmem:[%s6126_s8 + $0x4] ss:$0 sm:$0xff] }
 0x628   :  { %v1439_v61 = vmul.f32 %v4894_v57, %v4757_v37  ;;  %v4912_v37 = vld [vmem:[%s6126_s8 + $0x8] ss:$0 sm:$0xff] }
 0x629   :  { %v1358_v62 = vpop.permute.xlu0 %1357  ;;  %3773 = vmatprep.subr.mxu0 %v1520_v59  ;;  %v1448_v7 = vpop.permute.xlu1 %1447 }
 0x62a   :  { %3774 = vmatpush3.msra.mxu0 %v1429_v9  ;;  %v1457_v30 = vsel %vm1453_vm14, %v1448_v7, 0.0  ;;  %v1367_v40 = vsel %vm1363_vm15, 0.0, %v1358_v62  ;;  %v1440_v9 = vmul.f32 %v4747_v54, %v4894_v57 }
 0x62b   :  { %3775 = vmatprep.subr.mxu0 %v1519_v60  ;;  %v1467_v41 = vmul.f32 %v4861_v27, %v1457_v30  ;;  %v1377_v47 = vmul.f32 %v4868_v38, %v1367_v40 }
 0x62c   :  { %3776 = vmatpush3.msra.mxu0 %v1428_v63 }
 0x62d   :  { %v1383_v11 = vpop.permute.xlu0 %1382  ;;  %3777 = vmatprep.subr.mxu0 %v1518_v1  ;;  %v1473_v12 = vpop.permute.xlu1 %1472  ;;  %v1438_v1 = vmul.f32 %v4727_v32, %v4894_v57  ;;  %v1549_v32 = vld [vmem:[%s6127_s9] sm:$0xff] }
 0x62e   :  { %v1393_v15 = vsel %vm1390_vm13, 0.0, %v1383_v11  ;;  %v1483_v16 = vsel %vm1480_vm12, %v1473_v12, 0.0  ;;  %3778 = vmatpush3.msra.mxu0 %v1427_v4  ;;  %v1437_v4 = vmul.f32 %v4894_v57, %v4737_v34 }
 0x62f   :  { %v1403_v18 = vmul.f32 %v4844_v5, %v1393_v15  ;;  %v1493_v19 = vmul.f32 %v4838_v3, %v1483_v16  ;;  %3779 = vmatprep.subr.mxu0 %v1494_v10  ;;  %v1553_v15 = vld [vmem:[%s6127_s9 + $0x20] sm:$0xff] }
 0x630   :  { %3780 = vmatpush3.msra.mxu0 %v1404_v14 }
 0x631   :  { %v1354_v28 = vpop.permute.xlu0 %1353  ;;  %3781 = vmatprep.subr.mxu0 %v1493_v19  ;;  %v1444_v22 = vpop.permute.xlu1 %1443  ;;  %v1552_v19 = vld [vmem:[%s6127_s9 + $0x18] sm:$0xff] }
 0x632   :  { %3782 = vmatpush3.msra.mxu0 %v1403_v18  ;;  %v1455_v43 = vsel %vm1453_vm14, %v1444_v22, 0.0  ;;  %v1365_v45 = vsel %vm1363_vm15, 0.0, %v1354_v28 }
 0x633   :  { %3783 = vmatprep.subr.mxu0 %v1492_v23  ;;  %v1465_v36 = vmul.f32 %v4861_v27, %v1455_v43  ;;  %v1375_v52 = vmul.f32 %v4868_v38, %v1365_v45  ;;  %v1551_v23 = vld [vmem:[%s6127_s9 + $0x10] sm:$0xff] }
 0x634   :  { %3784 = vmatpush3.msra.mxu0 %v1402_v24  ;;  %v1554_v24 = vld [vmem:[%s6127_s9 + $0x28] sm:$0xff] }
 0x635   :  { %v1356_v25 = vpop.permute.xlu0 %1355  ;;  %3785 = vmatprep.subr.mxu0 %v1491_v55  ;;  %v1446_v42 = vpop.permute.xlu1 %1445 }
 0x636   :  { %v1366_v46 = vsel %vm1363_vm15, 0.0, %v1356_v25  ;;  %v1456_v48 = vsel %vm1453_vm14, %v1446_v42, 0.0  ;;  %3786 = vmatpush3.msra.mxu0 %v1401_v29  ;;  %v6142_v29 = vmov 0.0  }
 0x637   :  { %v1376_v44 = vmul.f32 %v4868_v38, %v1366_v46  ;;  %v1466_v31 = vmul.f32 %v4861_v27, %v1456_v48  ;;  %3787 = vmatprep.subr.mxu0 %v1467_v41  ;;  %1832 = vmatprep.subr.mxu1 %v6142_v29 }
 0x638   :  { %3788 = vmatpush3.msra.mxu0 %v1377_v47 }
 0x639   :  { %v1352_v50 = vpop.permute.xlu0 %1351  ;;  %3789 = vmatprep.subr.mxu0 %v1466_v31  ;;  %v1442_v51 = vpop.permute.xlu1 %1441 }
 0x63a   :  { %v1364_v33 = vsel %vm1363_vm15, 0.0, %v1352_v50  ;;  %v1454_v53 = vsel %vm1453_vm14, %v1442_v51, 0.0  ;;  %3790 = vmatpush3.msra.mxu0 %v1376_v44 }
 0x63b   :  { %v1374_v8 = vmul.f32 %v4868_v38, %v1364_v33  ;;  %v1464_v39 = vmul.f32 %v4861_v27, %v1454_v53  ;;  %3791 = vmatprep.subr.mxu0 %v1465_v36  ;;  %v1813_v33 = vld [vmem:[%s6130_s12] sm:$0xff]  ;;  %v1939_v53 = vld [vmem:[#allocation12 + $0xf0] sm:$0xff] }
 0x63c   :  { %3792 = vmatpush3.msra.mxu0 %v1375_v52  ;;  %v1810_v52 = vld [vmem:[#allocation10 + $0x8] sm:$0xff] }
 0x63d   :  { %v1329_v35 = vpop.permute.xlu0 %1328  ;;  %3793 = vmatprep.subr.mxu0 %v1464_v39  ;;  %v1331_v58 = vpop.permute.xlu1 %1330  ;;  %v2002_v39 = vunpack.c.h.bf16 %v1939_v53 }
 0x63e   :  { %v1339_v59 = vsel %vm1336_vm0, 0.0, %v1329_v35  ;;  %v1340_v6 = vsel %vm1336_vm0, 0.0, %v1331_v58  ;;  %3794 = vmatpush3.msra.mxu0 %v1374_v8  ;;  %v2001_v8 = vunpack.c.l.bf16 %v1939_v53  ;;  %v1937_v35 = vld [vmem:[#allocation12 + $0xe0] sm:$0xff]  ;;  %v1935_v58 = vld [vmem:[#allocation12 + $0xd0] sm:$0xff] }
 0x63f   :  { %v1350_v60 = vmul.f32 %v4889_v56, %v1340_v6  ;;  %3795 = vmatprep.subr.mxu0 %v1440_v9  ;;  %v1349_v62 = vmul.f32 %v4889_v56, %v1339_v59  ;;  %v1814_v9 = vld [vmem:[%s6130_s12 + $0x8] sm:$0xff]  ;;  %v1997_v59 = vunpack.c.l.bf16 %v1937_v35  ;;  %v1998_v6 = vunpack.c.h.bf16 %v1937_v35  ;;  %s4165_s12 = smov 112  }
 0x641   :  { %v1325_v7 = vpop.permute.xlu0 %1324  ;;  %3796 = vmatpush3.msra.mxu0 %v1350_v60  ;;  %v1327_v63 = vpop.permute.xlu1 %1326  ;;  %v1933_v60 = vld [vmem:[#allocation12 + $0xc0] sm:$0xff] }
 0x642   :  { %v1337_v0 = vsel %vm1336_vm0, 0.0, %v1325_v7  ;;  %v1338_v54 = vsel %vm1336_vm0, 0.0, %v1327_v63  ;;  %3797 = vmatprep.subr.mxu0 %v1439_v61  ;;  %v1994_v61 = vunpack.c.h.bf16 %v1935_v58  ;;  %v1931_v7 = vld [vmem:[#allocation12 + $0xb0] sm:$0xff]  ;;  %v1990_v63 = vunpack.c.h.bf16 %v1933_v60 }
 0x643   :  { %v1348_v2 = vmul.f32 %v4889_v56, %v1338_v54  ;;  %3798 = vmatpush3.msra.mxu0 %v1349_v62  ;;  %v1347_v10 = vmul.f32 %v4889_v56, %v1337_v0  ;;  %v1993_v62 = vunpack.c.l.bf16 %v1935_v58  ;;  %v1989_v0 = vunpack.c.l.bf16 %v1933_v60  ;;  %v1929_v54 = vld [vmem:[#allocation12 + $0xa0] sm:$0xff] }
 0x644   :  { %3799 = vmatprep.subr.mxu0 %v1438_v1  ;;  %v1986_v1 = vunpack.c.h.bf16 %v1931_v7 }
 0x645   :  { %v1527_v11 = vpop.permute.xlu0 %1526  ;;  %v1529_v12 = vpop.permute.xlu1 %1528  ;;  %3800 = vmatpush3.msra.mxu0 %v1348_v2  ;;  %v1985_v2 = vunpack.c.l.bf16 %v1931_v7 }
 0x646   :  { %v1537_v13 = vsel %vm1534_vm1, %v1527_v11, 0.0  ;;  %v1538_v14 = vsel %vm1534_vm1, %v1529_v12, 0.0  ;;  %3801 = vmatprep.subr.mxu0 %v1437_v4  ;;  %v1927_v4 = vld [vmem:[#allocation12 + $0x90] sm:$0xff]  ;;  %v1981_v11 = vunpack.c.l.bf16 %v1929_v54  ;;  %v1925_v12 = vld [vmem:[#allocation12 + $0x80] sm:$0xff] }
 0x647   :  { %v1548_v34 = vmul.f32 %v4912_v37, %v1538_v14  ;;  %3802 = vmatpush3.msra.mxu0 %v1347_v10  ;;  %v1547_v16 = vmul.f32 %v4912_v37, %v1537_v13  ;;  %v1982_v10 = vunpack.c.h.bf16 %v1929_v54  ;;  %v1977_v13 = vunpack.c.l.bf16 %v1927_v4  ;;  %v1923_v14 = vld [vmem:[#allocation12 + $0x70] sm:$0xff] }
 0x648   :  { %1638 = vmatmul.mubr.f32.vlgmr.msra.gmra.mxu0 %v1549_v32  ;;  %v1978_v32 = vunpack.c.h.bf16 %v1927_v4 }
 0x649   :  { %v1523_v17 = vpop.permute.xlu0 %1522  ;;  %v1525_v18 = vpop.permute.xlu1 %1524  ;;  %3865 = vmatprep.subr.mxu0 %v1548_v34  ;;  %1642 = vmatprep.mubr.f32.mxu0 %v1553_v15  ;;  %v1974_v15 = vunpack.c.h.bf16 %v1925_v12 }
 0x64a   :  { %v1536_v20 = vsel %vm1534_vm1, %v1525_v18, 0.0  ;;  %3866 = vmatpush3.msra.mxu0 %v1548_v34  ;;  %v1535_v26 = vsel %vm1534_vm1, %v1523_v17, 0.0  ;;  %v1973_v34 = vunpack.c.l.bf16 %v1925_v12  ;;  %v1970_v17 = vunpack.c.h.bf16 %v1923_v14 }
 0x64b   :  { %v1546_v28 = vmul.f32 %v4912_v37, %v1536_v20  ;;  %3867 = vmatprep.subr.mxu0 %v1547_v16  ;;  %v1545_v22 = vmul.f32 %v4912_v37, %v1535_v26  ;;  %v1969_v18 = vunpack.c.l.bf16 %v1923_v14  ;;  %v1917_v26 = vld [vmem:[#allocation12 + $0x40] sm:$0xff] }
 0x64c   :  { %1643 = vmatmul.mubr.f32.gmra.mxu0 %v1552_v19  ;;  %v1919_v19 = vld [vmem:[#allocation12 + $0x50] sm:$0xff] }
 0x64d   :  { %3868 = vmatpush3.msra.mxu0 %v1547_v16  ;;  %3873 = vmatprep.mubr.msk.f32.mxu0 %vm621_vm2, %v1551_v23  ;;  %v1921_v16 = vld [vmem:[#allocation12 + $0x60] sm:$0xff] }
 0x64e   :  { %3869 = vmatprep.subr.mxu0 %v1546_v28  ;;  %v1966_v20 = vunpack.c.h.bf16 %v1921_v16  ;;  %v1965_v23 = vunpack.c.l.bf16 %v1921_v16 }
 0x64f   :  { %3870 = vmatpush3.msra.mxu0 %v1546_v28  ;;  %v1962_v28 = vunpack.c.h.bf16 %v1919_v19 }
 0x650   :  { %3871 = vmatprep.subr.mxu0 %v1545_v22 }
 0x651   :  { %3872 = vmatpush3.msra.mxu0 %v1545_v22  ;;  %v1961_v22 = vunpack.c.l.bf16 %v1919_v19 }
 0x652   :  { %3874 = vmatmul.mubr.msk.f32.vlgmr.msra.gmra.mxu0 %vm621_vm2, %v1554_v24  ;;  %vm1825_vm2 = vcmask 130048   ;;  %2005 = vmatprep.subr.mxu0 %v2002_v39  ;;  %v1915_v24 = vld [vmem:[#allocation12 + $0x30] sm:$0xff] }
 0x653   :  { %2069 = vmatprep.mubr.f32.mxu0 %v6142_v29  ;;  %3632 = vmatprep.mubr.msk.f32.mxu1 %vm1825_vm2, %v1810_v52 }
 0x654   :  { %2006 = vmatpush1.msra.mxu0 %v2001_v8 }
 0x655   :  { %2007 = vmatprep.subr.mxu0 %v1998_v6 }
 0x656   :  { %v1565_v47 = vpop.permute.xlu1 %1564  ;;  %v1560_v46 = vpop.permute.xlu0 %1559  ;;  %2008 = vmatpush1.msra.mxu0 %v1997_v59 }
 0x657   :  { %2009 = vmatprep.subr.mxu0 %v1994_v61 }
 0x658   :  { %2010 = vmatpush1.msra.mxu0 %v1993_v62 }
 0x659   :  { %2011 = vmatprep.subr.mxu0 %v1990_v63 }
 0x65a   :  { %2012 = vmatpush1.msra.mxu0 %v1989_v0 }
 0x65b   :  { %2013 = vmatprep.subr.mxu0 %v1986_v1 }
 0x65c   :  { %2014 = vmatpush1.msra.mxu0 %v1985_v2 }
 0x65d   :  { %2015 = vmatprep.subr.mxu0 %v1982_v10 }
 0x65e   :  { %2016 = vmatpush1.msra.mxu0 %v1981_v11 }
 0x65f   :  { %2017 = vmatprep.subr.mxu0 %v1978_v32 }
 0x660   :  { %2018 = vmatpush1.msra.mxu0 %v1977_v13 }
 0x661   :  { %2019 = vmatprep.subr.mxu0 %v1974_v15 }
 0x662   :  { %2020 = vmatpush1.msra.mxu0 %v1973_v34 }
 0x663   :  { %2021 = vmatprep.subr.mxu0 %v1970_v17 }
 0x664   :  { %2022 = vmatpush1.msra.mxu0 %v1969_v18 }
 0x665   :  { %2023 = vmatprep.subr.mxu0 %v1966_v20  ;;  %v1940_v20 = vld [vmem:[#allocation12 + $0xf8] sm:$0xff] }
 0x666   :  { %2024 = vmatpush1.msra.mxu0 %v1965_v23 }
 0x667   :  { %2025 = vmatprep.subr.mxu0 %v1962_v28  ;;  %v2004_v28 = vunpack.c.h.bf16 %v1940_v20 }
 0x668   :  { %2026 = vmatpush1.msra.mxu0 %v1961_v22 }
 0x708   :  { %v3803_v30 = vpop.f32.mrf.mxu0 }
 0x70a   :  { %v3804_v55 = vpop.f32.mrf.mxu0 }
 0x70b   :  { %v3805_v25 = vadd.f32 %v3804_v55, %v3803_v30  ;;  %v1958_v30 = vunpack.c.h.bf16 %v1917_v26  ;;  %v1957_v55 = vunpack.c.l.bf16 %v1917_v26  ;;  %v1938_v26 = vld [vmem:[#allocation12 + $0xe8] sm:$0xff] }
 0x70c   :  { %v3806_v40 = vpop.f32.mrf.mxu0 }
 0x70d   :  { %v1640_v44 = vadd.f32 %v3805_v25, %v1560_v46  ;;  %v1953_v25 = vunpack.c.l.bf16 %v1915_v24  ;;  %2027 = vmatprep.subr.mxu0 %v1958_v30  ;;  %v2003_v30 = vunpack.c.l.bf16 %v1940_v20 }
 0x70e   :  { %v3807_v41 = vpop.f32.mrf.mxu0  ;;  %2028 = vmatpush1.msra.mxu0 %v1957_v55  ;;  %v1936_v55 = vld [vmem:[#allocation12 + $0xd8] sm:$0xff] }
 0x70f   :  { %v3808_v42 = vadd.f32 %v3807_v41, %v3806_v40  ;;  %v1913_v40 = vld [vmem:[#allocation12 + $0x20] sm:$0xff]  ;;  %v1954_v41 = vunpack.c.h.bf16 %v1915_v24 }
 0x710   :  { %v1809_v24 = vld [vmem:[#allocation10] sm:$0xff] }
 0x711   :  { %v1645_v43 = vadd.f32 %v3808_v42, %v1565_v47  ;;  %v1950_v42 = vunpack.c.h.bf16 %v1913_v40  ;;  %v1949_v47 = vunpack.c.l.bf16 %v1913_v40  ;;  %2029 = vmatprep.subr.mxu0 %v1954_v41  ;;  %v2000_v40 = vunpack.c.h.bf16 %v1938_v26 }
 0x712   :  { %v3875_v48 = vpop.f32.mrf.mxu0  ;;  %2030 = vmatpush1.msra.mxu0 %v1953_v25  ;;  %v1999_v41 = vunpack.c.l.bf16 %v1938_v26  ;;  %v1934_v25 = vld [vmem:[#allocation12 + $0xc8] sm:$0xff] }
 0x713   :  { %v1720_v45 = vadd.f32 %v3875_v48, %v1645_v43  ;;  %2031 = vmatprep.subr.mxu0 %v1950_v42  ;;  %v1996_v42 = vunpack.c.h.bf16 %v1936_v55 }
 0x714   :  { %v1714_v31 = vpop.f32.mrf.mxu0  ;;  %2032 = vmatpush1.msra.mxu0 %v1949_v47  ;;  %v1811_v47 = vld [vmem:[#allocation10 + $0x10] sm:$0xff] }
 0x715   :  { %v4944_v36 = vmax.f32 %v1720_v45, 0.0  ;;  %v1715_v50 = vadd.f32 %v1714_v31, %v1640_v44 }
 0x717   :  { %v4946_v51 = vmax.f32 %v1715_v50, 0.0  ;;  %1791 = vrot.lane.b32.xlu1 %v4944_v36, %s4158_s6  ;;  %v1768_v61 = vmul.f32 %v4894_v57, %v4944_v36 }
 0x719   :  { %1789 = vrot.lane.b32.xlu0 %v4946_v51, %s4158_s6  ;;  %v1767_v63 = vmul.f32 %v4894_v57, %v4946_v51 }
 0x71b   :  { %1781 = vrot.lane.b32.xlu1 %v4944_v36, %s4160_s24 }
 0x71d   :  { %1779 = vrot.lane.b32.xlu0 %v4946_v51, %s4160_s24 }
 0x71f   :  { %1771 = vrot.lane.b32.xlu1 %v4944_v36, %s4152_s17 }
 0x721   :  { %1769 = vrot.lane.b32.xlu0 %v4946_v51, %s4152_s17 }
 0x723   :  { %1759 = vrot.lane.b32.xlu1 %v4944_v36, %s4146_s14 }
 0x725   :  { %1757 = vrot.lane.b32.xlu0 %v4946_v51, %s4146_s14 }
 0x727   :  { %1749 = vrot.lane.b32.xlu1 %v4944_v36, %s4159_s27 }
 0x729   :  { %1747 = vrot.lane.b32.xlu0 %v4946_v51, %s4159_s27 }
 0x72b   :  { %1739 = vrot.lane.b32.xlu1 %v4944_v36, %s4161_s30 }
 0x72d   :  { %1737 = vrot.lane.b32.xlu0 %v4946_v51, %s4161_s30  ;;  %s4166_s30 = smov 113  }
 0x72f   :  { %1729 = vrot.lane.b32.xlu1 %v4944_v36, %s4162_s11 }
 0x731   :  { %1727 = vrot.lane.b32.xlu0 %v4946_v51, %s4162_s11  ;;  %s4167_s11 = smov 15  }
 0x733   :  { %1801 = vrot.lane.b32.xlu1 %v4944_v36, %s4163_s2 }
 0x735   :  { %1799 = vrot.lane.b32.xlu0 %v4946_v51, %s4163_s2  ;;  %s4168_s2 = smov 17  }
 0x737   :  { %1817 = vperm.xlu1 %3913, %v1813_v33  }
 0x739   :  { %1822 = vperm.xlu0 %3912, %v1814_v9  }
 0x789   :  { %v1792_v43 = vpop.permute.xlu1 %1791 }
 0x78a   :  { %v1796_v46 = vsel %vm1507_vm11, %v1792_v43, 0.0  ;;  %v1995_v43 = vunpack.c.l.bf16 %v1936_v55 }
 0x78b   :  { %v1798_v48 = vmul.f32 %v4816_v49, %v1796_v46  ;;  %v1790_v45 = vpop.permute.xlu0 %1789  ;;  %v1992_v46 = vunpack.c.h.bf16 %v1934_v25 }
 0x78c   :  { %v1795_v44 = vsel %vm1507_vm11, %v1790_v45, 0.0  ;;  %v1930_v45 = vld [vmem:[#allocation12 + $0xa8] sm:$0xff] }
 0x78d   :  { %v1797_v31 = vmul.f32 %v4816_v49, %v1795_v44  ;;  %1833 = vmatpush1.msra.mxu1 %v1798_v48  ;;  %v1782_v50 = vpop.permute.xlu1 %1781  ;;  %v1991_v48 = vunpack.c.l.bf16 %v1934_v25 }
 0x78e   :  { %v1786_v52 = vsel %vm1480_vm12, %v1782_v50, 0.0  ;;  %1834 = vmatprep.subr.mxu1 %v6142_v29  ;;  %v1928_v50 = vld [vmem:[#allocation12 + $0x98] sm:$0xff] }
 0x78f   :  { %v1788_v33 = vmul.f32 %v4838_v3, %v1786_v52  ;;  %v1780_v53 = vpop.permute.xlu0 %1779  ;;  %1835 = vmatpush1.msra.mxu1 %v1797_v31  ;;  %v1984_v52 = vunpack.c.h.bf16 %v1930_v45 }
 0x790   :  { %v1785_v8 = vsel %vm1480_vm12, %v1780_v53, 0.0  ;;  %1836 = vmatprep.subr.mxu1 %v6142_v29  ;;  %v1926_v53 = vld [vmem:[#allocation12 + $0x88] sm:$0xff] }
 0x791   :  { %v1787_v39 = vmul.f32 %v4838_v3, %v1785_v8  ;;  %v1772_v35 = vpop.permute.xlu1 %1771  ;;  %1837 = vmatpush1.msra.mxu1 %v1788_v33  ;;  %v1983_v33 = vunpack.c.l.bf16 %v1930_v45  ;;  %v1980_v8 = vunpack.c.h.bf16 %v1928_v50 }
 0x792   :  { %v1776_v49 = vsel %vm1453_vm14, %v1772_v35, 0.0  ;;  %1838 = vmatprep.subr.mxu1 %v6142_v29  ;;  %v1924_v35 = vld [vmem:[#allocation12 + $0x78] sm:$0xff] }
 0x793   :  { %v1778_v58 = vmul.f32 %v4861_v27, %v1776_v49  ;;  %v1770_v9 = vpop.permute.xlu0 %1769  ;;  %1839 = vmatpush1.msra.mxu1 %v1787_v39  ;;  %v1979_v39 = vunpack.c.l.bf16 %v1928_v50  ;;  %v1976_v49 = vunpack.c.h.bf16 %v1926_v53  ;;  %v2711_v50 = vld [vmem:[%s6134_s16 + $0x8] sm:$0xff] }
 0x794   :  { %v1775_v59 = vsel %vm1453_vm14, %v1770_v9, 0.0  ;;  %1840 = vmatprep.subr.mxu1 %v6142_v29  ;;  %v1922_v9 = vld [vmem:[#allocation12 + $0x68] sm:$0xff] }
 0x795   :  { %v1777_v6 = vmul.f32 %v4861_v27, %v1775_v59  ;;  %v1760_v60 = vpop.permute.xlu1 %1759  ;;  %1841 = vmatpush1.msra.mxu1 %v1778_v58  ;;  %v1975_v58 = vunpack.c.l.bf16 %v1926_v53  ;;  %v1972_v59 = vunpack.c.h.bf16 %v1924_v35 }
 0x796   :  { %1842 = vmatprep.subr.mxu1 %v6142_v29  ;;  %v1764_v62 = vsel %vm452_vm4, 0.0, %v1760_v60  ;;  %v1920_v60 = vld [vmem:[#allocation12 + $0x58] sm:$0xff] }
 0x797   :  { %v1758_v3 = vpop.permute.xlu0 %1757  ;;  %1843 = vmatpush1.msra.mxu1 %v1777_v6  ;;  %v1766_v0 = vmul.f32 %v4811_v21, %v1764_v62  ;;  %v1971_v6 = vunpack.c.l.bf16 %v1924_v35  ;;  %v1918_v62 = vld [vmem:[#allocation12 + $0x48] sm:$0xff] }
 0x798   :  { %1844 = vmatprep.subr.mxu1 %v6142_v29  ;;  %v1763_v27 = vsel %vm452_vm4, 0.0, %v1758_v3  ;;  %v1968_v3 = vunpack.c.h.bf16 %v1922_v9 }
 0x799   :  { %v1750_v7 = vpop.permute.xlu1 %1749  ;;  %1845 = vmatpush1.msra.mxu1 %v1768_v61  ;;  %v1765_v36 = vmul.f32 %v4811_v21, %v1763_v27  ;;  %v1967_v61 = vunpack.c.l.bf16 %v1922_v9  ;;  %v1916_v27 = vld [vmem:[#allocation12 + $0x38] sm:$0xff] }
 0x79a   :  { %1846 = vmatprep.subr.mxu1 %v6142_v29  ;;  %v1754_v1 = vsel %vm1390_vm13, 0.0, %v1750_v7  ;;  %v1964_v7 = vunpack.c.h.bf16 %v1920_v60 }
 0x79b   :  { %v1748_v54 = vpop.permute.xlu0 %1747  ;;  %1847 = vmatpush1.msra.mxu1 %v1767_v63  ;;  %v1756_v57 = vmul.f32 %v4844_v5, %v1754_v1  ;;  %v1963_v63 = vunpack.c.l.bf16 %v1920_v60  ;;  %v1914_v1 = vld [vmem:[#allocation12 + $0x28] sm:$0xff] }
 0x79c   :  { %1848 = vmatprep.subr.mxu1 %v6142_v29  ;;  %v1753_v4 = vsel %vm1390_vm13, 0.0, %v1748_v54  ;;  %v1959_v54 = vunpack.c.l.bf16 %v1918_v62 }
 0x79d   :  { %v1740_v2 = vpop.permute.xlu1 %1739  ;;  %1849 = vmatpush1.msra.mxu1 %v1766_v0  ;;  %v1755_v11 = vmul.f32 %v4844_v5, %v1753_v4  ;;  %v1960_v0 = vunpack.c.h.bf16 %v1918_v62  ;;  %v1952_v4 = vunpack.c.h.bf16 %v1914_v1 }
 0x79e   :  { %1850 = vmatprep.subr.mxu1 %v6142_v29  ;;  %v1744_v10 = vsel %vm1363_vm15, 0.0, %v1740_v2  ;;  %v1955_v2 = vunpack.c.l.bf16 %v1916_v27 }
 0x79f   :  { %v1738_v51 = vpop.permute.xlu0 %1737  ;;  %1851 = vmatpush1.msra.mxu1 %v1765_v36  ;;  %v1746_v32 = vmul.f32 %v4868_v38, %v1744_v10  ;;  %v1956_v36 = vunpack.c.h.bf16 %v1916_v27  ;;  %v1912_v10 = vld [vmem:[#allocation12 + $0x18] sm:$0xff] }
 0x7a0   :  { %1852 = vmatprep.subr.mxu1 %v6142_v29  ;;  %v1743_v21 = vsel %vm1363_vm15, 0.0, %v1738_v51  ;;  %v1911_v51 = vld [vmem:[#allocation12 + $0x10] sm:$0xff] }
 0x7a1   :  { %v1730_v12 = vpop.permute.xlu1 %1729  ;;  %1853 = vmatpush1.msra.mxu1 %v1756_v57  ;;  %v1745_v15 = vmul.f32 %v4868_v38, %v1743_v21  ;;  %v1951_v57 = vunpack.c.l.bf16 %v1914_v1  ;;  %v1945_v21 = vunpack.c.l.bf16 %v1911_v51 }
 0x7a2   :  { %1854 = vmatprep.subr.mxu1 %v6142_v29  ;;  %v1734_v14 = vsel %vm1336_vm0, 0.0, %v1730_v12  ;;  %v1948_v12 = vunpack.c.h.bf16 %v1912_v10 }
 0x7a3   :  { %v1728_v13 = vpop.permute.xlu0 %1727  ;;  %1855 = vmatpush1.msra.mxu1 %v1755_v11  ;;  %v1736_v16 = vmul.f32 %v4889_v56, %v1734_v14  ;;  %v1946_v11 = vunpack.c.h.bf16 %v1911_v51  ;;  %v1910_v14 = vld [vmem:[#allocation12 + $0x8] sm:$0xff]  ;;  %v2218_v51 = vlaneseq }
 0x7a4   :  { %1856 = vmatprep.subr.mxu1 %v6142_v29  ;;  %v1733_v5 = vsel %vm1336_vm0, 0.0, %v1728_v13  ;;  %v1909_v13 = vld [vmem:[#allocation12] sm:$0xff] }
 0x7a5   :  { %v1802_v34 = vpop.permute.xlu1 %1801  ;;  %1857 = vmatpush1.msra.mxu1 %v1746_v32  ;;  %v1735_v19 = vmul.f32 %v4889_v56, %v1733_v5  ;;  %v1812_v56 = vld [vmem:[#allocation10 + $0x18] sm:$0xff]  ;;  %v1947_v32 = vunpack.c.l.bf16 %v1912_v10  ;;  %2033 = vmatprep.subr.mxu0 %v1946_v11  ;;  %v1941_v5 = vunpack.c.l.bf16 %v1909_v13 }
 0x7a6   :  { %1858 = vmatprep.subr.mxu1 %v6142_v29  ;;  %v1806_v18 = vsel %vm1534_vm1, %v1802_v34, 0.0  ;;  %v1944_v34 = vunpack.c.h.bf16 %v1910_v14  ;;  %2034 = vmatpush1.msra.mxu0 %v1945_v21 }
 0x7a7   :  { %v1800_v17 = vpop.permute.xlu0 %1799  ;;  %1859 = vmatpush1.msra.mxu1 %v1745_v15  ;;  %v1808_v23 = vmul.f32 %v4912_v37, %v1806_v18  ;;  %v1942_v15 = vunpack.c.h.bf16 %v1909_v13 }
 0x7a8   :  { %1860 = vmatprep.subr.mxu1 %v6142_v29  ;;  %v1805_v38 = vsel %vm1534_vm1, %v1800_v17, 0.0 }
 0x7a9   :  { %1861 = vmatpush1.msra.mxu1 %v1736_v16  ;;  %v1807_v22 = vmul.f32 %v4912_v37, %v1805_v38  ;;  %v1932_v37 = vld [vmem:[#allocation12 + $0xb8] sm:$0xff]  ;;  %v1943_v16 = vunpack.c.l.bf16 %v1910_v14  ;;  %2035 = vmatprep.subr.mxu0 %v1942_v15 }
 0x7aa   :  { %1862 = vmatprep.subr.mxu1 %v6142_v29  ;;  %v1988_v44 = vunpack.c.h.bf16 %v1932_v37  ;;  %v1987_v31 = vunpack.c.l.bf16 %v1932_v37  ;;  %2036 = vmatpush1.msra.mxu0 %v1941_v5  ;;  %v2707_v37 = vld [vmem:[#allocation15 + $0x8] sm:$0xff] }
 0x7ab   :  { %1863 = vmatpush1.msra.mxu1 %v1735_v19 }
 0x7ac   :  { %1892 = vmatprep.subr.mxu1 %v6142_v29 }
 0x7ad   :  { %1893 = vmatpush2.msra.mxu1 %v1808_v23 }
 0x7ae   :  { %1894 = vmatprep.subr.mxu1 %v6142_v29 }
 0x7af   :  { %1895 = vmatpush2.msra.mxu1 %v1807_v22 }
 0x7b0   :  { %1897 = vmatmul.mubr.f32.vlgmr.msra.gmra.mxu1 %v1809_v24  ;;  %2082 = vmatprep.subr.mxu1 %v2004_v28 }
 0x7b1   :  { %3633 = vmatprep.mubr.msk.f32.mxu1 %vm1825_vm2, %v1812_v56  ;;  %2083 = vmatpush1.msra.mxu1 %v2003_v30 }
 0x7b2   :  { %2084 = vmatprep.subr.mxu1 %v2000_v40  ;;  %v1818_v17 = vpop.permute.xlu1 %1817 }
 0x7b3   :  { %2085 = vmatpush1.msra.mxu1 %v1999_v41 }
 0x7b4   :  { %1902 = vmatmul.mubr.f32.gmra.mxu1 %v1811_v47  ;;  %2086 = vmatprep.subr.mxu1 %v1996_v42  ;;  %v1823_v23 = vpop.permute.xlu0 %1822 }
 0x7b5   :  { %2087 = vmatpush1.msra.mxu1 %v1995_v43  ;;  %2146 = vmatprep.mubr.f32.mxu1 %v6142_v29 }
 0x7b6   :  { %2088 = vmatprep.subr.mxu1 %v1992_v46 }
 0x7b7   :  { %2089 = vmatpush1.msra.mxu1 %v1991_v48 }
 0x7b8   :  { %2090 = vmatprep.subr.mxu1 %v1988_v44 }
 0x7b9   :  { %2091 = vmatpush1.msra.mxu1 %v1987_v31 }
 0x7ba   :  { %2092 = vmatprep.subr.mxu1 %v1984_v52 }
 0x7bb   :  { %2093 = vmatpush1.msra.mxu1 %v1983_v33  ;;  %v2710_v33 = vld [vmem:[%s6134_s16] sm:$0xff] }
 0x7bc   :  { %2094 = vmatprep.subr.mxu1 %v1980_v8 }
 0x7bd   :  { %2095 = vmatpush1.msra.mxu1 %v1979_v39 }
 0x7be   :  { %2096 = vmatprep.subr.mxu1 %v1976_v49 }
 0x7bf   :  { %2097 = vmatpush1.msra.mxu1 %v1975_v58 }
 0x7c0   :  { %2098 = vmatprep.subr.mxu1 %v1972_v59 }
 0x7c1   :  { %2099 = vmatpush1.msra.mxu1 %v1971_v6 }
 0x7c2   :  { %2100 = vmatprep.subr.mxu1 %v1968_v3 }
 0x7c3   :  { %2101 = vmatpush1.msra.mxu1 %v1967_v61 }
 0x7c4   :  { %2102 = vmatprep.subr.mxu1 %v1964_v7 }
 0x7c5   :  { %2103 = vmatpush1.msra.mxu1 %v1963_v63 }
 0x7c6   :  { %2104 = vmatprep.subr.mxu1 %v1960_v0 }
 0x7c7   :  { %2105 = vmatpush1.msra.mxu1 %v1959_v54 }
 0x7c8   :  { %2106 = vmatprep.subr.mxu1 %v1956_v36 }
 0x7c9   :  { %2107 = vmatpush1.msra.mxu1 %v1955_v2 }
 0x7ca   :  { %2108 = vmatprep.subr.mxu1 %v1952_v4 }
 0x7cb   :  { %2109 = vmatpush1.msra.mxu1 %v1951_v57 }
 0x7cc   :  { %2110 = vmatprep.subr.mxu1 %v1948_v12  ;;  %v2219_v12 = vshrl.u32 %v2218_v51, 7 }
 0x7cd   :  { %2111 = vmatpush1.msra.mxu1 %v1947_v32 }
 0x7ce   :  { %2112 = vmatprep.subr.mxu1 %v1944_v34  ;;  %v5262_v13 = vsub.s32 2, %v2219_v12  ;;  %v5264_v14 = vsub.s32 3, %v2219_v12  ;;  %v2173_v34 = vld [vmem:[#allocation13 + $0x1c] sm:$0xf] }
 0x7cf   :  { %2113 = vmatpush1.msra.mxu1 %v1943_v16 }
 0x7d0   :  { %v5269_v5 = vrot.slane %v2173_v34, %v5262_v13  ;;  %v5272_v16 = vrot.slane %v2173_v34, %v5264_v14 }
 0x7d2   :  { %6218 = vst [vmem:[#allocation32_spill] sm:$0xff] %v5269_v5  ;;  %6219 = vst [vmem:[#allocation33_spill] sm:$0xff] %v5272_v16 }
 0x870   :  { %v1898_v18 = vpop.f32.mrf.mxu1 }
 0x871   :  { %v1899_v19 = vadd.f32 %v1898_v18, %v1818_v17 }
 0x872   :  { %v1900_v20 = vpop.f32.mrf.mxu1 }
 0x873   :  { %v1907_v38 = vmax.f32 %v1899_v19, 0.0 }
 0x874   :  { %v1903_v26 = vpop.f32.mrf.mxu1 }
 0x875   :  { %v1904_v28 = vadd.f32 %v1903_v26, %v1823_v23  ;;  %2070 = vmatmul.mubr.f32.vlgmr.msra.gmra.mxu0 %v1907_v38  ;;  %2147 = vmatmul.mubr.f32.vlgmr.msra.gmra.mxu1 %v1907_v38 }
 0x876   :  { %2075 = vmatprep.mubr.f32.mxu0 %v6142_v29  ;;  %2152 = vmatprep.mubr.f32.mxu1 %v6142_v29  ;;  %v1905_v22 = vpop.f32.mrf.mxu1 }
 0x877   :  { %v1908_v24 = vmax.f32 %v1904_v28, 0.0 }
 0x879   :  { %2076 = vmatmul.mubr.f32.gmra.mxu0 %v1908_v24  ;;  %2153 = vmatmul.mubr.f32.gmra.mxu1 %v1908_v24 }
 0x87a   :  { %3634 = vmatprep.mubr.msk.f32.mxu0 %vm1825_vm2, %v2707_v37  ;;  %3636 = vmatprep.mubr.msk.f32.mxu1 %vm1825_vm2, %v2707_v37 }
 0x935   :  { %v5044_v30 = vpop.f32.mrf.mxu0  ;;  %v5046_v55 = vpop.f32.mrf.mxu1 }
 0x936   :  { %2586 = vrot.lane.b32.xlu1 %v5046_v55, %s4165_s12 }
 0x937   :  { %v5050_v56 = vpop.f32.mrf.mxu0  ;;  %v5056_v40 = vpop.f32.mrf.mxu1 }
 0x938   :  { %2584 = vrot.lane.b32.xlu0 %v5050_v56, %s4165_s12 }
 0x939   :  { %v5096_v41 = vpop.f32.mrf.mxu0  ;;  %v5100_v25 = vpop.f32.mrf.mxu1 }
 0x93a   :  { %2582 = vrot.lane.b32.xlu1 %v5044_v30, %s4165_s12 }
 0x93b   :  { %v5126_v42 = vpop.f32.mrf.mxu1  ;;  %v5132_v47 = vpop.f32.mrf.mxu0 }
 0x93c   :  { %2588 = vrot.lane.b32.xlu0 %v5056_v40, %s4165_s12 }
 0x93e   :  { %2524 = vrot.lane.b32.xlu1 %v5046_v55, %s4166_s30 }
 0x940   :  { %2522 = vrot.lane.b32.xlu0 %v5050_v56, %s4166_s30 }
 0x942   :  { %2520 = vrot.lane.b32.xlu1 %v5044_v30, %s4166_s30 }
 0x944   :  { %2526 = vrot.lane.b32.xlu0 %v5056_v40, %s4166_s30 }
 0x946   :  { %2463 = vrot.lane.b32.xlu1 %v5046_v55, %s4152_s17 }
 0x948   :  { %2461 = vrot.lane.b32.xlu0 %v5050_v56, %s4152_s17 }
 0x94a   :  { %2459 = vrot.lane.b32.xlu1 %v5044_v30, %s4152_s17 }
 0x94c   :  { %2465 = vrot.lane.b32.xlu0 %v5056_v40, %s4152_s17 }
 0x94e   :  { %2369 = vrot.lane.b32.xlu1 %v5044_v30, %s4146_s14 }
 0x950   :  { %2371 = vrot.lane.b32.xlu0 %v5050_v56, %s4146_s14 }
 0x952   :  { %2373 = vrot.lane.b32.xlu1 %v5046_v55, %s4146_s14 }
 0x954   :  { %2375 = vrot.lane.b32.xlu0 %v5056_v40, %s4146_s14 }
 0x956   :  { %2307 = vrot.lane.b32.xlu1 %v5044_v30, %s4167_s11 }
 0x958   :  { %2309 = vrot.lane.b32.xlu0 %v5050_v56, %s4167_s11 }
 0x95a   :  { %2311 = vrot.lane.b32.xlu1 %v5046_v55, %s4167_s11 }
 0x95c   :  { %2313 = vrot.lane.b32.xlu0 %v5056_v40, %s4167_s11 }
 0x95e   :  { %2246 = vrot.lane.b32.xlu1 %v5044_v30, %s4140_s3 }
 0x960   :  { %2248 = vrot.lane.b32.xlu0 %v5050_v56, %s4140_s3 }
 0x962   :  { %2590 = vrot.lane.b32.xlu1 %v5096_v41, %s4165_s12 }
 0x964   :  { %2594 = vrot.lane.b32.xlu0 %v5100_v25, %s4165_s12 }
 0x966   :  { %2532 = vrot.lane.b32.xlu1 %v5100_v25, %s4166_s30 }
 0x968   :  { %2252 = vrot.lane.b32.xlu0 %v5056_v40, %s4140_s3 }
 0x96a   :  { %2528 = vrot.lane.b32.xlu1 %v5096_v41, %s4166_s30 }
 0x96c   :  { %2186 = vrot.lane.b32.xlu0 %v5050_v56, %s4168_s2 }
 0x96e   :  { %2471 = vrot.lane.b32.xlu1 %v5100_v25, %s4152_s17 }
 0x970   :  { %2190 = vrot.lane.b32.xlu0 %v5056_v40, %s4168_s2 }
 0x972   :  { %2467 = vrot.lane.b32.xlu1 %v5096_v41, %s4152_s17 }
 0x974   :  { %2656 = vrot.lane.b32.xlu0 %v5100_v25, %s4169_s23 }
 0x976   :  { %2377 = vrot.lane.b32.xlu1 %v5096_v41, %s4146_s14 }
 0x978   :  { %2646 = vrot.lane.b32.xlu0 %v5050_v56, %s4169_s23 }
 0x97a   :  { %2381 = vrot.lane.b32.xlu1 %v5100_v25, %s4146_s14 }
 0x97c   :  { %2596 = vrot.lane.b32.xlu0 %v5126_v42, %s4165_s12 }
 0x97e   :  { %2315 = vrot.lane.b32.xlu1 %v5096_v41, %s4167_s11 }
 0x980   :  { %2530 = vrot.lane.b32.xlu0 %v5132_v47, %s4166_s30 }
 0x982   :  { %2319 = vrot.lane.b32.xlu1 %v5100_v25, %s4167_s11 }
 0x984   :  { %2534 = vrot.lane.b32.xlu0 %v5126_v42, %s4166_s30 }
 0x986   :  { %2254 = vrot.lane.b32.xlu1 %v5096_v41, %s4140_s3 }
 0x988   :  { %2469 = vrot.lane.b32.xlu0 %v5132_v47, %s4152_s17 }
 0x98a   :  { %2258 = vrot.lane.b32.xlu1 %v5100_v25, %s4140_s3 }
 0x98c   :  { %2473 = vrot.lane.b32.xlu0 %v5126_v42, %s4152_s17 }
 0x98e   :  { %2592 = vrot.lane.b32.xlu1 %v5132_v47, %s4165_s12 }
 0x990   :  { %2379 = vrot.lane.b32.xlu0 %v5132_v47, %s4146_s14 }
 0x992   :  { %2192 = vrot.lane.b32.xlu1 %v5096_v41, %s4168_s2 }
 0x994   :  { %2383 = vrot.lane.b32.xlu0 %v5126_v42, %s4146_s14 }
 0x996   :  { %2250 = vrot.lane.b32.xlu1 %v5046_v55, %s4140_s3 }
 0x998   :  { %2317 = vrot.lane.b32.xlu0 %v5132_v47, %s4167_s11 }
 0x99a   :  { %2184 = vrot.lane.b32.xlu1 %v5044_v30, %s4168_s2 }
 0x99c   :  { %2321 = vrot.lane.b32.xlu0 %v5126_v42, %s4167_s11 }
 0x99e   :  { %2196 = vrot.lane.b32.xlu1 %v5100_v25, %s4168_s2 }
 0x9a0   :  { %2256 = vrot.lane.b32.xlu0 %v5132_v47, %s4140_s3 }
 0x9a2   :  { %2188 = vrot.lane.b32.xlu1 %v5046_v55, %s4168_s2 }
 0x9a4   :  { %2260 = vrot.lane.b32.xlu0 %v5126_v42, %s4140_s3 }
 0x9a6   :  { %2652 = vrot.lane.b32.xlu1 %v5096_v41, %s4169_s23 }
 0x9a8   :  { %v5174_v43 = vpop.permute.xlu1 %2586  ;;  %2194 = vrot.lane.b32.xlu0 %v5132_v47, %s4168_s2 }
 0x9aa   :  { %v5180_v46 = vpop.permute.xlu0 %2584  ;;  %2648 = vrot.lane.b32.xlu1 %v5046_v55, %s4169_s23 }
 0x9ac   :  { %v5184_v48 = vpop.permute.xlu1 %2582  ;;  %2198 = vrot.lane.b32.xlu0 %v5126_v42, %s4168_s2 }
 0x9ae   :  { %v2589_v45 = vpop.permute.xlu0 %2588  ;;  %2654 = vrot.lane.b32.xlu1 %v5132_v47, %s4169_s23 }
 0x9af   :  { %v2613_v18 = vsel %vm2598_vm3, %v2589_v45, 0.0  ;;  %v2601_v38 = vsel %vm2598_vm3, %v5174_v43, %v2589_v45 }
 0x9b0   :  { %v5190_v44 = vpop.permute.xlu1 %2524  ;;  %2658 = vrot.lane.b32.xlu0 %v5126_v42, %s4169_s23  ;;  %v2639_v24 = vmul.f32 %v5272_v16, %v2613_v18  ;;  %v2638_v37 = vmul.f32 %v5269_v5, %v2601_v38 }
 0x9b2   :  { %v5194_v31 = vpop.permute.xlu0 %2522  ;;  %2644 = vrot.lane.b32.xlu1 %v5044_v30, %s4169_s23 }
 0x9b4   :  { %v5201_v52 = vpop.permute.xlu1 %2520  ;;  %2650 = vrot.lane.b32.xlu0 %v5056_v40, %s4169_s23 }
 0x9b6   :  { %v5208_v53 = vpop.permute.xlu0 %2526  ;;  %2719 = vperm.xlu1 %3913, %v2711_v50  }
 0x9b7   :  { %v2551_v18 = vsel %vm2536_vm5, %v5208_v53, 0.0 }
 0x9b8   :  { %v5210_v8 = vpop.permute.xlu1 %2463  ;;  %2714 = vperm.xlu0 %3912, %v2710_v33   ;;  %v2171_v33 = vld [vmem:[#allocation13 + $0x18] sm:$0xf] }
 0x9b9   :  { %v5291_v45 = vrot.slane %v2171_v33, %v5262_v13  ;;  %v5294_v51 = vrot.slane %v2171_v33, %v5264_v14 }
 0x9ba   :  { %v5212_v39 = vpop.permute.xlu0 %2461 }
 0x9bb   :  { %6220 = vst [vmem:[#allocation34_spill] sm:$0xff] %v5291_v45  ;;  %6221 = vst [vmem:[#allocation35_spill] sm:$0xff] %v5294_v51 }
 0x9bc   :  { %v5214_v35 = vpop.permute.xlu1 %2459 }
 0x9be   :  { %v5216_v49 = vpop.permute.xlu0 %2465 }
 0x9c0   :  { %v5218_v58 = vpop.permute.xlu1 %2369 }
 0x9c2   :  { %v5220_v9 = vpop.permute.xlu0 %2371 }
 0x9c4   :  { %v5222_v59 = vpop.permute.xlu1 %2373 }
 0x9c6   :  { %v5224_v6 = vpop.permute.xlu0 %2375 }
 0x9c8   :  { %v5226_v60 = vpop.permute.xlu1 %2307 }
 0x9c9   :  { %6210 = vst [vmem:[#allocation24_spill] sm:$0xff] %v5226_v60 }
 0x9ca   :  { %v5228_v3 = vpop.permute.xlu0 %2309 }
 0x9cc   :  { %v5230_v61 = vpop.permute.xlu1 %2311 }
 0x9ce   :  { %v5232_v62 = vpop.permute.xlu0 %2313 }
 0x9d0   :  { %v5234_v7 = vpop.permute.xlu1 %2246 }
 0x9d1   :  { %6211 = vst [vmem:[#allocation25_spill] sm:$0xff] %v5234_v7 }
 0x9d2   :  { %v5236_v63 = vpop.permute.xlu0 %2248 }
 0x9d3   :  { %6212 = vst [vmem:[#allocation26_spill] sm:$0xff] %v5236_v63  ;;  %v2477_v63 = vsel %vm1453_vm14, %v5210_v8, %v5216_v49 }
 0x9d4   :  { %v5238_v27 = vpop.permute.xlu1 %2590 }
 0x9d6   :  { %v5240_v0 = vpop.permute.xlu0 %2594 }
 0x9d8   :  { %v5242_v54 = vpop.permute.xlu1 %2532 }
 0x9da   :  { %v5244_v1 = vpop.permute.xlu0 %2252 }
 0x9db   :  { %6213 = vst [vmem:[#allocation27_spill] sm:$0xff] %v5244_v1  ;;  %v2600_v1 = vsel %vm2598_vm3, %v5180_v46, %v5174_v43 }
 0x9dc   :  { %v5246_v36 = vpop.permute.xlu1 %2528 }
 0x9de   :  { %v5248_v2 = vpop.permute.xlu0 %2186 }
 0x9df   :  { %6214 = vst [vmem:[#allocation28_spill] sm:$0xff] %v5248_v2 }
 0x9e0   :  { %v5250_v4 = vpop.permute.xlu1 %2471 }
 0x9e2   :  { %v5252_v57 = vpop.permute.xlu0 %2190 }
 0x9e3   :  { %6215 = vst [vmem:[#allocation29_spill] sm:$0xff] %v5252_v57 }
 0x9e4   :  { %v5254_v10 = vpop.permute.xlu1 %2467 }
 0x9e6   :  { %v5256_v11 = vpop.permute.xlu0 %2656 }
 0x9e7   :  { %6216 = vst [vmem:[#allocation30_spill] sm:$0xff] %v5256_v11 }
 0x9e8   :  { %v5258_v21 = vpop.permute.xlu1 %2377 }
 0x9ea   :  { %v5260_v32 = vpop.permute.xlu0 %2646 }
 0x9eb   :  { %6217 = vst [vmem:[#allocation31_spill] sm:$0xff] %v5260_v32 }
 0x9ec   :  { %v5266_v15 = vpop.permute.xlu1 %2381 }
 0x9ee   :  { %v2597_v17 = vpop.permute.xlu0 %2596 }
 0x9ef   :  { %v2604_v19 = vsel %vm2598_vm3, %v5240_v0, %v2597_v17  ;;  %v2614_v20 = vsel %vm2598_vm3, %v2597_v17, 0.0 }
 0x9f0   :  { %v2642_v23 = vmul.f32 %v5269_v5, %v2604_v19  ;;  %v2643_v26 = vmul.f32 %v5272_v16, %v2614_v20  ;;  %v5282_v28 = vpop.permute.xlu1 %2315  ;;  %v2167_v19 = vld [vmem:[#allocation13 + $0x10] sm:$0xf]  ;;  %v5296_v20 = vsub.s32 0, %v2219_v12 }
 0x9f1   :  { %v5313_v5 = vrot.slane %v2167_v19, %v5262_v13  ;;  %v5319_v32 = vrot.slane %v2167_v19, %v5264_v14 }
 0x9f2   :  { %2805 = vmatprep.subr.mxu1 %v2643_v26  ;;  %v5284_v22 = vpop.permute.xlu0 %2530  ;;  %v2539_v26 = vsel %vm2536_vm5, %v5190_v44, %v5208_v53 }
 0x9f3   :  { %2806 = vmatpush1.msra.mxu1 %v2642_v23  ;;  %6223 = vst [vmem:[#allocation37_spill] sm:$0xff] %v5313_v5  ;;  %v2576_v53 = vmul.f32 %v5291_v45, %v2539_v26  ;;  %v2457_v2 = vmul.f32 %v5313_v5, %v5100_v25 }
 0x9f4   :  { %2807 = vmatprep.subr.mxu1 %v2639_v24  ;;  %v5288_v50 = vpop.permute.xlu1 %2319  ;;  %v5306_v24 = vsub.s32 1, %v2219_v12  ;;  %v5323_v12 = vrot.slane %v2173_v34, %v5296_v20 }
 0x9f5   :  { %2808 = vmatpush1.msra.mxu1 %v2638_v37 }
 0x9f6   :  { %v2535_v17 = vpop.permute.xlu0 %2534  ;;  %v5337_v57 = vrot.slane %v2171_v33, %v5306_v24  ;;  %v5340_v26 = vrot.slane %v2173_v34, %v5306_v24  ;;  %v2489_v34 = vsel %vm1453_vm14, %v5216_v49, 0.0 }
 0x9f7   :  { %v2542_v38 = vsel %vm2536_vm5, %v5242_v54, %v2535_v17  ;;  %v2552_v23 = vsel %vm2536_vm5, %v2535_v17, 0.0  ;;  %v2577_v17 = vmul.f32 %v5294_v51, %v2551_v18  ;;  %v5334_v18 = vrot.slane %v2171_v33, %v5296_v20 }
 0x9f8   :  { %v2580_v37 = vmul.f32 %v5291_v45, %v2542_v38  ;;  %v2581_v29 = vmul.f32 %v5294_v51, %v2552_v23  ;;  %v5310_v16 = vpop.permute.xlu1 %2254  ;;  %v5328_v23 = vrot.slane %v2167_v19, %v5306_v24  ;;  %v2169_v51 = vld [vmem:[#allocation13 + $0x14] sm:$0xf]  ;;  %v2454_v33 = vmul.f32 %v5319_v32, %v5056_v40 }
 0x9f9   :  { %6222 = vst [vmem:[#allocation36_spill] sm:$0xff] %v5310_v16  ;;  %v5366_v25 = vrot.slane %v2169_v51, %v5306_v24 }
 0x9fa   :  { %2809 = vmatprep.subr.mxu1 %v2581_v29  ;;  %v5315_v11 = vpop.permute.xlu0 %2469  ;;  %v5331_v29 = vrot.slane %v2167_v19, %v5296_v20  ;;  %v5348_v19 = vrot.slane %v2169_v51, %v5264_v14 }
 0x9fb   :  { %2810 = vmatpush1.msra.mxu1 %v2580_v37  ;;  %v2453_v37 = vmul.f32 %v5313_v5, %v5046_v55 }
 0x9fc   :  { %v5325_v38 = vpop.permute.xlu1 %2258  ;;  %2811 = vmatprep.subr.mxu1 %v2577_v17  ;;  %v5345_v17 = vrot.slane %v2169_v51, %v5262_v13 }
 0x9fd   :  { %6224 = vst [vmem:[#allocation38_spill] sm:$0xff] %v5325_v38  ;;  %2812 = vmatpush1.msra.mxu1 %v2576_v53  ;;  %v5355_v53 = vrot.slane %v2169_v51, %v5296_v20  ;;  %v2538_v51 = vsel %vm2536_vm5, %v5194_v31, %v5190_v44  ;;  %v2541_v44 = vsel %vm2536_vm5, %v5284_v22, %v5242_v54 }
 0x9fe   :  { %v2474_v45 = vpop.permute.xlu0 %2473 }
 0x9ff   :  { %v2480_v55 = vsel %vm1453_vm14, %v5250_v4, %v2474_v45  ;;  %v2490_v7 = vsel %vm1453_vm14, %v2474_v45, 0.0  ;;  %v2599_v45 = vsel %vm2598_vm3, %v5184_v48, %v5180_v46  ;;  %v2515_v46 = vmul.f32 %v5348_v19, %v2489_v34 }
 0xa00   :  { %v2518_v40 = vmul.f32 %v5345_v17, %v2480_v55  ;;  %v2519_v5 = vmul.f32 %v5348_v19, %v2490_v7  ;;  %v2593_v16 = vpop.permute.xlu1 %2592  ;;  %v5383_v7 = vld [vmem:[#allocation13 + $0xc] sm:$0xf]  ;;  %v2514_v48 = vmul.f32 %v5345_v17, %v2477_v63  ;;  %v2540_v63 = vsel %vm2536_vm5, %v5246_v36, %v5284_v22 }
 0xa01   :  { %v2602_v38 = vsel %vm2598_vm3, %v5238_v27, %v2593_v16  ;;  %v2603_v49 = vsel %vm2598_vm3, %v2593_v16, %v5240_v0  ;;  %v5393_v27 = vrot.slane %v5383_v7, %v5262_v13  ;;  %v2458_v0 = vmul.f32 %v5319_v32, %v5126_v42 }
 0xa02   :  { %v2640_v55 = vmul.f32 %v5323_v12, %v2602_v38  ;;  %v2641_v43 = vmul.f32 %v5340_v26, %v2603_v49  ;;  %2813 = vmatprep.subr.mxu1 %v2519_v5  ;;  %v5387_v60 = vpop.permute.xlu0 %2379  ;;  %v5402_v5 = vrot.slane %v5383_v7, %v5264_v14  ;;  %v2637_v38 = vmul.f32 %v5340_v26, %v2600_v1 }
 0xa03   :  { %6225 = vst [vmem:[#allocation39_spill] sm:$0xff] %v5393_v27  ;;  %2814 = vmatpush1.msra.mxu1 %v2518_v40  ;;  %v2636_v54 = vmul.f32 %v5323_v12, %v2599_v45  ;;  %v2537_v42 = vsel %vm2536_vm5, %v5201_v52, %v5194_v31  ;;  %v2575_v34 = vmul.f32 %v5337_v57, %v2538_v51 }
 0xa04   :  { %2728 = vmatprep.subr.mxu0 %v2641_v43  ;;  %2815 = vmatprep.subr.mxu1 %v2515_v46  ;;  %v5407_v16 = vpop.permute.xlu1 %2192  ;;  %v2387_v36 = vsel %vm452_vm4, %v5222_v59, %v5224_v6  ;;  %v2579_v22 = vmul.f32 %v5337_v57, %v2541_v44  ;;  %v2389_v1 = vsel %vm452_vm4, %v5387_v60, %v5266_v15 }
 0xa05   :  { %2729 = vmatpush1.msra.mxu0 %v2640_v55  ;;  %2816 = vmatpush1.msra.mxu1 %v2514_v48  ;;  %v2578_v45 = vmul.f32 %v5334_v18, %v2540_v63  ;;  %v2479_v31 = vsel %vm1453_vm14, %v5315_v11, %v5250_v4  ;;  %v2386_v6 = vsel %vm452_vm4, %v5220_v9, %v5222_v59  ;;  %v2163_v48 = vld [vmem:[#allocation13 + $0x8] sm:$0xf] }
 0xa06   :  { %2817 = vmatprep.subr.mxu1 %v2458_v0  ;;  %v2384_v40 = vpop.permute.xlu0 %2383  ;;  %2730 = vmatprep.subr.mxu0 %v2637_v38  ;;  %v2478_v49 = vsel %vm1453_vm14, %v5254_v10, %v5315_v11  ;;  %v2574_v4 = vmul.f32 %v5334_v18, %v2537_v42  ;;  %v2475_v59 = vsel %vm1453_vm14, %v5214_v35, %v5212_v39 }
 0xa07   :  { %v2390_v52 = vsel %vm452_vm4, %v5266_v15, %v2384_v40  ;;  %2731 = vmatpush1.msra.mxu0 %v2636_v54  ;;  %2818 = vmatpush1.msra.mxu1 %v2457_v2  ;;  %v2476_v2 = vsel %vm1453_vm14, %v5212_v39, %v5210_v8  ;;  %v2428_v15 = vmul.f32 %v5393_v27, %v2389_v1  ;;  %v2400_v1 = vsel %vm452_vm4, 0.0, %v5258_v21 }
 0xa08   :  { %v2429_v51 = vmul.f32 %v5402_v5, %v2390_v52  ;;  %2732 = vmatprep.subr.mxu0 %v2579_v22  ;;  %2819 = vmatprep.subr.mxu1 %v2454_v33  ;;  %v5435_v55 = vpop.permute.xlu1 %2250  ;;  %v2425_v10 = vmul.f32 %v5402_v5, %v2387_v36  ;;  %v2517_v11 = vmul.f32 %v5366_v25, %v2479_v31  ;;  %v2399_v31 = vsel %vm452_vm4, 0.0, %v5218_v58 }
 0xa09   :  { %2733 = vmatpush1.msra.mxu0 %v2578_v45  ;;  %2820 = vmatpush1.msra.mxu1 %v2453_v37  ;;  %v2424_v43 = vmul.f32 %v5393_v27, %v2386_v6  ;;  %v2516_v46 = vmul.f32 %v5355_v53, %v2478_v49  ;;  %v2513_v37 = vmul.f32 %v5366_v25, %v2476_v2 }
 0xa0a   :  { %2821 = vmatprep.subr.mxu1 %v2429_v51  ;;  %v2318_v33 = vpop.permute.xlu0 %2317  ;;  %2734 = vmatprep.subr.mxu0 %v2575_v34  ;;  %v2451_v39 = vmul.f32 %v5331_v29, %v5044_v30  ;;  %v2512_v35 = vmul.f32 %v5355_v53, %v2475_v59  ;;  %v2455_v44 = vmul.f32 %v5331_v29, %v5096_v41  ;;  %v2161_v34 = vld [vmem:[#allocation13 + $0x4] sm:$0xf] }
 0xa0b   :  { %2735 = vmatpush1.msra.mxu0 %v2574_v4  ;;  %2822 = vmatpush1.msra.mxu1 %v2428_v15  ;;  %v2452_v0 = vmul.f32 %v5328_v23, %v5050_v56  ;;  %v5461_v63 = vrot.slane %v5383_v7, %v5296_v20  ;;  %v5464_v38 = vrot.slane %v2163_v48, %v5264_v14 }
 0xa0c   :  { %2736 = vmatprep.subr.mxu0 %v2517_v11  ;;  %2823 = vmatprep.subr.mxu1 %v2425_v10  ;;  %v5449_v8 = vpop.permute.xlu1 %2184  ;;  %v2328_v30 = vsel %vm2323_vm6, %v2318_v33, %v5288_v50  ;;  %v2456_v42 = vmul.f32 %v5328_v23, %v5132_v47  ;;  %v5471_v41 = vrot.slane %v2163_v48, %v5262_v13 }
 0xa0d   :  { %2737 = vmatpush1.msra.mxu0 %v2516_v46  ;;  %2824 = vmatpush1.msra.mxu1 %v2424_v43  ;;  %6226 = vst [vmem:[#allocation40_spill] sm:$0xff] %v5464_v38  ;;  %v2326_v56 = vsel %vm2323_vm6, %v5230_v61, %v5232_v62  ;;  %v2388_v36 = vsel %vm452_vm4, %v5258_v21, %v5387_v60  ;;  %v6230_v43 = vld [vmem:[#allocation24_spill] sm:$0xff] }
 0xa0e   :  { %v2322_v54 = vpop.permute.xlu0 %2321  ;;  %2738 = vmatprep.subr.mxu0 %v2513_v37  ;;  %6227 = vst [vmem:[#allocation41_spill] sm:$0xff] %v5471_v41  ;;  %v2325_v47 = vsel %vm2323_vm6, %v5228_v3, %v5230_v61  ;;  %v5488_v40 = vrot.slane %v5383_v7, %v5306_v24  ;;  %v2385_v60 = vsel %vm452_vm4, %v5218_v58, %v5220_v9  ;;  %v5499_v61 = vld [vmem:[#allocation13] sm:$0xf]  ;;  %v2339_v58 = vsel %vm2323_vm6, 0.0, %v5282_v28 }
 0xa0f   :  { %v2329_v22 = vsel %vm2323_vm6, %v5288_v50, %v2322_v54  ;;  %2739 = vmatpush1.msra.mxu0 %v2512_v35  ;;  %v5497_v50 = vrot.slane %v2163_v48, %v5296_v20  ;;  %v5502_v21 = vrot.slane %v2163_v48, %v5306_v24  ;;  %v2367_v7 = vmul.f32 %v5471_v41, %v2328_v30  ;;  %v6233_v48 = vld [vmem:[#allocation38_spill] sm:$0xff]  ;;  %v6234_v30 = vld [vmem:[#allocation27_spill] sm:$0xff] }
 0xa10   :  { %v2368_v62 = vmul.f32 %v5464_v38, %v2329_v22  ;;  %v5491_v45 = vpop.permute.xlu1 %2196  ;;  %2740 = vmatprep.subr.mxu0 %v2456_v42  ;;  %v2364_v52 = vmul.f32 %v5464_v38, %v2326_v56  ;;  %v5509_v6 = vrot.slane %v2161_v34, %v5296_v20  ;;  %v2427_v9 = vmul.f32 %v5488_v40, %v2388_v36  ;;  %v6235_v42 = vld [vmem:[#allocation36_spill] sm:$0xff]  ;;  %v6236_v22 = vld [vmem:[#allocation26_spill] sm:$0xff] }
 0xa11   :  { %2741 = vmatpush1.msra.mxu0 %v2455_v44  ;;  %v2363_v51 = vmul.f32 %v5471_v41, %v2325_v47  ;;  %v2426_v4 = vmul.f32 %v5461_v63, %v2400_v1  ;;  %v2327_v2 = vsel %vm2323_vm6, %v5282_v28, %v2318_v33  ;;  %v5520_v15 = vrot.slane %v5499_v61, %v5296_v20 }
 0xa12   :  { %2825 = vmatprep.subr.mxu1 %v2368_v62  ;;  %v2257_v49 = vpop.permute.xlu0 %2256  ;;  %2742 = vmatprep.subr.mxu0 %v2452_v0  ;;  %v5523_v59 = vrot.slane %v2161_v34, %v5306_v24  ;;  %v2423_v11 = vmul.f32 %v5488_v40, %v2385_v60  ;;  %v2422_v33 = vmul.f32 %v5461_v63, %v2399_v31  ;;  %v2338_v37 = vsel %vm2323_vm6, 0.0, %v6230_v43  ;;  %v6237_v31 = vld [vmem:[#allocation25_spill] sm:$0xff] }
 0xa13   :  { %2743 = vmatpush1.msra.mxu0 %v2451_v39  ;;  %2826 = vmatpush1.msra.mxu1 %v2367_v7  ;;  %6228 = vst [vmem:[#allocation42_spill] sm:$0xff] %v5520_v15  ;;  %v2324_v46 = vsel %vm2323_vm6, %v6230_v43, %v5228_v3  ;;  %v5533_v28 = vrot.slane %v2161_v34, %v5262_v13  ;;  %v2277_v36 = vsel %vm1825_vm2, 0.0, %v6235_v42 }
 0xa14   :  { %6229 = vst [vmem:[#allocation43_spill] sm:$0xff] %v5523_v59  ;;  %2827 = vmatprep.subr.mxu1 %v2364_v52  ;;  %v5525_v10 = vpop.permute.xlu1 %2188  ;;  %2744 = vmatprep.subr.mxu0 %v2427_v9  ;;  %v5538_v39 = vrot.slane %v2161_v34, %v5264_v14  ;;  %v2366_v35 = vmul.f32 %v5502_v21, %v2327_v2 }
 0xa15   :  { %6231 = vst [vmem:[#allocation24_spill] sm:$0xff] %v5533_v28  ;;  %2745 = vmatpush1.msra.mxu0 %v2426_v4  ;;  %2828 = vmatpush1.msra.mxu1 %v2363_v51  ;;  %v2266_v44 = vsel %vm1825_vm2, %v2257_v49, %v6233_v48  ;;  %v2365_v3 = vmul.f32 %v5497_v50, %v2339_v58 }
 0xa16   :  { %6232 = vst [vmem:[#allocation44_spill] sm:$0xff] %v5538_v39  ;;  %v2261_v0 = vpop.permute.xlu0 %2260  ;;  %2746 = vmatprep.subr.mxu0 %v2423_v11  ;;  %v2264_v54 = vsel %vm1825_vm2, %v5435_v55, %v6234_v30  ;;  %v2265_v56 = vsel %vm1825_vm2, %v6235_v42, %v2257_v49  ;;  %v2263_v47 = vsel %vm1825_vm2, %v6236_v22, %v5435_v55  ;;  %v2276_v55 = vsel %vm1825_vm2, 0.0, %v6237_v31  ;;  %v2175_v11 = vld [vmem:[#allocation13 + $0x20] sm:$0xf] }
 0xa17   :  { %v2267_v34 = vsel %vm1825_vm2, %v6233_v48, %v2261_v0  ;;  %2747 = vmatpush1.msra.mxu0 %v2422_v33  ;;  %v2362_v60 = vmul.f32 %v5502_v21, %v2324_v46  ;;  %v2361_v7 = vmul.f32 %v5497_v50, %v2338_v37  ;;  %v2262_v52 = vsel %vm1825_vm2, %v6237_v31, %v6236_v22  ;;  %v6245_v22 = vld [vmem:[#allocation29_spill] sm:$0xff] }
 0xa18   :  { %v2306_v1 = vmul.f32 %v5538_v39, %v2267_v34  ;;  %v2653_v62 = vpop.permute.xlu1 %2652  ;;  %2748 = vmatprep.subr.mxu0 %v2366_v35  ;;  %v5564_v9 = vrot.slane %v5499_v61, %v5306_v24  ;;  %v2305_v49 = vmul.f32 %v5533_v28, %v2266_v44  ;;  %v2302_v51 = vmul.f32 %v5538_v39, %v2264_v54 }
 0xa19   :  { %2749 = vmatpush1.msra.mxu0 %v2365_v3  ;;  %v2304_v4 = vmul.f32 %v5523_v59, %v2265_v56  ;;  %v5573_v2 = vrot.slane %v5499_v61, %v5262_v13  ;;  %v2303_v33 = vmul.f32 %v5509_v6, %v2277_v36  ;;  %v2301_v43 = vmul.f32 %v5533_v28, %v2263_v47  ;;  %v6241_v3 = vld [vmem:[#allocation28_spill] sm:$0xff] }
 0xa1a   :  { %6238 = vst [vmem:[#allocation38_spill] sm:$0xff] %v5564_v9  ;;  %2829 = vmatprep.subr.mxu1 %v2306_v1  ;;  %v2195_v58 = vpop.permute.xlu0 %2194  ;;  %2750 = vmatprep.subr.mxu0 %v2362_v60  ;;  %v2216_v37 = vsel %vm2200_vm7, 0.0, %v5407_v16  ;;  %v5583_v35 = vrot.slane %v5499_v61, %v5264_v14  ;;  %v2300_v44 = vmul.f32 %v5523_v59, %v2262_v52  ;;  %v2215_v54 = vsel %vm2200_vm7, 0.0, %v5449_v8 }
 0xa1b   :  { %6239 = vst [vmem:[#allocation27_spill] sm:$0xff] %v5573_v2  ;;  %v2204_v46 = vsel %vm2200_vm7, %v5407_v16, %v2195_v58  ;;  %2751 = vmatpush1.msra.mxu0 %v2361_v7  ;;  %2830 = vmatpush1.msra.mxu1 %v2305_v49  ;;  %v2299_v0 = vmul.f32 %v5509_v6, %v2276_v55  ;;  %v6247_v49 = vld [vmem:[#allocation31_spill] sm:$0xff]  ;;  %v6248_v55 = vld [vmem:[#allocation30_spill] sm:$0xff] }
 0xa1c   :  { %6240 = vst [vmem:[#allocation36_spill] sm:$0xff] %v5583_v35  ;;  %2831 = vmatprep.subr.mxu1 %v2302_v51  ;;  %v2649_v48 = vpop.permute.xlu1 %2648  ;;  %2752 = vmatprep.subr.mxu0 %v2304_v4  ;;  %v2201_v30 = vsel %vm2200_vm7, %v5449_v8, %v6241_v3  ;;  %v5593_v16 = vrot.slane %v2175_v11, %v5306_v24 }
 0xa1d   :  { %2753 = vmatpush1.msra.mxu0 %v2303_v33  ;;  %2832 = vmatpush1.msra.mxu1 %v2301_v43  ;;  %v2205_v61 = vsel %vm2200_vm7, %v2195_v58, %v5491_v45  ;;  %v2243_v42 = vmul.f32 %v5564_v9, %v2204_v46  ;;  %v5599_v34 = vrot.slane %v2175_v11, %v5296_v20 }
 0xa1e   :  { %6242 = vst [vmem:[#allocation26_spill] sm:$0xff] %v5593_v16  ;;  %v2199_v56 = vpop.permute.xlu0 %2198  ;;  %2754 = vmatprep.subr.mxu0 %v2300_v44  ;;  %v5602_v36 = vrot.slane %v2175_v11, %v5262_v13  ;;  %v2242_v8 = vmul.f32 %v5520_v15, %v2216_v37  ;;  %v2203_v24 = vsel %vm2200_vm7, %v5525_v10, %v6245_v22 }
 0xa1f   :  { %6243 = vst [vmem:[#allocation25_spill] sm:$0xff] %v5599_v34  ;;  %v2206_v47 = vsel %vm2200_vm7, %v5491_v45, %v2199_v56  ;;  %2755 = vmatpush1.msra.mxu0 %v2299_v0  ;;  %v5611_v1 = vrot.slane %v2175_v11, %v5264_v14  ;;  %v2238_v60 = vmul.f32 %v5520_v15, %v2215_v54 }
 0xa20   :  { %6244 = vst [vmem:[#allocation28_spill] sm:$0xff] %v5602_v36  ;;  %v2239_v20 = vmul.f32 %v5564_v9, %v2201_v30  ;;  %v2202_v13 = vsel %vm2200_vm7, %v6241_v3, %v5525_v10  ;;  %v2245_v7 = vmul.f32 %v5583_v35, %v2206_v47  ;;  %v2655_v31 = vpop.permute.xlu1 %2654  ;;  %2756 = vmatprep.subr.mxu0 %v2243_v42  ;;  %v2708_v47 = vld [vmem:[#allocation15 + $0x10] sm:$0xff] }
 0xa21   :  { %6246 = vst [vmem:[#allocation29_spill] sm:$0xff] %v5611_v1  ;;  %v2244_v52 = vmul.f32 %v5573_v2, %v2205_v61  ;;  %v2662_v45 = vsel %vm2660_vm8, %v6247_v49, %v2649_v48  ;;  %v2664_v14 = vsel %vm2660_vm8, %v2653_v62, %v2655_v31  ;;  %v2665_v51 = vsel %vm2660_vm8, %v2655_v31, %v6248_v55  ;;  %v2706_v61 = vld [vmem:[#allocation15] sm:$0xff] }
 0xa22   :  { %2757 = vmatpush1.msra.mxu0 %v2242_v8  ;;  %v2241_v4 = vmul.f32 %v5583_v35, %v2203_v24  ;;  %v2702_v58 = vmul.f32 %v5599_v34, %v2664_v14  ;;  %v2703_v10 = vmul.f32 %v5593_v16, %v2665_v51  ;;  %v2659_v11 = vpop.permute.xlu0 %2658  ;;  %2833 = vmatprep.subr.mxu1 %v2245_v7  ;;  %v2709_v8 = vld [vmem:[#allocation15 + $0x18] sm:$0xff] }
 0xa23   :  { %2758 = vmatprep.subr.mxu0 %v2239_v20  ;;  %v2240_v33 = vmul.f32 %v5573_v2, %v2202_v13  ;;  %v2666_v43 = vsel %vm2660_vm8, %v6248_v55, %v2659_v11  ;;  %v2676_v62 = vsel %vm2660_vm8, %v2659_v11, 0.0  ;;  %2834 = vmatpush1.msra.mxu1 %v2244_v52  ;;  %v2699_v46 = vmul.f32 %v5593_v16, %v2662_v45 }
 0xa24   :  { %2759 = vmatpush1.msra.mxu0 %v2238_v60  ;;  %v2704_v37 = vmul.f32 %v5602_v36, %v2666_v43  ;;  %v2705_v44 = vmul.f32 %v5611_v1, %v2676_v62  ;;  %2835 = vmatprep.subr.mxu1 %v2241_v4  ;;  %v2645_v0 = vpop.permute.xlu1 %2644 }
 0xa25   :  { %2788 = vmatprep.subr.mxu0 %v2703_v10  ;;  %v2661_v3 = vsel %vm2660_vm8, %v2645_v0, %v6247_v49  ;;  %2836 = vmatpush1.msra.mxu1 %v2240_v33 }
 0xa26   :  { %2789 = vmatpush2.msra.mxu0 %v2702_v58  ;;  %v2698_v30 = vmul.f32 %v5599_v34, %v2661_v3  ;;  %v2651_v54 = vpop.permute.xlu0 %2650  ;;  %2865 = vmatprep.subr.mxu1 %v2705_v44 }
 0xa27   :  { %2790 = vmatprep.subr.mxu0 %v2699_v46  ;;  %v2663_v42 = vsel %vm2660_vm8, %v2649_v48, %v2651_v54  ;;  %v2675_v56 = vsel %vm2660_vm8, %v2651_v54, 0.0  ;;  %2866 = vmatpush2.msra.mxu1 %v2704_v37 }
 0xa28   :  { %v2700_v22 = vmul.f32 %v5602_v36, %v2663_v42  ;;  %v2701_v24 = vmul.f32 %v5611_v1, %v2675_v56  ;;  %2791 = vmatpush2.msra.mxu0 %v2698_v30  ;;  %v3227_v42 = vld [vmem:[#allocation16 + $0x8] sm:$0xff] }
 0xa29   :  { %2793 = vmatmul.mubr.f32.vlgmr.msra.gmra.mxu0 %v2706_v61 }
 0xa2a   :  { %2867 = vmatprep.subr.mxu1 %v2701_v24  ;;  %3635 = vmatprep.mubr.msk.f32.mxu0 %vm1825_vm2, %v2709_v8 }
 0xa2b   :  { %2868 = vmatpush2.msra.mxu1 %v2700_v22 }
 0xa2c   :  { %2870 = vmatmul.mubr.f32.vlgmr.msra.gmra.mxu1 %v2706_v61 }
 0xa2d   :  { %2799 = vmatmul.mubr.f32.gmra.mxu0 %v2708_v47  ;;  %3637 = vmatprep.mubr.msk.f32.mxu1 %vm1825_vm2, %v2709_v8 }
 0xa2e   :  { %3638 = vmatprep.mubr.msk.f32.mxu0 %vm1825_vm2, %v3227_v42 }
 0xa30   :  { %2876 = vmatmul.mubr.f32.gmra.mxu1 %v2708_v47 }
 0xa31   :  { %v2720_v10 = vpop.permute.xlu1 %2719  ;;  %3640 = vmatprep.mubr.msk.f32.mxu1 %vm1825_vm2, %v3227_v42 }
 0xa33   :  { %v2715_v48 = vpop.permute.xlu0 %2714 }
 0xae9   :  { %v2794_v60 = vpop.f32.mrf.mxu0 }
 0xaea   :  { %v2795_v20 = vadd.f32 %v2794_v60, %v2715_v48 }
 0xaeb   :  { %v2796_v49 = vpop.f32.mrf.mxu0 }
 0xaec   :  { %v5644_v13 = vmax.f32 %v2795_v20, 0.0  ;;  %v2871_v7 = vpop.f32.mrf.mxu1  ;;  %v2797_v45 = vadd.f32 %v2796_v49, %v2715_v48  ;;  %v3231_v20 = vld [vmem:[%s6136_s18 + $0x8] sm:$0xff]  ;;  %v3411_v49 = vld [vmem:[%s6138_s20] sm:$0x7] }
 0xaed   :  { %v2872_v31 = vadd.f32 %v2871_v7, %v2715_v48  ;;  %v2800_v58 = vpop.f32.mrf.mxu0 }
 0xaee   :  { %3146 = vrot.lane.b32.xlu0 %v5644_v13, %s4165_s12  ;;  %v2873_v14 = vpop.f32.mrf.mxu1  ;;  %v5666_v55 = vmax.f32 %v2797_v45, 0.0  ;;  %v2801_v11 = vadd.f32 %v2800_v58, %v2720_v10 }
 0xaef   :  { %v5648_v52 = vmax.f32 %v2872_v31, 0.0  ;;  %v2874_v51 = vadd.f32 %v2873_v14, %v2715_v48  ;;  %v2802_v37 = vpop.f32.mrf.mxu0  ;;  %v3230_v48 = vld [vmem:[%s6136_s18] sm:$0xff] }
 0xaf0   :  { %v2877_v33 = vpop.f32.mrf.mxu1  ;;  %v5702_v43 = vmax.f32 %v2801_v11, 0.0  ;;  %v2803_v44 = vadd.f32 %v2802_v37, %v2720_v10 }
 0xaf1   :  { %3150 = vrot.lane.b32.xlu1 %v5648_v52, %s4165_s12  ;;  %v5672_v4 = vmax.f32 %v2874_v51, 0.0  ;;  %v2878_v62 = vadd.f32 %v2877_v33, %v2720_v10 }
 0xaf2   :  { %3110 = vrot.lane.b32.xlu0 %v5648_v52, %s4166_s30  ;;  %v5738_v0 = vmax.f32 %v2803_v44, 0.0  ;;  %v2879_v3 = vpop.f32.mrf.mxu1 }
 0xaf3   :  { %v5708_v46 = vmax.f32 %v2878_v62, 0.0  ;;  %v2880_v30 = vadd.f32 %v2879_v3, %v2720_v10 }
 0xaf5   :  { %3018 = vrot.lane.b32.xlu1 %v5644_v13, %s4146_s14  ;;  %v5748_v54 = vmax.f32 %v2880_v30, 0.0 }
 0xaf6   :  { %3106 = vrot.lane.b32.xlu0 %v5644_v13, %s4166_s30 }
 0xaf9   :  { %2978 = vrot.lane.b32.xlu1 %v5644_v13, %s4167_s11 }
 0xafa   :  { %3070 = vrot.lane.b32.xlu0 %v5648_v52, %s4152_s17 }
 0xafd   :  { %3022 = vrot.lane.b32.xlu1 %v5648_v52, %s4146_s14 }
 0xafe   :  { %3066 = vrot.lane.b32.xlu0 %v5644_v13, %s4152_s17 }
 0xb01   :  { %2938 = vrot.lane.b32.xlu1 %v5644_v13, %s4140_s3 }
 0xb02   :  { %3148 = vrot.lane.b32.xlu0 %v5666_v55, %s4165_s12 }
 0xb05   :  { %2982 = vrot.lane.b32.xlu1 %v5648_v52, %s4167_s11 }
 0xb06   :  { %3072 = vrot.lane.b32.xlu0 %v5672_v4, %s4152_s17 }
 0xb09   :  { %2898 = vrot.lane.b32.xlu1 %v5644_v13, %s4168_s2 }
 0xb0a   :  { %3020 = vrot.lane.b32.xlu0 %v5666_v55, %s4146_s14 }
 0xb0d   :  { %2942 = vrot.lane.b32.xlu1 %v5648_v52, %s4140_s3 }
 0xb0e   :  { %2980 = vrot.lane.b32.xlu0 %v5666_v55, %s4167_s11 }
 0xb11   :  { %3108 = vrot.lane.b32.xlu1 %v5666_v55, %s4166_s30 }
 0xb12   :  { %3024 = vrot.lane.b32.xlu0 %v5672_v4, %s4146_s14 }
 0xb15   :  { %3152 = vrot.lane.b32.xlu1 %v5672_v4, %s4165_s12 }
 0xb16   :  { %2940 = vrot.lane.b32.xlu0 %v5666_v55, %s4140_s3 }
 0xb19   :  { %3068 = vrot.lane.b32.xlu1 %v5666_v55, %s4152_s17 }
 0xb1a   :  { %2984 = vrot.lane.b32.xlu0 %v5672_v4, %s4167_s11 }
 0xb1d   :  { %3112 = vrot.lane.b32.xlu1 %v5672_v4, %s4166_s30 }
 0xb1e   :  { %2900 = vrot.lane.b32.xlu0 %v5666_v55, %s4168_s2 }
 0xb21   :  { %3154 = vrot.lane.b32.xlu1 %v5702_v43, %s4165_s12 }
 0xb22   :  { %2944 = vrot.lane.b32.xlu0 %v5672_v4, %s4140_s3 }
 0xb25   :  { %3026 = vrot.lane.b32.xlu1 %v5702_v43, %s4146_s14 }
 0xb26   :  { %3158 = vrot.lane.b32.xlu0 %v5708_v46, %s4165_s12 }
 0xb29   :  { %2986 = vrot.lane.b32.xlu1 %v5702_v43, %s4167_s11 }
 0xb2a   :  { %3118 = vrot.lane.b32.xlu0 %v5708_v46, %s4166_s30 }
 0xb2d   :  { %3030 = vrot.lane.b32.xlu1 %v5708_v46, %s4146_s14 }
 0xb2e   :  { %3114 = vrot.lane.b32.xlu0 %v5702_v43, %s4166_s30 }
 0xb31   :  { %2946 = vrot.lane.b32.xlu1 %v5702_v43, %s4140_s3 }
 0xb32   :  { %3078 = vrot.lane.b32.xlu0 %v5708_v46, %s4152_s17 }
 0xb35   :  { %2990 = vrot.lane.b32.xlu1 %v5708_v46, %s4167_s11 }
 0xb36   :  { %3074 = vrot.lane.b32.xlu0 %v5702_v43, %s4152_s17 }
 0xb39   :  { %2906 = vrot.lane.b32.xlu1 %v5702_v43, %s4168_s2 }
 0xb3a   :  { %3198 = vrot.lane.b32.xlu0 %v5708_v46, %s4169_s23 }
 0xb3d   :  { %2950 = vrot.lane.b32.xlu1 %v5708_v46, %s4140_s3 }
 0xb3e   :  { %2902 = vrot.lane.b32.xlu0 %v5648_v52, %s4168_s2 }
 0xb41   :  { %3156 = vrot.lane.b32.xlu1 %v5738_v0, %s4165_s12 }
 0xb42   :  { %3188 = vrot.lane.b32.xlu0 %v5666_v55, %s4169_s23 }
 0xb45   :  { %3116 = vrot.lane.b32.xlu1 %v5738_v0, %s4166_s30 }
 0xb46   :  { %3028 = vrot.lane.b32.xlu0 %v5738_v0, %s4146_s14 }
 0xb49   :  { %3160 = vrot.lane.b32.xlu1 %v5748_v54, %s4165_s12 }
 0xb4a   :  { %2988 = vrot.lane.b32.xlu0 %v5738_v0, %s4167_s11 }
 0xb4d   :  { %3076 = vrot.lane.b32.xlu1 %v5738_v0, %s4152_s17 }
 0xb4e   :  { %3032 = vrot.lane.b32.xlu0 %v5748_v54, %s4146_s14 }
 0xb51   :  { %3120 = vrot.lane.b32.xlu1 %v5748_v54, %s4166_s30 }
 0xb52   :  { %2948 = vrot.lane.b32.xlu0 %v5738_v0, %s4140_s3 }
 0xb55   :  { %3080 = vrot.lane.b32.xlu1 %v5748_v54, %s4152_s17 }
 0xb56   :  { %2992 = vrot.lane.b32.xlu0 %v5748_v54, %s4167_s11 }
 0xb59   :  { %2910 = vrot.lane.b32.xlu1 %v5708_v46, %s4168_s2 }
 0xb5a   :  { %2908 = vrot.lane.b32.xlu0 %v5738_v0, %s4168_s2 }
 0xb5d   :  { %3194 = vrot.lane.b32.xlu1 %v5702_v43, %s4169_s23 }
 0xb5e   :  { %2952 = vrot.lane.b32.xlu0 %v5748_v54, %s4140_s3 }
 0xb60   :  { %v5774_v61 = vpop.permute.xlu0 %3146 }
 0xb61   :  { %2904 = vrot.lane.b32.xlu1 %v5672_v4, %s4168_s2 }
 0xb62   :  { %2912 = vrot.lane.b32.xlu0 %v5748_v54, %s4168_s2 }
 0xb63   :  { %v5780_v56 = vpop.permute.xlu1 %3150 }
 0xb64   :  { %v5784_v8 = vpop.permute.xlu0 %3110 }
 0xb65   :  { %3190 = vrot.lane.b32.xlu1 %v5648_v52, %s4169_s23 }
 0xb66   :  { %3186 = vrot.lane.b32.xlu0 %v5644_v13, %s4169_s23 }
 0xb67   :  { %v5790_v22 = vpop.permute.xlu1 %3018 }
 0xb68   :  { %v5792_v24 = vpop.permute.xlu0 %3106 }
 0xb69   :  { %3196 = vrot.lane.b32.xlu1 %v5738_v0, %s4169_s23 }
 0xb6a   :  { %3192 = vrot.lane.b32.xlu0 %v5672_v4, %s4169_s23 }
 0xb6b   :  { %v5798_v47 = vpop.permute.xlu1 %2978 }
 0xb6c   :  { %v5803_v60 = vpop.permute.xlu0 %3070 }
 0xb6d   :  { %3200 = vrot.lane.b32.xlu1 %v5748_v54, %s4169_s23 }
 0xb6e   :  { %3234 = vperm.xlu0 %3912, %v3230_v48  }
 0xb6f   :  { %v3023_v7 = vpop.permute.xlu1 %3022 }
 0xb70   :  { %v5810_v31 = vpop.permute.xlu0 %3066 }
 0xb71   :  { %3239 = vperm.xlu1 %3913, %v3231_v20  }
 0xb73   :  { %v5815_v45 = vpop.permute.xlu1 %2938 }
 0xb74   :  { %v3149_v14 = vpop.permute.xlu0 %3148 }
 0xb75   :  { %3414 = vperm.xlu1 %3913, %v3411_v49  }
 0xb77   :  { %v2983_v51 = vpop.permute.xlu1 %2982 }
 0xb78   :  { %v5817_v58 = vpop.permute.xlu0 %3072 }
 0xb79   :  { %v5822_v10 = vsel %vm1453_vm14, %v5803_v60, %v5817_v58 }
 0xb7b   :  { %v5824_v11 = vpop.permute.xlu1 %2898 }
 0xb7c   :  { %6249 = vst [vmem:[#allocation31_spill] sm:$0xff] %v5824_v11  ;;  %v3021_v33 = vpop.permute.xlu0 %3020 }
 0xb7d   :  { %v5828_v62 = vsel %vm452_vm4, %v5790_v22, %v3021_v33  ;;  %v5831_v37 = vsel %vm452_vm4, %v3021_v33, %v3023_v7 }
 0xb7e   :  { %6250 = vst [vmem:[#allocation30_spill] sm:$0xff] %v5831_v37  ;;  %v3163_v37 = vsel %vm2598_vm3, %v3149_v14, %v5780_v56 }
 0xb7f   :  { %v2943_v44 = vpop.permute.xlu1 %2942 }
 0xb80   :  { %v2981_v3 = vpop.permute.xlu0 %2980 }
 0xb81   :  { %v5835_v30 = vsel %vm2323_vm6, %v5798_v47, %v2981_v3  ;;  %v5838_v42 = vsel %vm2323_vm6, %v2981_v3, %v2983_v51 }
 0xb82   :  { %6251 = vst [vmem:[#allocation45_spill] sm:$0xff] %v5838_v42 }
 0xb83   :  { %v3109_v48 = vpop.permute.xlu1 %3108 }
 0xb84   :  { %v3025_v20 = vpop.permute.xlu0 %3024 }
 0xb85   :  { %v5841_v49 = vsel %vm452_vm4, %v3023_v7, %v3025_v20 }
 0xb86   :  { %6252 = vst [vmem:[#allocation46_spill] sm:$0xff] %v5841_v49 }
 0xb87   :  { %v3153_v1 = vpop.permute.xlu1 %3152 }
 0xb88   :  { %v2941_v36 = vpop.permute.xlu0 %2940 }
 0xb89   :  { %v5845_v33 = vsel %vm1825_vm2, %v5815_v45, %v2941_v36  ;;  %v5848_v2 = vsel %vm1825_vm2, %v2941_v36, %v2943_v44 }
 0xb8a   :  { %6253 = vst [vmem:[#allocation47_spill] sm:$0xff] %v5845_v33  ;;  %6254 = vst [vmem:[#allocation48_spill] sm:$0xff] %v5848_v2 }
 0xb8b   :  { %v5850_v16 = vpop.permute.xlu1 %3068 }
 0xb8c   :  { %v2985_v34 = vpop.permute.xlu0 %2984 }
 0xb8d   :  { %v5853_v3 = vsel %vm2323_vm6, %v2983_v51, %v2985_v34 }
 0xb8e   :  { %6255 = vst [vmem:[#allocation49_spill] sm:$0xff] %v5853_v3 }
 0xb8f   :  { %v5855_v35 = vpop.permute.xlu1 %3112 }
 0xb90   :  { %v5857_v28 = vpop.permute.xlu0 %2900 }
 0xb91   :  { %6256 = vst [vmem:[#allocation50_spill] sm:$0xff] %v5857_v28  ;;  %v5862_v7 = vsel %vm2200_vm7, %v5824_v11, %v5857_v28 }
 0xb92   :  { %6257 = vst [vmem:[#allocation51_spill] sm:$0xff] %v5862_v7 }
 0xb93   :  { %v3155_v20 = vpop.permute.xlu1 %3154 }
 0xb94   :  { %v2945_v39 = vpop.permute.xlu0 %2944 }
 0xb95   :  { %v5865_v36 = vsel %vm1825_vm2, %v2943_v44, %v2945_v39 }
 0xb96   :  { %6258 = vst [vmem:[#allocation52_spill] sm:$0xff] %v5865_v36 }
 0xb97   :  { %v5867_v2 = vpop.permute.xlu1 %3026 }
 0xb98   :  { %v3159_v42 = vpop.permute.xlu0 %3158 }
 0xb9b   :  { %v5869_v41 = vpop.permute.xlu1 %2986 }
 0xb9c   :  { %v5871_v34 = vpop.permute.xlu0 %3118 }
 0xb9f   :  { %v5873_v51 = vpop.permute.xlu1 %3030 }
 0xba0   :  { %v3115_v3 = vpop.permute.xlu0 %3114 }
 0xba3   :  { %v5875_v15 = vpop.permute.xlu1 %2946 }
 0xba4   :  { %v5877_v9 = vpop.permute.xlu0 %3078 }
 0xba7   :  { %v5879_v28 = vpop.permute.xlu1 %2990 }
 0xba8   :  { %6259 = vst [vmem:[#allocation53_spill] sm:$0xff] %v5879_v28  ;;  %v3075_v7 = vpop.permute.xlu0 %3074  ;;  %v3162_v28 = vsel %vm2598_vm3, %v5774_v61, %v3149_v14  ;;  %v3122_v14 = vsel %vm2536_vm5, %v5792_v24, %v3109_v48 }
 0xba9   :  { %v3178_v59 = vmul.f32 %v3162_v28, %v5323_v12 }
 0xbab   :  { %v5881_v38 = vpop.permute.xlu1 %2906 }
 0xbac   :  { %6260 = vst [vmem:[#allocation54_spill] sm:$0xff] %v5881_v38  ;;  %v5883_v39 = vpop.permute.xlu0 %3198 }
 0xbad   :  { %6261 = vst [vmem:[#allocation55_spill] sm:$0xff] %v5883_v39 }
 0xbaf   :  { %v5885_v44 = vpop.permute.xlu1 %2950 }
 0xbb0   :  { %6262 = vst [vmem:[#allocation56_spill] sm:$0xff] %v5885_v44  ;;  %v5887_v36 = vpop.permute.xlu0 %2902  ;;  %v3179_v44 = vmul.f32 %v3163_v37, %v5340_v26 }
 0xbb1   :  { %6263 = vst [vmem:[#allocation57_spill] sm:$0xff] %v5887_v36 }
 0xbb3   :  { %v3157_v11 = vpop.permute.xlu1 %3156 }
 0xbb4   :  { %v3165_v33 = vsel %vm2598_vm3, %v3155_v20, %v3157_v11  ;;  %v3166_v49 = vsel %vm2598_vm3, %v3157_v11, %v3159_v42  ;;  %v5893_v27 = vpop.permute.xlu0 %3188  ;;  %v3123_v20 = vsel %vm2536_vm5, %v3109_v48, %v5784_v8  ;;  %v6265_v48 = vld [vmem:[#allocation32_spill] sm:$0xff] }
 0xbb5   :  { %6264 = vst [vmem:[#allocation58_spill] sm:$0xff] %v5893_v27  ;;  %v3182_v38 = vmul.f32 %v3165_v33, %v5323_v12  ;;  %v3183_v39 = vmul.f32 %v3166_v49, %v5340_v26  ;;  %v3139_v12 = vmul.f32 %v3123_v20, %v5337_v57  ;;  %v3138_v49 = vmul.f32 %v3122_v14, %v5334_v18 }
 0xbb6   :  { %v3176_v33 = vsel %vm2598_vm3, %v3153_v1, 0.0 }
 0xbb7   :  { %v3117_v36 = vpop.permute.xlu1 %3116  ;;  %3248 = vmatprep.subr.mxu0 %v3183_v39 }
 0xbb8   :  { %v3125_v11 = vsel %vm2536_vm5, %v3115_v3, %v3117_v36  ;;  %v3126_v27 = vsel %vm2536_vm5, %v3117_v36, %v5871_v34  ;;  %3249 = vmatpush1.msra.mxu0 %v3182_v38  ;;  %v5906_v61 = vpop.permute.xlu0 %3028  ;;  %v6266_v36 = vld [vmem:[#allocation33_spill] sm:$0xff] }
 0xbb9   :  { %v3142_v26 = vmul.f32 %v3125_v11, %v5334_v18  ;;  %v3143_v37 = vmul.f32 %v3126_v27, %v5337_v57  ;;  %3250 = vmatprep.subr.mxu0 %v3179_v44  ;;  %v3164_v27 = vsel %vm2598_vm3, %v5780_v56, %v3153_v1  ;;  %v3181_v18 = vmul.f32 %v3176_v33, %v6266_v36 }
 0xbba   :  { %3251 = vmatpush1.msra.mxu0 %v3178_v59  ;;  %v3083_v44 = vsel %vm1453_vm14, %v5850_v16, %v5803_v60  ;;  %v3082_v11 = vsel %vm1453_vm14, %v5810_v31, %v5850_v16 }
 0xbbb   :  { %v3161_v28 = vpop.permute.xlu1 %3160  ;;  %3252 = vmatprep.subr.mxu0 %v3143_v37  ;;  %v3099_v60 = vmul.f32 %v3083_v44, %v5366_v25 }
 0xbbc   :  { %v3167_v38 = vsel %vm2598_vm3, %v3159_v42, %v3161_v28  ;;  %v3177_v3 = vsel %vm2598_vm3, %v3161_v28, 0.0  ;;  %3253 = vmatpush1.msra.mxu0 %v3142_v26  ;;  %v5917_v24 = vpop.permute.xlu0 %2988  ;;  %v3180_v42 = vmul.f32 %v3164_v27, %v6265_v48  ;;  %v3062_v27 = vmul.f32 %v5702_v43, %v5331_v29 }
 0xbbd   :  { %v3184_v59 = vmul.f32 %v3167_v38, %v6265_v48  ;;  %v3185_v57 = vmul.f32 %v3177_v3, %v6266_v36  ;;  %3254 = vmatprep.subr.mxu0 %v3139_v12  ;;  %v3136_v12 = vsel %vm2536_vm5, %v5855_v35, 0.0  ;;  %v6268_v38 = vld [vmem:[#allocation35_spill] sm:$0xff]  ;;  %v3096_v36 = vsel %vm1453_vm14, %v5817_v58, 0.0 }
 0xbbe   :  { %3255 = vmatpush1.msra.mxu0 %v3138_v49  ;;  %v3124_v49 = vsel %vm2536_vm5, %v5784_v8, %v5855_v35  ;;  %v3141_v48 = vmul.f32 %v3136_v12, %v6268_v38  ;;  %v3049_v35 = vsel %vm452_vm4, 0.0, %v5867_v2  ;;  %v3101_v58 = vmul.f32 %v3096_v36, %v5348_v19 }
 0xbbf   :  { %3325 = vmatprep.subr.mxu1 %v3185_v57  ;;  %v3077_v39 = vpop.permute.xlu1 %3076 }
 0xbc0   :  { %v3085_v20 = vsel %vm1453_vm14, %v3075_v7, %v3077_v39  ;;  %v3086_v1 = vsel %vm1453_vm14, %v3077_v39, %v5877_v9  ;;  %3326 = vmatpush1.msra.mxu1 %v3184_v59  ;;  %v5931_v56 = vpop.permute.xlu0 %3032  ;;  %v3098_v7 = vmul.f32 %v3082_v11, %v5355_v53  ;;  %v3059_v59 = vmul.f32 %v5666_v55, %v5328_v23 }
 0xbc1   :  { %v3102_v14 = vmul.f32 %v3085_v20, %v5355_v53  ;;  %v3103_v26 = vmul.f32 %v3086_v1, %v5366_v25  ;;  %3327 = vmatprep.subr.mxu1 %v3181_v18  ;;  %v6267_v25 = vld [vmem:[#allocation34_spill] sm:$0xff]  ;;  %v3063_v53 = vmul.f32 %v5738_v0, %v5328_v23  ;;  %v3058_v0 = vmul.f32 %v5644_v13, %v5331_v29 }
 0xbc2   :  { %3328 = vmatpush1.msra.mxu1 %v3180_v42  ;;  %v3140_v57 = vmul.f32 %v3124_v49, %v6267_v25  ;;  %v3048_v39 = vsel %vm452_vm4, 0.0, %v5790_v22  ;;  %v3054_v55 = vmul.f32 %v3049_v35, %v5461_v63  ;;  %v3051_v22 = vmul.f32 %v5828_v62, %v5488_v40  ;;  %v6269_v62 = vld [vmem:[#allocation37_spill] sm:$0xff]  ;;  %v6275_v49 = vld [vmem:[#allocation47_spill] sm:$0xff] }
 0xbc3   :  { %v3121_v37 = vpop.permute.xlu1 %3120  ;;  %3256 = vmatprep.subr.mxu0 %v3103_v26  ;;  %v3009_v42 = vsel %vm2323_vm6, 0.0, %v5869_v41  ;;  %v3050_v20 = vmul.f32 %v3048_v39, %v5461_v63  ;;  %v3100_v1 = vmul.f32 %v5822_v10, %v5345_v17  ;;  %v3064_v63 = vmul.f32 %v5708_v46, %v6269_v62  ;;  %v6283_v39 = vld [vmem:[#allocation49_spill] sm:$0xff] }
 0xbc4   :  { %v3127_v28 = vsel %vm2536_vm5, %v5871_v34, %v3121_v37  ;;  %v3137_v16 = vsel %vm2536_vm5, %v3121_v37, 0.0  ;;  %3257 = vmatpush1.msra.mxu0 %v3102_v14  ;;  %v5945_v31 = vpop.permute.xlu0 %2948  ;;  %v3037_v34 = vsel %vm452_vm4, %v5867_v2, %v5906_v61  ;;  %v3014_v14 = vmul.f32 %v3009_v42, %v5497_v50 }
 0xbc5   :  { %v3144_v33 = vmul.f32 %v3127_v28, %v6267_v25  ;;  %v3145_v3 = vmul.f32 %v3137_v16, %v6268_v38  ;;  %3258 = vmatprep.subr.mxu0 %v3099_v60  ;;  %v3055_v23 = vmul.f32 %v3037_v34, %v5488_v40  ;;  %v3039_v10 = vsel %vm452_vm4, %v5873_v51, %v5931_v56  ;;  %v6273_v28 = vld [vmem:[#allocation54_spill] sm:$0xff] }
 0xbc6   :  { %3259 = vmatpush1.msra.mxu0 %v3098_v7  ;;  %v3038_v46 = vsel %vm452_vm4, %v5906_v61, %v5873_v51  ;;  %v3061_v56 = vmul.f32 %v5672_v4, %v5319_v32  ;;  %v3060_v37 = vmul.f32 %v5648_v52, %v6269_v62  ;;  %v3057_v51 = vmul.f32 %v3039_v10, %v5402_v5  ;;  %v6270_v61 = vld [vmem:[#allocation43_spill] sm:$0xff]  ;;  %v6276_v34 = vld [vmem:[#allocation30_spill] sm:$0xff]  ;;  %v6288_v62 = vld [vmem:[#allocation48_spill] sm:$0xff] }
 0xbc7   :  { %v3081_v8 = vpop.permute.xlu1 %3080  ;;  %3260 = vmatprep.subr.mxu0 %v3063_v53  ;;  %3329 = vmatprep.subr.mxu1 %v3145_v3  ;;  %v2971_v25 = vmul.f32 %v6275_v49, %v6270_v61  ;;  %v6290_v10 = vld [vmem:[#allocation57_spill] sm:$0xff] }
 0xbc8   :  { %v3087_v43 = vsel %vm1453_vm14, %v5877_v9, %v3081_v8  ;;  %v3097_v18 = vsel %vm1453_vm14, %v3081_v8, 0.0  ;;  %3261 = vmatpush1.msra.mxu0 %v3062_v27  ;;  %3330 = vmatpush1.msra.mxu1 %v3144_v33  ;;  %v2993_v2 = vpop.permute.xlu0 %2992  ;;  %v2997_v9 = vsel %vm2323_vm6, %v5869_v41, %v5917_v24  ;;  %v3065_v41 = vmul.f32 %v5748_v54, %v5319_v32  ;;  %v6271_v32 = vld [vmem:[#allocation39_spill] sm:$0xff]  ;;  %v6278_v8 = vld [vmem:[#allocation40_spill] sm:$0xff] }
 0xbc9   :  { %v3104_v29 = vmul.f32 %v3087_v43, %v5345_v17  ;;  %v3105_v13 = vmul.f32 %v3097_v18, %v5348_v19  ;;  %3262 = vmatprep.subr.mxu0 %v3059_v59  ;;  %3331 = vmatprep.subr.mxu1 %v3141_v48  ;;  %v3008_v19 = vsel %vm2323_vm6, 0.0, %v5798_v47  ;;  %v3015_v40 = vmul.f32 %v2997_v9, %v5502_v21  ;;  %v6277_v48 = vld [vmem:[#allocation31_spill] sm:$0xff]  ;;  %v6281_v43 = vld [vmem:[#allocation41_spill] sm:$0xff] }
 0xbca   :  { %3263 = vmatpush1.msra.mxu0 %v3058_v0  ;;  %3332 = vmatpush1.msra.mxu1 %v3140_v57  ;;  %v2969_v17 = vsel %vm1825_vm2, 0.0, %v5875_v15  ;;  %v2957_v47 = vsel %vm1825_vm2, %v5875_v15, %v5945_v31  ;;  %v3011_v54 = vmul.f32 %v5835_v30, %v5502_v21  ;;  %v3010_v60 = vmul.f32 %v3008_v19, %v5497_v50  ;;  %v6272_v50 = vld [vmem:[#allocation53_spill] sm:$0xff]  ;;  %v6279_v0 = vld [vmem:[#allocation38_spill] sm:$0xff] }
 0xbcb   :  { %v5986_v44 = vpop.permute.xlu1 %2910  ;;  %3264 = vmatprep.subr.mxu0 %v3055_v23  ;;  %3333 = vmatprep.subr.mxu1 %v3105_v13  ;;  %v2968_v21 = vsel %vm1825_vm2, 0.0, %v5815_v45  ;;  %v2974_v30 = vmul.f32 %v2969_v17, %v5509_v6  ;;  %v2975_v7 = vmul.f32 %v2957_v47, %v6270_v61  ;;  %v3056_v4 = vmul.f32 %v3038_v46, %v6271_v32  ;;  %v6274_v45 = vld [vmem:[#allocation46_spill] sm:$0xff]  ;;  %v6294_v61 = vld [vmem:[#allocation36_spill] sm:$0xff] }
 0xbcc   :  { %3334 = vmatpush1.msra.mxu1 %v3104_v29  ;;  %v5991_v11 = vpop.permute.xlu0 %2908  ;;  %3265 = vmatpush1.msra.mxu0 %v3054_v55  ;;  %v2999_v12 = vsel %vm2323_vm6, %v6272_v50, %v2993_v2  ;;  %v3053_v16 = vmul.f32 %v6274_v45, %v5402_v5  ;;  %v2929_v33 = vsel %vm2200_vm7, 0.0, %v6273_v28  ;;  %v2998_v38 = vsel %vm2323_vm6, %v5917_v24, %v6272_v50  ;;  %v6280_v24 = vld [vmem:[#allocation42_spill] sm:$0xff]  ;;  %v6284_v29 = vld [vmem:[#allocation51_spill] sm:$0xff] }
 0xbcd   :  { %3266 = vmatprep.subr.mxu0 %v3051_v22  ;;  %3335 = vmatprep.subr.mxu1 %v3101_v58  ;;  %v2917_v52 = vsel %vm2200_vm7, %v6273_v28, %v5991_v11  ;;  %v2970_v53 = vmul.f32 %v2968_v21, %v5509_v6  ;;  %v3052_v27 = vmul.f32 %v6276_v34, %v6271_v32  ;;  %v2928_v35 = vsel %vm2200_vm7, 0.0, %v6277_v48  ;;  %v6282_v6 = vld [vmem:[#allocation56_spill] sm:$0xff]  ;;  %v6285_v22 = vld [vmem:[#allocation45_spill] sm:$0xff]  ;;  %v6291_v47 = vld [vmem:[#allocation50_spill] sm:$0xff] }
 0xbce   :  { %3267 = vmatpush1.msra.mxu0 %v3050_v20  ;;  %3336 = vmatpush1.msra.mxu1 %v3100_v1  ;;  %v3017_v59 = vmul.f32 %v2999_v12, %v6278_v8  ;;  %v2935_v36 = vmul.f32 %v2917_v52, %v6279_v0  ;;  %v2934_v57 = vmul.f32 %v2929_v33, %v6280_v24  ;;  %v6286_v1 = vld [vmem:[#allocation44_spill] sm:$0xff]  ;;  %v6297_v28 = vld [vmem:[#allocation27_spill] sm:$0xff]  ;;  %v6299_v48 = vld [vmem:[#allocation29_spill] sm:$0xff] }
 0xbcf   :  { %v6014_v26 = vpop.permute.xlu1 %3194  ;;  %3268 = vmatprep.subr.mxu0 %v3015_v40  ;;  %3337 = vmatprep.subr.mxu1 %v3065_v41  ;;  %v3016_v18 = vmul.f32 %v2998_v38, %v6281_v43  ;;  %v3013_v23 = vmul.f32 %v6283_v39, %v6278_v8  ;;  %v2931_v13 = vmul.f32 %v6284_v29, %v6279_v0  ;;  %v6287_v40 = vld [vmem:[#allocation24_spill] sm:$0xff]  ;;  %v3229_v8 = vld [vmem:[#allocation16 + $0x18] sm:$0xff] }
 0xbd0   :  { %3338 = vmatpush1.msra.mxu1 %v3064_v63  ;;  %v2953_v15 = vpop.permute.xlu0 %2952  ;;  %3269 = vmatpush1.msra.mxu0 %v3014_v14  ;;  %v2958_v55 = vsel %vm1825_vm2, %v5945_v31, %v6282_v6  ;;  %v2930_v58 = vmul.f32 %v2928_v35, %v6280_v24  ;;  %v3012_v42 = vmul.f32 %v6285_v22, %v6281_v43  ;;  %v6289_v14 = vld [vmem:[#allocation52_spill] sm:$0xff]  ;;  %v6300_v24 = vmov 0.0  }
 0xbd1   :  { %3270 = vmatprep.subr.mxu0 %v3011_v54  ;;  %3339 = vmatprep.subr.mxu1 %v3061_v56  ;;  %v2959_v2 = vsel %vm1825_vm2, %v6282_v6, %v2953_v15  ;;  %v2976_v41 = vmul.f32 %v2958_v55, %v6287_v40  ;;  %v2972_v63 = vmul.f32 %v6288_v62, %v6287_v40  ;;  %v6292_v15 = vld [vmem:[#allocation58_spill] sm:$0xff] }
 0xbd2   :  { %3271 = vmatpush1.msra.mxu0 %v3010_v60  ;;  %3340 = vmatpush1.msra.mxu1 %v3060_v37  ;;  %v2977_v19 = vmul.f32 %v2959_v2, %v6286_v1  ;;  %v2973_v17 = vmul.f32 %v6289_v14, %v6286_v1  ;;  %v2915_v54 = vsel %vm2200_vm7, %v6291_v47, %v6290_v10  ;;  %v3410_v14 = vld [vmem:[%s6137_s19] sm:$0x7] }
 0xbd3   :  { %v2905_v3 = vpop.permute.xlu1 %2904  ;;  %3272 = vmatprep.subr.mxu0 %v2975_v7  ;;  %3341 = vmatprep.subr.mxu1 %v3057_v51  ;;  %v2918_v46 = vsel %vm2200_vm7, %v5991_v11, %v5986_v44  ;;  %v6295_v11 = vld [vmem:[#allocation25_spill] sm:$0xff] }
 0xbd4   :  { %3342 = vmatpush1.msra.mxu1 %v3056_v4  ;;  %v2913_v5 = vpop.permute.xlu0 %2912  ;;  %3273 = vmatpush1.msra.mxu0 %v2974_v30  ;;  %v2916_v60 = vsel %vm2200_vm7, %v6290_v10, %v2905_v3  ;;  %v6293_v30 = vld [vmem:[#allocation55_spill] sm:$0xff]  ;;  %v6296_v4 = vld [vmem:[#allocation26_spill] sm:$0xff]  ;;  %v2936_v52 = vmul.f32 %v2918_v46, %v6297_v28 }
 0xbd5   :  { %3274 = vmatprep.subr.mxu0 %v2971_v25  ;;  %3343 = vmatprep.subr.mxu1 %v3053_v16  ;;  %v2919_v31 = vsel %vm2200_vm7, %v5986_v44, %v2913_v5  ;;  %v2933_v45 = vmul.f32 %v2916_v60, %v6294_v61 }
 0xbd6   :  { %3275 = vmatpush1.msra.mxu0 %v2970_v53  ;;  %3344 = vmatpush1.msra.mxu1 %v3052_v27  ;;  %v2937_v7 = vmul.f32 %v2919_v31, %v6294_v61  ;;  %v3226_v53 = vld [vmem:[#allocation16] sm:$0xff] }
 0xbd7   :  { %v3191_v9 = vpop.permute.xlu1 %3190  ;;  %3276 = vmatprep.subr.mxu0 %v2935_v36  ;;  %3345 = vmatprep.subr.mxu1 %v3017_v59  ;;  %v6298_v27 = vld [vmem:[#allocation28_spill] sm:$0xff]  ;;  %v3228_v36 = vld [vmem:[#allocation16 + $0x10] sm:$0xff] }
 0xbd8   :  { %3346 = vmatpush1.msra.mxu1 %v3016_v18  ;;  %v3187_v20 = vpop.permute.xlu0 %3186  ;;  %3277 = vmatpush1.msra.mxu0 %v2934_v57  ;;  %v3203_v37 = vsel %vm2660_vm8, %v6292_v15, %v3191_v9 }
 0xbd9   :  { %3278 = vmatprep.subr.mxu0 %v2931_v13  ;;  %3347 = vmatprep.subr.mxu1 %v3013_v23  ;;  %v3202_v44 = vsel %vm2660_vm8, %v3187_v20, %v6292_v15  ;;  %v3219_v16 = vmul.f32 %v3203_v37, %v6296_v4 }
 0xbda   :  { %3279 = vmatpush1.msra.mxu0 %v2930_v58  ;;  %3348 = vmatpush1.msra.mxu1 %v3012_v42  ;;  %v3218_v25 = vmul.f32 %v3202_v44, %v6295_v11 }
 0xbdb   :  { %v3197_v56 = vpop.permute.xlu1 %3196  ;;  %3349 = vmatprep.subr.mxu1 %v2977_v19 }
 0xbdc   :  { %v3205_v21 = vsel %vm2660_vm8, %v6014_v26, %v3197_v56  ;;  %v3206_v51 = vsel %vm2660_vm8, %v3197_v56, %v6293_v30  ;;  %3350 = vmatpush1.msra.mxu1 %v2976_v41  ;;  %v3193_v12 = vpop.permute.xlu0 %3192  ;;  %v2932_v26 = vmul.f32 %v2915_v54, %v6297_v28 }
 0xbdd   :  { %v3222_v32 = vmul.f32 %v3205_v21, %v6295_v11  ;;  %v3223_v50 = vmul.f32 %v3206_v51, %v6296_v4  ;;  %3351 = vmatprep.subr.mxu1 %v2973_v17  ;;  %v3216_v33 = vsel %vm2660_vm8, %v3193_v12, 0.0  ;;  %v3204_v34 = vsel %vm2660_vm8, %v3191_v9, %v3193_v12 }
 0xbde   :  { %3352 = vmatpush1.msra.mxu1 %v2972_v63  ;;  %v3221_v59 = vmul.f32 %v3216_v33, %v6299_v48  ;;  %v3220_v0 = vmul.f32 %v3204_v34, %v6298_v27 }
 0xbdf   :  { %v3201_v49 = vpop.permute.xlu1 %3200  ;;  %3308 = vmatprep.subr.mxu0 %v3223_v50  ;;  %3353 = vmatprep.subr.mxu1 %v2937_v7 }
 0xbe0   :  { %v3207_v38 = vsel %vm2660_vm8, %v6293_v30, %v3201_v49  ;;  %v3217_v3 = vsel %vm2660_vm8, %v3201_v49, 0.0  ;;  %3309 = vmatpush2.msra.mxu0 %v3222_v32  ;;  %3354 = vmatpush1.msra.mxu1 %v2936_v52 }
 0xbe1   :  { %v3224_v5 = vmul.f32 %v3207_v38, %v6298_v27  ;;  %v3225_v35 = vmul.f32 %v3217_v3, %v6299_v48  ;;  %3310 = vmatprep.subr.mxu0 %v3219_v16  ;;  %3355 = vmatprep.subr.mxu1 %v2933_v45 }
 0xbe2   :  { %3311 = vmatpush2.msra.mxu0 %v3218_v25  ;;  %3356 = vmatpush1.msra.mxu1 %v2932_v26 }
 0xbe3   :  { %3313 = vmatmul.mubr.f32.vlgmr.msra.gmra.mxu0 %v3226_v53  ;;  %3385 = vmatprep.subr.mxu1 %v3225_v35 }
 0xbe4   :  { %3386 = vmatpush2.msra.mxu1 %v3224_v5  ;;  %3639 = vmatprep.mubr.msk.f32.mxu0 %vm1825_vm2, %v3229_v8 }
 0xbe5   :  { %3387 = vmatprep.subr.mxu1 %v3221_v59 }
 0xbe6   :  { %3388 = vmatpush2.msra.mxu1 %v3220_v0 }
 0xbe7   :  { %3319 = vmatmul.mubr.f32.gmra.mxu0 %v3228_v36  ;;  %3390 = vmatmul.mubr.f32.vlgmr.msra.gmra.mxu1 %v3226_v53 }
 0xbe8   :  { %3641 = vmatprep.mubr.msk.f32.mxu1 %vm1825_vm2, %v3229_v8  ;;  %3484 = vmatprep.mubr.f32.mxu0 %v6300_v24 }
 0xbe9   :  { %v3235_v2 = vpop.permute.xlu0 %3234 }
 0xbeb   :  { %3396 = vmatmul.mubr.f32.gmra.mxu1 %v3228_v36 }
 0xbec   :  { %v3240_v39 = vpop.permute.xlu1 %3239 }
 0xbf0   :  { %v3415_v46 = vpop.permute.xlu1 %3414 }
 0xca3   :  { %v3314_v57 = vpop.f32.mrf.mxu0 }
 0xca4   :  { %v3315_v58 = vadd.f32 %v3314_v57, %v3235_v2 }
 0xca5   :  { %v3316_v43 = vpop.f32.mrf.mxu0 }
 0xca6   :  { %v3317_v55 = vadd.f32 %v3316_v43, %v3235_v2  ;;  %v3402_v62 = vmax.f32 %v3315_v58, 0.0 }
 0xca7   :  { %v3320_v18 = vpop.f32.mrf.mxu0  ;;  %v3391_v6 = vpop.f32.mrf.mxu1 }
 0xca8   :  { %v3321_v23 = vadd.f32 %v3320_v18, %v3240_v39  ;;  %v3403_v40 = vmax.f32 %v3317_v55, 0.0  ;;  %v3392_v63 = vadd.f32 %v3391_v6, %v3235_v2 }
 0xca9   :  { %v3322_v29 = vpop.f32.mrf.mxu0  ;;  %v3393_v13 = vpop.f32.mrf.mxu1 }
 0xcaa   :  { %v3323_v9 = vadd.f32 %v3322_v29, %v3240_v39  ;;  %v3406_v20 = vmax.f32 %v3321_v23, 0.0  ;;  %v3394_v41 = vadd.f32 %v3393_v13, %v3235_v2  ;;  %v3404_v54 = vmax.f32 %v3392_v63, 0.0 }
 0xcab   :  { %v3397_v22 = vpop.f32.mrf.mxu1 }
 0xcac   :  { %v3407_v42 = vmax.f32 %v3323_v9, 0.0  ;;  %v3398_v1 = vadd.f32 %v3397_v22, %v3240_v39  ;;  %v3405_v47 = vmax.f32 %v3394_v41, 0.0 }
 0xcad   :  { %v3399_v19 = vpop.f32.mrf.mxu1 }
 0xcae   :  { %v3400_v31 = vadd.f32 %v3399_v19, %v3240_v39  ;;  %3448 = vmatprep.subr.mxu0 %v3407_v42  ;;  %v3408_v10 = vmax.f32 %v3398_v1, 0.0 }
 0xcaf   :  { %3449 = vmatpush1.msra.mxu0 %v3406_v20 }
 0xcb0   :  { %v3409_v17 = vmax.f32 %v3400_v31, 0.0  ;;  %3450 = vmatprep.subr.mxu0 %v3403_v40 }
 0xcb1   :  { %3451 = vmatpush1.msra.mxu0 %v3402_v62 }
 0xcb2   :  { %3642 = vmatmul.mubr.msk.f32.vlgmr.msra.gmra.mxu0 %vm1825_vm2, %v3410_v14  ;;  %3519 = vmatprep.subr.mxu0 %v3409_v17 }
 0xcb3   :  { %3520 = vmatpush1.msra.mxu0 %v3408_v10  ;;  %3555 = vmatprep.mubr.f32.mxu0 %v6300_v24 }
 0xcb4   :  { %3521 = vmatprep.subr.mxu0 %v3405_v47 }
 0xcb5   :  { %3522 = vmatpush1.msra.mxu0 %v3404_v54 }
 0xcb6   :  { %3643 = vmatmul.mubr.msk.f32.vlgmr.msra.gmra.mxu0 %vm1825_vm2, %v3410_v14 }
 0xd72   :  { %v3486_v56 = vpop.f32.mrf.mxu0 }
 0xd73   :  { %v3487_v60 = vadd.f32 %v3486_v56, %v3415_v46 }
 0xd74   :  { %v3488_v15 = vpop.f32.mrf.mxu0 }
 0xd75   :  { %v3489_v37 = vadd.f32 %v3488_v15, %v3415_v46  ;;  %3914 = vtanh.f32 %v3487_v60 }
 0xd76   :  { %v3557_v21 = vpop.f32.mrf.mxu0 }
 0xd77   :  { %3916 = vtanh.f32 %v3489_v37  ;;  %v3558_v30 = vadd.f32 %v3557_v21, %v3415_v46 }
 0xd78   :  { %v3559_v51 = vpop.f32.mrf.mxu0 }
 0xd79   :  { %v3560_v61 = vadd.f32 %v3559_v51, %v3415_v46  ;;  %3918 = vtanh.f32 %v3558_v30 }
 0xd7b   :  { %3920 = vtanh.f32 %v3560_v61 }
 0xd82   :  { %v3915_v7 = vpop.eup %3914 }
 0xd84   :  { %v3917_v44 = vpop.eup %3916 }
 0xd85   :  { %v3568_v11 = vcombine.low %v3915_v7, %v3917_v44 }
 0xd86   :  { %v3919_v32 = vpop.eup %3918 }
 0xd87   :  { %3570 = vst [vmem:[%s6139_s21] sm:$0x77] %v3568_v11 }
 0xd88   :  { %v3921_v4 = vpop.eup %3920 }
 0xd89   :  { %v3573_v50 = vcombine.low %v3919_v32, %v3921_v4 }
 0xd8b   :  { %3644 = vst [vmem:[%s6139_s21 + $0x8] sm:$0x77] %v3573_v50 }
 0xd8c   :  { %3581 = vsyncpa [#allocation3], 1 }
 0xd8d   :  { %3582 = vsyncpa [#allocation5], 1 }
 0xd8e   :  { %3583 = vsyncpa [#allocation8], 1 }
 0xd8f   :  { %3584 = vsyncpa [#allocation11], 1 }
 0xd90   :  { %3585 = vsyncpa [#allocation14], 1 }
 0xd91   :  { %3586 = vsyncpa [#allocation17], 1 }

</bundles_post_ra>
